<compile_context>
chip_gen: v7x
topology: tpu7x:2x2x1
jax: 0.10.0
libtpu: 0.0.40
codegen_flags: <defaults>
</compile_context>

<pallas_src>
import math
import functools

import jax
import jax.numpy as jnp
from jax import lax
from jax.experimental import pallas as pl
from jax.experimental.pallas import tpu as pltpu


# ----------------------------- in-kernel helpers -----------------------------

def _group_norm_lrelu(y, gamma, beta, groups, eps=1e-5, slope=0.1):
    # y: (C, P) f32, gamma/beta: (C, 1). PyTorch GroupNorm semantics (biased var),
    # single-pass statistics, followed by LeakyReLU(0.1).
    C, P = y.shape
    cg = C // groups
    yg = y.reshape(groups, cg, P)
    inv_n = 1.0 / float(cg * P)
    s1 = jnp.sum(jnp.sum(yg, axis=2, keepdims=True), axis=1, keepdims=True)
    s2 = jnp.sum(jnp.sum(yg * yg, axis=2, keepdims=True), axis=1, keepdims=True)
    mean = s1 * inv_n
    var = s2 * inv_n - mean * mean
    yn = ((yg - mean) * lax.rsqrt(var + eps)).reshape(C, P)
    yn = yn * gamma + beta
    return jnp.where(yn >= 0, yn, slope * yn)


# --------------------------------- the kernel --------------------------------

def cross_transformer_kernel(xq_ref, xk_ref, wq_ref, wv_ref, prm_ref,
                             out_ref, h_ref, loss_ref, *, groups, batch_block):
    BB = batch_block
    C = wq_ref.shape[0]
    P = out_ref.shape[2]

    prm = prm_ref[...]                                      # (C, 8) f32 packed params
    bq, gq, betaq = prm[:, 0:1], prm[:, 1:2], prm[:, 2:3]
    bv, gv, betav = prm[:, 3:4], prm[:, 4:5], prm[:, 5:6]

    xq_cm = xq_ref[...]                                     # (C, BB*P) bf16 (channel-major)
    xk_cm = xk_ref[...]                                     # (C, BB*P) bf16

    # 1x1 conv (channel matmul) for all BB batch elements at once:
    # bf16 x bf16 -> f32 on the MXU.
    k_pre = jnp.dot(wq_ref[...], xk_cm,
                    preferred_element_type=jnp.float32) + bq       # q_gen conv on Xk
    v_pre = jnp.dot(wv_ref[...], xq_cm,
                    preferred_element_type=jnp.float32) + bv       # v_gen conv on Xq

    # Dropout2d(p=0.4) layers: identity in inference mode.
    # TODO(synk): training-mode channel dropout (pltpu.prng_*) not implemented.

    inv_sqrt_c = 1.0 / math.sqrt(float(C))                  # h == 1
    loss_vec = jnp.zeros((1, P), jnp.float32)

    for i in range(BB):                                     # static, BB is tiny (<=4)
        sl = slice(i * P, (i + 1) * P)
        k_i = _group_norm_lrelu(k_pre[:, sl], gq, betaq, groups)   # K = q_gen(Xk)
        v_i = _group_norm_lrelu(v_pre[:, sl], gv, betav, groups)   # V = v_gen(Xq)
        q_i = xk_cm[:, sl]                                  # Q = raw Xk (bf16)

        # H = einsum('ci,cj->ij', K, V) / sqrt(c); softmax over dim=-2 (rows).
        h_logits = lax.dot_general(
            k_i.astype(jnp.bfloat16), v_i.astype(jnp.bfloat16),
            (((0,), (0,)), ((), ())),
            preferred_element_type=jnp.float32) * inv_sqrt_c        # (Pk, Pq)
        h_max = jnp.max(h_logits, axis=0, keepdims=True)
        h_exp = jnp.exp(h_logits - h_max)
        denom = jnp.sum(h_exp, axis=0, keepdims=True)
        h_att = h_exp * pl.reciprocal(denom, approx=True)           # EUP recip
        h_bf = h_att.astype(jnp.bfloat16)
        h_ref[i, 0] = h_bf                                           # bf16 writeback

        # Fused MXU call with a 256-lane RHS:
        #   G = H^T @ [H | Q]  -> (P, 2P);  G[:, :P] = H^T H,  G[:, P:] = out.
        hq = jnp.concatenate([h_bf, q_i], axis=1)                    # (P, 2P) bf16
        g = lax.dot_general(h_bf, hq, (((0,), (0,)), ((), ())),
                            preferred_element_type=jnp.float32)      # (P, 2P) f32
        gram = g[:, :P]                                              # H^T H
        out = g[:, P:]                                               # H^T Q

        # sparse_constrain partial:  sum((H H^T - I)^2)
        #   = ||H^T H||_F^2 - 2*trace(H^T H) + P,  trace(H^T H) = sum(H^2).
        # Both terms use the same bf16-rounded H (consistent precision).  The +P
        # constant and the grand total / mean are applied in the wrapper.
        h_f32 = h_bf.astype(jnp.float32)
        loss_vec += (jnp.sum(gram * gram, axis=0, keepdims=True)
                     - 2.0 * jnp.sum(h_f32 * h_f32, axis=0, keepdims=True))

        out_ref[i] = out.astype(out_ref.dtype)                       # bf16 writeback

    # One lane-dense (1, P) f32 row of loss partials per grid step.
    loss_ref[...] = loss_vec[None]


# --------------------------------- wrapper ------------------------------------

def _pick_batch_block(B):
    # Largest BB in {4, 2, 1} that divides B while keeping num_steps >= 2, so the
    # "parallel" grid axis can shard across both v7x TensorCores.  Wider BB (2/4)
    # widens the conv-matmul RHS (256/512 lanes) and amortizes per-step overhead.
    for bb in (4, 2, 1):
        if B % bb == 0 and B // bb >= 2:
            return bb
    return 1


def cross_transformer02(xq, xk, params, *, groups):
    B, C, P = xq.shape
    assert xk.shape == (B, C, P)
    assert C == P, "torch module's reshape/einsum pattern requires seq_len == channels"
    assert C % groups == 0

    BB = _pick_batch_block(B)
    num_steps = B // BB

    wq, bq, gq, betaq, wv, bv, gv, betav = params

    # Channel-major (C, B*P) activations: lane-dense bf16 matmul RHS, and each
    # per-batch (C, P) slab is a plain lane slice (reused as raw Q = Xk).
    def to_cm(x):
        return jnp.transpose(x, (1, 0, 2)).reshape(C, B * P).astype(jnp.bfloat16)

    xq_cm = to_cm(xq)
    xk_cm = to_cm(xk)
    wq_bf = wq.astype(jnp.bfloat16)
    wv_bf = wv.astype(jnp.bfloat16)
    # Six per-channel (C,1) params packed into one lane-dense (C,8) array.
    prm = jnp.concatenate(
        [bq, gq, betaq, bv, gv, betav, jnp.zeros((C, 2), jnp.float32)], axis=1)

    kernel = functools.partial(cross_transformer_kernel,
                               groups=groups, batch_block=BB)

    flops = B * (4 * C * C * P        # two 1x1-conv matmuls
                 + 2 * C * P * P      # K^T V logits
                 + 2 * P * (2 * P) * P)   # fused H^T [H|Q]
    transcendentals = B * (P * P + P)
    bytes_accessed = (2 * C * B * P * 2          # bf16 activations in
                      + 2 * C * C * 2            # bf16 conv weights
                      + C * 8 * 4                # packed params
                      + B * C * P * 2            # out (bf16)
                      + B * P * P * 2            # H (bf16)
                      + num_steps * P * 4)       # loss partials

    # TODO(synk): at the real 1024-channel scale, drop BB to 1, tile the query axis
    # and set pltpu.CompilerParams(vmem_limit_bytes=...) explicitly (v7x 64 MiB).
    out, h, loss_parts = pl.pallas_call(
        kernel,
        grid=(num_steps,),
        in_specs=[
            pl.BlockSpec((C, BB * P), lambda s: (0, s)),   # Xq channel-major
            pl.BlockSpec((C, BB * P), lambda s: (0, s)),   # Xk channel-major
            pl.BlockSpec((C, C), lambda s: (0, 0)),        # q_gen conv weight
            pl.BlockSpec((C, C), lambda s: (0, 0)),        # v_gen conv weight
            pl.BlockSpec((C, 8), lambda s: (0, 0)),        # packed per-channel params
        ],
        out_specs=(
            pl.BlockSpec((BB, C, P), lambda s: (s, 0, 0)),
            pl.BlockSpec((BB, 1, P, P), lambda s: (s, 0, 0, 0)),
            pl.BlockSpec((1, 1, P), lambda s: (s, 0, 0)),
        ),
        out_shape=(
            jax.ShapeDtypeStruct((B, C, P), jnp.bfloat16),
            jax.ShapeDtypeStruct((B, 1, P, P), jnp.bfloat16),
            jax.ShapeDtypeStruct((num_steps, 1, P), jnp.float32),
        ),
        compiler_params=pltpu.CompilerParams(
            dimension_semantics=("parallel",)),
        cost_estimate=pl.CostEstimate(
            flops=flops, transcendentals=transcendentals,
            bytes_accessed=bytes_accessed),
    )(xq_cm, xk_cm, wq_bf, wv_bf, prm)

    # sum((mid - I)^2) = [lane partials] + B*P ;  mean over B*h*P1*P2.
    total = jnp.sum(loss_parts) + float(B * P)
    sparse_loss = total / float(B * 1 * P * P)
    return out, sparse_loss, h


# ------------------------------ pure-JAX reference -----------------------------

def reference(xq, xk, params, groups, eps=1e-5):
    wq, bq, gq, betaq, wv, bv, gv, betav = params
    B, C, P = xq.shape
    hi = jax.lax.Precision.HIGHEST

    def gen(x, w, bias, gamma, beta):
        y = jnp.einsum('oi,bip->bop', w, x, precision=hi) + bias[None]
        yg = y.reshape(B, groups, C // groups, P)
        mean = yg.mean(axis=(2, 3), keepdims=True)
        var = ((yg - mean) ** 2).mean(axis=(2, 3), keepdims=True)
        yn = ((yg - mean) / jnp.sqrt(var + eps)).reshape(B, C, P)
        yn = yn * gamma[None] + beta[None]
        return jnp.where(yn >= 0, yn, 0.1 * yn)

    K = gen(xk, wq, bq, gq, betaq)
    V = gen(xq, wv, bv, gv, betav)
    Q = xk
    H = jnp.einsum('bci,bcj->bij', K, V, precision=hi) / math.sqrt(C)
    H = jax.nn.softmax(H, axis=-2)
    mid = jnp.einsum('bci,bki->bck', H, H, precision=hi)
    loss = jnp.mean((mid - jnp.eye(P)[None]) ** 2)
    out = jnp.einsum('bij,bik->bjk', H, Q, precision=hi)
    return out, loss, H[:, None]


# ----------------------------------- main --------------------------------------

if __name__ == "__main__":
    B, C, P, G = 2, 128, 128, 8     # scaled-down stand-in for (1024 channels, group=32)

    key = jax.random.PRNGKey(0)
    ks = jax.random.split(key, 10)
    wq = jax.random.normal(ks[0], (C, C), jnp.float32) / math.sqrt(C)
    bq = 0.1 * jax.random.normal(ks[1], (C, 1), jnp.float32)
    gq = 1.0 + 0.1 * jax.random.normal(ks[2], (C, 1), jnp.float32)
    betaq = 0.1 * jax.random.normal(ks[3], (C, 1), jnp.float32)
    wv = jax.random.normal(ks[4], (C, C), jnp.float32) / math.sqrt(C)
    bv = 0.1 * jax.random.normal(ks[5], (C, 1), jnp.float32)
    gv = 1.0 + 0.1 * jax.random.normal(ks[6], (C, 1), jnp.float32)
    betav = 0.1 * jax.random.normal(ks[7], (C, 1), jnp.float32)
    params = (wq, bq, gq, betaq, wv, bv, gv, betav)

    xq = jax.random.normal(ks[8], (B, C, P), jnp.float32)
    xk = jax.random.normal(ks[9], (B, C, P), jnp.float32)

    out, sparse_loss, H = jax.block_until_ready(
        cross_transformer02(xq, xk, params, groups=G))

    out_r, loss_r, H_r = reference(xq, xk, params, G)
    assert out.shape == (B, C, P) and H.shape == (B, 1, P, P)
    # Tolerances account for bf16 MXU operands / bf16 writeback (f32 accumulation)
    # + approx reciprocal in the softmax.
    assert jnp.allclose(out.astype(jnp.float32), out_r, atol=5e-2, rtol=5e-2)
    assert jnp.allclose(H.astype(jnp.float32), H_r, atol=1e-2, rtol=5e-2)
    assert jnp.allclose(sparse_loss, loss_r, atol=2e-4, rtol=2e-2)

    print("KERNEL_OK")
</pallas_src>

<mosaic_0001>
module attributes {stable_mosaic.version = 11 : i64} {
  func.func @cross_transformer_kernel(%arg0: i32, %arg1: memref<128x128xbf16, #tpu.memory_space<vmem>>, %arg2: memref<128x128xbf16, #tpu.memory_space<vmem>>, %arg3: memref<128x128xbf16, #tpu.memory_space<vmem>>, %arg4: memref<128x128xbf16, #tpu.memory_space<vmem>>, %arg5: memref<128x8xf32, #tpu.memory_space<vmem>>, %arg6: memref<1x128x128xbf16, #tpu.memory_space<vmem>>, %arg7: memref<1x1x128x128xbf16, #tpu.memory_space<vmem>>, %arg8: memref<1x1x128xf32, #tpu.memory_space<vmem>>) attributes {dimension_semantics = [#tpu.dimension_semantics<parallel>], iteration_bounds = array<i64: 2>, scalar_prefetch = 0 : i64, scratch_operands = 0 : i64, tpu.core_type = #tpu.core_type<tc>, window_params = [{transform_indices = @transform_0, window_bounds = array<i64: 128, 128>}, {transform_indices = @transform_1, window_bounds = array<i64: 128, 128>}, {pipeline_mode = #tpu.pipeline_mode<synchronous>, transform_indices = @transform_2, window_bounds = array<i64: 128, 128>}, {pipeline_mode = #tpu.pipeline_mode<synchronous>, transform_indices = @transform_3, window_bounds = array<i64: 128, 128>}, {pipeline_mode = #tpu.pipeline_mode<synchronous>, transform_indices = @transform_4, window_bounds = array<i64: 128, 8>}, {transform_indices = @transform_5, window_bounds = array<i64: 1, 128, 128>}, {transform_indices = @transform_6, window_bounds = array<i64: 1, 1, 128, 128>}, {transform_indices = @transform_7, window_bounds = array<i64: 1, 1, 128>}]} {
    %c0 = arith.constant 0 : index
    %c0_0 = arith.constant 0 : index
    %0 = vector.load %arg5[%c0, %c0_0] : memref<128x8xf32, #tpu.memory_space<vmem>>, vector<128x8xf32>
    %1 = vector.extract_strided_slice %0 {offsets = [0, 0], sizes = [128, 1], strides = [1, 1]} : vector<128x8xf32> to vector<128x1xf32>
    %2 = vector.extract_strided_slice %0 {offsets = [0, 1], sizes = [128, 1], strides = [1, 1]} : vector<128x8xf32> to vector<128x1xf32>
    %3 = vector.extract_strided_slice %0 {offsets = [0, 2], sizes = [128, 1], strides = [1, 1]} : vector<128x8xf32> to vector<128x1xf32>
    %4 = vector.extract_strided_slice %0 {offsets = [0, 3], sizes = [128, 1], strides = [1, 1]} : vector<128x8xf32> to vector<128x1xf32>
    %5 = vector.extract_strided_slice %0 {offsets = [0, 4], sizes = [128, 1], strides = [1, 1]} : vector<128x8xf32> to vector<128x1xf32>
    %6 = vector.extract_strided_slice %0 {offsets = [0, 5], sizes = [128, 1], strides = [1, 1]} : vector<128x8xf32> to vector<128x1xf32>
    %c0_1 = arith.constant 0 : index
    %c0_2 = arith.constant 0 : index
    %7 = vector.load %arg1[%c0_1, %c0_2] : memref<128x128xbf16, #tpu.memory_space<vmem>>, vector<128x128xbf16>
    %c0_3 = arith.constant 0 : index
    %c0_4 = arith.constant 0 : index
    %8 = vector.load %arg2[%c0_3, %c0_4] : memref<128x128xbf16, #tpu.memory_space<vmem>>, vector<128x128xbf16>
    %c0_5 = arith.constant 0 : index
    %c0_6 = arith.constant 0 : index
    %9 = vector.load %arg3[%c0_5, %c0_6] : memref<128x128xbf16, #tpu.memory_space<vmem>>, vector<128x128xbf16>
    %cst = arith.constant dense<0.000000e+00> : vector<128x128xf32>
    %10 = tpu.matmul %9, %8, %cst {dimension_numbers = #tpu.dot_dimension_numbers<[1], [0], [0], [1], [0, 0, 1, 1], [], []>} : vector<128x128xbf16>, vector<128x128xbf16>, vector<128x128xf32> -> vector<128x128xf32>
    %11 = vector.broadcast %1 : vector<128x1xf32> to vector<128x128xf32>
    %12 = arith.addf %10, %11 : vector<128x128xf32>
    %c0_7 = arith.constant 0 : index
    %c0_8 = arith.constant 0 : index
    %13 = vector.load %arg4[%c0_7, %c0_8] : memref<128x128xbf16, #tpu.memory_space<vmem>>, vector<128x128xbf16>
    %cst_9 = arith.constant dense<0.000000e+00> : vector<128x128xf32>
    %14 = tpu.matmul %13, %7, %cst_9 {dimension_numbers = #tpu.dot_dimension_numbers<[1], [0], [0], [1], [0, 0, 1, 1], [], []>} : vector<128x128xbf16>, vector<128x128xbf16>, vector<128x128xf32> -> vector<128x128xf32>
    %15 = vector.broadcast %4 : vector<128x1xf32> to vector<128x128xf32>
    %16 = arith.addf %14, %15 : vector<128x128xf32>
    %cst_10 = arith.constant 0.000000e+00 : f32
    %17 = vector.broadcast %cst_10 : f32 to vector<1x128xf32>
    %18 = vector.shape_cast %12 : vector<128x128xf32> to vector<8x16x128xf32>
    %cst_11 = arith.constant dense<0.000000e+00> : vector<8x16xf32>
    %19 = vector.multi_reduction <add>, %18, %cst_11 [2] : vector<8x16x128xf32> to vector<8x16xf32>
    %20 = vector.shape_cast %19 : vector<8x16xf32> to vector<8x16x1xf32>
    %cst_12 = arith.constant dense<0.000000e+00> : vector<8x1xf32>
    %21 = vector.multi_reduction <add>, %20, %cst_12 [1] : vector<8x16x1xf32> to vector<8x1xf32>
    %22 = vector.shape_cast %21 : vector<8x1xf32> to vector<8x1x1xf32>
    %23 = arith.mulf %18, %18 : vector<8x16x128xf32>
    %cst_13 = arith.constant dense<0.000000e+00> : vector<8x16xf32>
    %24 = vector.multi_reduction <add>, %23, %cst_13 [2] : vector<8x16x128xf32> to vector<8x16xf32>
    %25 = vector.shape_cast %24 : vector<8x16xf32> to vector<8x16x1xf32>
    %cst_14 = arith.constant dense<0.000000e+00> : vector<8x1xf32>
    %26 = vector.multi_reduction <add>, %25, %cst_14 [1] : vector<8x16x1xf32> to vector<8x1xf32>
    %27 = vector.shape_cast %26 : vector<8x1xf32> to vector<8x1x1xf32>
    %cst_15 = arith.constant 4.8828125E-4 : f32
    %28 = vector.broadcast %cst_15 : f32 to vector<8x1x1xf32>
    %29 = arith.mulf %22, %28 : vector<8x1x1xf32>
    %cst_16 = arith.constant 4.8828125E-4 : f32
    %30 = vector.broadcast %cst_16 : f32 to vector<8x1x1xf32>
    %31 = arith.mulf %27, %30 : vector<8x1x1xf32>
    %32 = arith.mulf %29, %29 : vector<8x1x1xf32>
    %33 = arith.subf %31, %32 : vector<8x1x1xf32>
    %34 = vector.broadcast %29 : vector<8x1x1xf32> to vector<8x16x128xf32>
    %35 = arith.subf %18, %34 : vector<8x16x128xf32>
    %cst_17 = arith.constant 9.99999974E-6 : f32
    %36 = vector.broadcast %cst_17 : f32 to vector<8x1x1xf32>
    %37 = arith.addf %33, %36 : vector<8x1x1xf32>
    %38 = math.rsqrt %37 : vector<8x1x1xf32>
    %39 = vector.broadcast %38 : vector<8x1x1xf32> to vector<8x16x128xf32>
    %40 = arith.mulf %35, %39 : vector<8x16x128xf32>
    %41 = vector.shape_cast %40 : vector<8x16x128xf32> to vector<128x128xf32>
    %42 = vector.broadcast %2 : vector<128x1xf32> to vector<128x128xf32>
    %43 = arith.mulf %41, %42 : vector<128x128xf32>
    %44 = vector.broadcast %3 : vector<128x1xf32> to vector<128x128xf32>
    %45 = arith.addf %43, %44 : vector<128x128xf32>
    %cst_18 = arith.constant 0.000000e+00 : f32
    %46 = vector.broadcast %cst_18 : f32 to vector<128x128xf32>
    %47 = arith.cmpf oge, %45, %46 : vector<128x128xf32>
    %cst_19 = arith.constant 1.000000e-01 : f32
    %48 = vector.broadcast %cst_19 : f32 to vector<128x128xf32>
    %49 = arith.mulf %48, %45 : vector<128x128xf32>
    %50 = arith.select %47, %45, %49 : vector<128x128xi1>, vector<128x128xf32>
    %51 = vector.shape_cast %16 : vector<128x128xf32> to vector<8x16x128xf32>
    %cst_20 = arith.constant dense<0.000000e+00> : vector<8x16xf32>
    %52 = vector.multi_reduction <add>, %51, %cst_20 [2] : vector<8x16x128xf32> to vector<8x16xf32>
    %53 = vector.shape_cast %52 : vector<8x16xf32> to vector<8x16x1xf32>
    %cst_21 = arith.constant dense<0.000000e+00> : vector<8x1xf32>
    %54 = vector.multi_reduction <add>, %53, %cst_21 [1] : vector<8x16x1xf32> to vector<8x1xf32>
    %55 = vector.shape_cast %54 : vector<8x1xf32> to vector<8x1x1xf32>
    %56 = arith.mulf %51, %51 : vector<8x16x128xf32>
    %cst_22 = arith.constant dense<0.000000e+00> : vector<8x16xf32>
    %57 = vector.multi_reduction <add>, %56, %cst_22 [2] : vector<8x16x128xf32> to vector<8x16xf32>
    %58 = vector.shape_cast %57 : vector<8x16xf32> to vector<8x16x1xf32>
    %cst_23 = arith.constant dense<0.000000e+00> : vector<8x1xf32>
    %59 = vector.multi_reduction <add>, %58, %cst_23 [1] : vector<8x16x1xf32> to vector<8x1xf32>
    %60 = vector.shape_cast %59 : vector<8x1xf32> to vector<8x1x1xf32>
    %cst_24 = arith.constant 4.8828125E-4 : f32
    %61 = vector.broadcast %cst_24 : f32 to vector<8x1x1xf32>
    %62 = arith.mulf %55, %61 : vector<8x1x1xf32>
    %cst_25 = arith.constant 4.8828125E-4 : f32
    %63 = vector.broadcast %cst_25 : f32 to vector<8x1x1xf32>
    %64 = arith.mulf %60, %63 : vector<8x1x1xf32>
    %65 = arith.mulf %62, %62 : vector<8x1x1xf32>
    %66 = arith.subf %64, %65 : vector<8x1x1xf32>
    %67 = vector.broadcast %62 : vector<8x1x1xf32> to vector<8x16x128xf32>
    %68 = arith.subf %51, %67 : vector<8x16x128xf32>
    %cst_26 = arith.constant 9.99999974E-6 : f32
    %69 = vector.broadcast %cst_26 : f32 to vector<8x1x1xf32>
    %70 = arith.addf %66, %69 : vector<8x1x1xf32>
    %71 = math.rsqrt %70 : vector<8x1x1xf32>
    %72 = vector.broadcast %71 : vector<8x1x1xf32> to vector<8x16x128xf32>
    %73 = arith.mulf %68, %72 : vector<8x16x128xf32>
    %74 = vector.shape_cast %73 : vector<8x16x128xf32> to vector<128x128xf32>
    %75 = vector.broadcast %5 : vector<128x1xf32> to vector<128x128xf32>
    %76 = arith.mulf %74, %75 : vector<128x128xf32>
    %77 = vector.broadcast %6 : vector<128x1xf32> to vector<128x128xf32>
    %78 = arith.addf %76, %77 : vector<128x128xf32>
    %cst_27 = arith.constant 0.000000e+00 : f32
    %79 = vector.broadcast %cst_27 : f32 to vector<128x128xf32>
    %80 = arith.cmpf oge, %78, %79 : vector<128x128xf32>
    %cst_28 = arith.constant 1.000000e-01 : f32
    %81 = vector.broadcast %cst_28 : f32 to vector<128x128xf32>
    %82 = arith.mulf %81, %78 : vector<128x128xf32>
    %83 = arith.select %80, %78, %82 : vector<128x128xi1>, vector<128x128xf32>
    %84 = arith.truncf %50 : vector<128x128xf32> to vector<128x128xbf16>
    %85 = arith.truncf %83 : vector<128x128xf32> to vector<128x128xbf16>
    %cst_29 = arith.constant dense<0.000000e+00> : vector<128x128xf32>
    %86 = tpu.matmul %84, %85, %cst_29 {dimension_numbers = #tpu.dot_dimension_numbers<[0], [0], [1], [1], [0, 1, 1, 1], [], []>} : vector<128x128xbf16>, vector<128x128xbf16>, vector<128x128xf32> -> vector<128x128xf32>
    %cst_30 = arith.constant 0.0883883461 : f32
    %87 = vector.broadcast %cst_30 : f32 to vector<128x128xf32>
    %88 = arith.mulf %86, %87 : vector<128x128xf32>
    %cst_31 = arith.constant dense<0xFF800000> : vector<128xf32>
    %89 = vector.multi_reduction <maximumf>, %88, %cst_31 [0] : vector<128x128xf32> to vector<128xf32>
    %90 = vector.shape_cast %89 : vector<128xf32> to vector<1x128xf32>
    %91 = vector.broadcast %90 : vector<1x128xf32> to vector<128x128xf32>
    %92 = arith.subf %88, %91 : vector<128x128xf32>
    %93 = math.exp %92 : vector<128x128xf32>
    %cst_32 = arith.constant dense<0.000000e+00> : vector<128xf32>
    %94 = vector.multi_reduction <add>, %93, %cst_32 [0] : vector<128x128xf32> to vector<128xf32>
    %95 = vector.shape_cast %94 : vector<128xf32> to vector<1x128xf32>
    %96 = tpu.reciprocal %95 {approx = true} : vector<1x128xf32> -> vector<1x128xf32>
    %97 = vector.broadcast %96 : vector<1x128xf32> to vector<128x128xf32>
    %98 = arith.mulf %93, %97 : vector<128x128xf32>
    %99 = arith.truncf %98 : vector<128x128xf32> to vector<128x128xbf16>
    %c0_33 = arith.constant 0 : index
    %c0_34 = arith.constant 0 : index
    %c0_35 = arith.constant 0 : index
    %c0_36 = arith.constant 0 : index
    %100 = vector.load %arg7[%c0_33, %c0_34, %c0_35, %c0_36] : memref<1x1x128x128xbf16, #tpu.memory_space<vmem>>, vector<1x1x128x128xbf16>
    %101 = vector.shape_cast %100 : vector<1x1x128x128xbf16> to vector<128x128xbf16>
    %102 = vector.shape_cast %99 : vector<128x128xbf16> to vector<1x1x128x128xbf16>
    tpu.vector_store %arg7[%c0_33, %c0_34, %c0_35, %c0_36], %102 {strides = array<i32>} : memref<1x1x128x128xbf16, #tpu.memory_space<vmem>>, vector<1x1x128x128xbf16>,
    %103 = tpu.concatenate %99, %8 in 1 : vector<128x128xbf16>, vector<128x128xbf16> -> vector<128x256xbf16>
    %cst_37 = arith.constant dense<0.000000e+00> : vector<128x256xf32>
    %104 = tpu.matmul %99, %103, %cst_37 {dimension_numbers = #tpu.dot_dimension_numbers<[0], [0], [1], [1], [0, 1, 1, 1], [], []>} : vector<128x128xbf16>, vector<128x256xbf16>, vector<128x256xf32> -> vector<128x256xf32>
    %105 = vector.extract_strided_slice %104 {offsets = [0, 0], sizes = [128, 128], strides = [1, 1]} : vector<128x256xf32> to vector<128x128xf32>
    %106 = vector.extract_strided_slice %104 {offsets = [0, 128], sizes = [128, 128], strides = [1, 1]} : vector<128x256xf32> to vector<128x128xf32>
    %107 = arith.extf %99 : vector<128x128xbf16> to vector<128x128xf32>
    %108 = arith.mulf %105, %105 : vector<128x128xf32>
    %cst_38 = arith.constant dense<0.000000e+00> : vector<128xf32>
    %109 = vector.multi_reduction <add>, %108, %cst_38 [0] : vector<128x128xf32> to vector<128xf32>
    %110 = vector.shape_cast %109 : vector<128xf32> to vector<1x128xf32>
    %111 = arith.mulf %107, %107 : vector<128x128xf32>
    %cst_39 = arith.constant dense<0.000000e+00> : vector<128xf32>
    %112 = vector.multi_reduction <add>, %111, %cst_39 [0] : vector<128x128xf32> to vector<128xf32>
    %113 = vector.shape_cast %112 : vector<128xf32> to vector<1x128xf32>
    %cst_40 = arith.constant 2.000000e+00 : f32
    %114 = vector.broadcast %cst_40 : f32 to vector<1x128xf32>
    %115 = arith.mulf %114, %113 : vector<1x128xf32>
    %116 = arith.subf %110, %115 : vector<1x128xf32>
    %117 = arith.addf %17, %116 : vector<1x128xf32>
    %118 = arith.truncf %106 : vector<128x128xf32> to vector<128x128xbf16>
    %c0_41 = arith.constant 0 : index
    %c0_42 = arith.constant 0 : index
    %c0_43 = arith.constant 0 : index
    %119 = vector.load %arg6[%c0_41, %c0_42, %c0_43] : memref<1x128x128xbf16, #tpu.memory_space<vmem>>, vector<1x128x128xbf16>
    %120 = vector.shape_cast %119 : vector<1x128x128xbf16> to vector<128x128xbf16>
    %121 = vector.shape_cast %118 : vector<128x128xbf16> to vector<1x128x128xbf16>
    tpu.vector_store %arg6[%c0_41, %c0_42, %c0_43], %121 {strides = array<i32>} : memref<1x128x128xbf16, #tpu.memory_space<vmem>>, vector<1x128x128xbf16>,
    %122 = vector.shape_cast %117 : vector<1x128xf32> to vector<1x1x128xf32>
    %c0_44 = arith.constant 0 : index
    %c0_45 = arith.constant 0 : index
    %c0_46 = arith.constant 0 : index
    %123 = vector.load %arg8[%c0_44, %c0_45, %c0_46] : memref<1x1x128xf32, #tpu.memory_space<vmem>>, vector<1x1x128xf32>
    tpu.vector_store %arg8[%c0_44, %c0_45, %c0_46], %122 {strides = array<i32>} : memref<1x1x128xf32, #tpu.memory_space<vmem>>, vector<1x1x128xf32>,
    return
  }
  func.func @transform_0(%arg0: i32) -> (i32, i32) {
    %c0_i32 = arith.constant 0 : i32
    %c0_i32_0 = arith.constant 0 : i32
    return %c0_i32, %arg0 : i32, i32
  }
  func.func @transform_1(%arg0: i32) -> (i32, i32) {
    %c0_i32 = arith.constant 0 : i32
    %c0_i32_0 = arith.constant 0 : i32
    return %c0_i32, %arg0 : i32, i32
  }
  func.func @transform_2(%arg0: i32) -> (i32, i32) {
    %c0_i32 = arith.constant 0 : i32
    %c0_i32_0 = arith.constant 0 : i32
    %c0_i32_1 = arith.constant 0 : i32
    return %c0_i32, %c0_i32_0 : i32, i32
  }
  func.func @transform_3(%arg0: i32) -> (i32, i32) {
    %c0_i32 = arith.constant 0 : i32
    %c0_i32_0 = arith.constant 0 : i32
    %c0_i32_1 = arith.constant 0 : i32
    return %c0_i32, %c0_i32_0 : i32, i32
  }
  func.func @transform_4(%arg0: i32) -> (i32, i32) {
    %c0_i32 = arith.constant 0 : i32
    %c0_i32_0 = arith.constant 0 : i32
    %c0_i32_1 = arith.constant 0 : i32
    return %c0_i32, %c0_i32_0 : i32, i32
  }
  func.func @transform_5(%arg0: i32) -> (i32, i32, i32) {
    %c0_i32 = arith.constant 0 : i32
    %c0_i32_0 = arith.constant 0 : i32
    %c0_i32_1 = arith.constant 0 : i32
    return %arg0, %c0_i32, %c0_i32_0 : i32, i32, i32
  }
  func.func @transform_6(%arg0: i32) -> (i32, i32, i32, i32) {
    %c0_i32 = arith.constant 0 : i32
    %c0_i32_0 = arith.constant 0 : i32
    %c0_i32_1 = arith.constant 0 : i32
    %c0_i32_2 = arith.constant 0 : i32
    return %arg0, %c0_i32, %c0_i32_0, %c0_i32_1 : i32, i32, i32, i32
  }
  func.func @transform_7(%arg0: i32) -> (i32, i32, i32) {
    %c0_i32 = arith.constant 0 : i32
    %c0_i32_0 = arith.constant 0 : i32
    %c0_i32_1 = arith.constant 0 : i32
    return %arg0, %c0_i32, %c0_i32_0 : i32, i32, i32
  }
}

</mosaic_0001>

<bundles_post_ra>
// kernel: tpu_custom_call.1
= control target key start
LH: loop header
LB: loop body
LE: loop exit
PB: predicated region body
PF: predicated region fallthrough
CT: control target
= control target key end

     0   :  { %13 = vsyncpa [#allocation4], 0  ;;  %s5045_s0 = inlined_call_operand.vmem [shape: bf16[128,256], index: 0, kind: input, shape index: {}]   ;;  %s5046_s1 = inlined_call_operand.hbm [shape: bf16[128,256], index: 1, kind: input, shape index: {}]   ;;  %s5047_s2 = inlined_call_operand.hbm [shape: bf16[128,128], index: 2, kind: input, shape index: {}]   ;;  %s5048_s3 = inlined_call_operand.hbm [shape: bf16[128,128], index: 3, kind: input, shape index: {}]   ;;  %s5049_s4 = inlined_call_operand.vmem [shape: f32[128,8], index: 4, kind: input, shape index: {}]   ;;  %s5050_s5 = inlined_call_operand.hbm [shape: bf16[2,128,128], index: 5, kind: output, shape index: {0}]   ;;  %s5051_s6 = inlined_call_operand.hbm [shape: bf16[2,1,128,128], index: 6, kind: output, shape index: {1}]   ;;  %s5052_s7 = inlined_call_operand.hbm [shape: f32[2,1,128], index: 7, kind: output, shape index: {2}]  }
   0x1   :  { %15 = vsyncpa [#allocation4 + $0x1], 0 }
   0x2   :  { %16 = vsyncpa [#allocation7], 0 }
   0x3   :  { %17 = vsyncpa [#allocation5], 0 }
   0x4   :  { %19 = vsyncpa [#allocation5 + $0x1], 0 }
   0x5   :  { %20 = vsyncpa [#allocation11], 0 }
   0x6   :  { %22 = vsyncpa [#allocation11 + $0x1], 0  ;;  %s3776_s24 = smov 0   ;;  %s3778_s25 = smov 0  }
   0x7   :  { %s3780_s26 = smov 0   ;;  %s3782_s27 = smov 0  }
   0x8 LB: > { %s3797_s28 = sadd.s32 4294967295, %s3715_s27   ;;  %s5053_s29 = sadd.s32 4294967294, %s3715_s27   ;;  %s3715_s27 = sphi %s3782_s27, %s5192_s27   ;;  %s3711_s26 = sphi %s3780_s26, %s5196_s26   ;;  %s3707_s25 = sphi %s3778_s25, %s5195_s25   ;;  %s3703_s24 = sphi %s3776_s24, %s5194_s24  }
   0x9   : > { %s3801_s30 = sadd.s32 1, %s3715_s27   ;;  %s35_s8 = sadd.s32 1, %s3711_s26 }
   0xa   : > { %5090 = sst [smem:[#allocation17_spill]] %s3801_s30  ;;  %s32_s9 = ssub.s32 %s3715_s27, %s3801_s30 }
   0xb   : > { %p42_p0 = scmp.ne.s32.totalorder %s3711_s26, %s3707_s25  ;;  %p33_p1 = scmp.eq.s32.totalorder %s32_s9, 0 }
   0xc   : > { %p43_p2 = scmp.eq.s32.totalorder %s3715_s27, 0  ;;  %p74_p3 = scmp.ne.s32.totalorder %s3707_s25, %s3703_s24 }
   0xd   : > { %p5054_p4 = scmp.eq.s32.totalorder %s3797_s28, 0  ;;  %p161_p7 = scmp.eq.s32.totalorder %s3797_s28, 1 }
   0xe   : > { %s3813_s10 = scalar_select %p33_p1, %s3711_s26, %s35_s8  }
   0xf   : > { %p3815_p5 = por %p43_p2, %p42_p0  ;;  %p3821_p6 = por %p5054_p4, %p74_p3 }
  0x10   : > { %5091 = sst [smem:[#allocation18_spill]] %s3813_s10  ;;  %p167_p8 = scmp.eq.s32.totalorder %s5053_s29, 1 }
  0x11   : > { %s5092_s11 = scalar_select %p3815_p5, 1, 0 }
  0x12   : > { %s5093_s12 = scalar_select %p3821_p6, 1, 0 }
  0x13   : > { %p2889_p9 = scmp.ge.s32.totalorder %s3715_s27, 1  ;;  %p226_p10 = scmp.lt.s32.totalorder %s3715_s27, 3 }
  0x14   : > { %p3830_p11 = por %p161_p7, %p42_p0  ;;  %p3834_p12 = por %p167_p8, %p74_p3 }
  0x15   : > { %p3838_p13 = pnand %p2889_p9, %p226_p10  ;;  %s3717_s16 = smov [#allocation6]  }
  0x16   : > { %s5094_s13 = scalar_select %p3830_p11, 1, 0 }
  0x17   : > { %s5095_s14 = scalar_select %p3834_p12, 1, 0 }
  0x18   : > { %s5097_s15 = scalar_select %p3838_p13, 1, 0 }
  0x19   : > { %5096 = sst [smem:[#allocation19_spill]] %s5095_s14  ;;  %p3281_p1 = pneg %p3838_p13 }
  0x1a   : > { %s238_s17 = sshll.u32 %s3717_s16, 4  ;;  %s3718_s19 = smov [#allocation8]   ;;  %s239_s17 = int_to_ptr.vmem [resolvable:$true] %s238_s17 }
  0x1b   : > { %p3846_p2 = pnand %p3281_p1, %p5054_p4  ;;  %s251_s20 = sshll.u32 %s3718_s19, 4  ;;  %s3850_s20 = int_to_ptr.vmem [resolvable:$true] %s251_s20 }
  0x1c   : > { %s3501_s23 = scalar_lea.hbm %s5047_s2, 1024 }
  0x1d   : > { %p3502_p0 = scmp.ne.s32.totalorder %s5047_s2, %s3501_s23  ;;  %p3503_p3 = pneg %p3846_p2 }
  0x1e   : > { %p3508_p9 = scmp.lt.u32.totalorder %s3501_s23, %s5047_s2 }
  0x1f   : > { %p3504_p7 = pnand %p3503_p3, %p3502_p0 }
  0x21   : > { %p3505_p8 = pneg %p3504_p7 }
  0x23   : > { %p3510_p10 = pnand %p3508_p9, %p3505_p8 }
  0x25   : > { %3513 = shalt.err (!%p3510_p10)
}
  0x26   : > { %s3514_s19 = scalar_lea.vmem %s239_s17, 1024  ;;  %p3522_p11 = scmp.lt.s32.totalorder %s239_s17, %s239_s17 }
  0x27   : > { %p3515_p1 = scmp.ne.s32.totalorder %s239_s17, %s3514_s19  ;;  %p3523_p6 = scmp.lt.s32.totalorder %s3514_s19, %s3514_s19 }
  0x29   : > { %p3517_p4 = pnand %p3515_p1, %p3503_p3  ;;  %p3524_p13 = por %p3523_p6, %p3522_p11 }
  0x2b   : > { %p3518_p12 = pneg %p3517_p4 }
  0x2d   : > { %p3525_p5 = pnand %p3524_p13, %p3518_p12 }
  0x2f   : > { %3528 = shalt.err (!%p3525_p5)
}
  0x30   : > { %s3719_s21 = smov 64   ;;  %s3720_s22 = smov 4  }
  0x31   : > { %3284 = dma.hbm_to_vmem [thread:$0]  (!%p3846_p2), %s5047_s2, 1024, %s239_s17, [#allocation7], %s3719_s21, %s3719_s21, %s3720_s22  }
  0x32   : > { %s3529_s16 = scalar_lea.hbm %s5048_s3, 1024 }
  0x33   : > { %p3530_p4 = scmp.ne.s32.totalorder %s5048_s3, %s3529_s16  ;;  %p3536_p11 = scmp.lt.u32.totalorder %s3529_s16, %s5048_s3 }
  0x35   : > { %p3532_p5 = pnand %p3530_p4, %p3503_p3 }
  0x37   : > { %p3533_p6 = pneg %p3532_p5 }
  0x39   : > { %p3538_p12 = pnand %p3536_p11, %p3533_p6 }
  0x3b   : > { %3541 = shalt.err (!%p3538_p12)
}
  0x3c   : > { %s3542_s17 = scalar_lea.vmem %s3850_s20, 1024  ;;  %p3550_p8 = scmp.lt.s32.totalorder %s3850_s20, %s3850_s20 }
  0x3d   : > { %p3543_p13 = scmp.ne.s32.totalorder %s3850_s20, %s3542_s17  ;;  %p3551_p9 = scmp.lt.s32.totalorder %s3542_s17, %s3542_s17 }
  0x3f   : > { %p3545_p0 = pnand %p3543_p13, %p3503_p3  ;;  %p3552_p10 = por %p3551_p9, %p3550_p8 }
  0x41   : > { %p3546_p7 = pneg %p3545_p0 }
  0x43   : > { %p3553_p1 = pnand %p3552_p10, %p3546_p7 }
  0x45   : > { %3556 = shalt.err (!%p3553_p1)
}
  0x46   : > { %3287 = dma.hbm_to_vmem [thread:$0]  (!%p3846_p2), %s5048_s3, 1024, %s3850_s20, [#allocation7], %s3719_s21, %s3719_s21, %s3720_s22  }
  0x47   : > { %p2892_p4 = scmp.ge.s32.totalorder %s3715_s27, 2 }
  0x48   : > { %p5099_p3 = scmp.ne.s32.totalorder (!%p2892_p4), %s5092_s11, 0 }
  0x49   : > { %264 = sbr.rel (%p2892_p4) target bundleno = 122 (0x7a), region = 28 }
  0x50   : > { %267 = sbr.rel (!%p5099_p3) target bundleno = 94 (0x5e), region = 32  ;;  %s269_s14 = sand.u32 (%p5099_p3), 1, %s3711_s26  }
  0x51   : > { %s2894_s29 = sshll.u32 (%p5099_p3), %s3715_s27, 2  ;;  %s2893_s23 = sshll.u32 (%p5099_p3), %s269_s14, 6 }
  0x52   : > { %s3909_s9 = scalar_lea.vmem (%p5099_p3), %s5045_s0, %s2894_s29  ;;  %s271_s20 = scalar_lea.vmem (%p5099_p3), [#allocation2], %s2893_s23 }
  0x53   : > { %v289_v0 = vld [vmem:[%s3909_s9] sm:$0xf] (%p5099_p3)  ;;  %v291_v1 = vld [vmem:[%s3909_s9 + $0x8] sm:$0xf] (%p5099_p3)  ;;  %v293_v2 = vld [vmem:[%s3909_s9 + $0x10] sm:$0xf] (%p5099_p3) }
  0x54   : > { %290 = vst [vmem:[%s271_s20] sm:$0xf] (%p5099_p3), %v289_v0  ;;  %292 = vst [vmem:[%s271_s20 + $0x4] sm:$0xf] (%p5099_p3), %v291_v1  ;;  %v295_v3 = vld [vmem:[%s3909_s9 + $0x18] sm:$0xf] (%p5099_p3) }
  0x55   : > { %v297_v4 = vld [vmem:[%s3909_s9 + $0x20] sm:$0xf] (%p5099_p3)  ;;  %294 = vst [vmem:[%s271_s20 + $0x8] sm:$0xf] (%p5099_p3), %v293_v2  ;;  %296 = vst [vmem:[%s271_s20 + $0xc] sm:$0xf] (%p5099_p3), %v295_v3 }
  0x56   : > { %298 = vst [vmem:[%s271_s20 + $0x10] sm:$0xf] (%p5099_p3), %v297_v4  ;;  %v299_v5 = vld [vmem:[%s3909_s9 + $0x28] sm:$0xf] (%p5099_p3)  ;;  %v301_v6 = vld [vmem:[%s3909_s9 + $0x30] sm:$0xf] (%p5099_p3) }
  0x57   : > { %v303_v7 = vld [vmem:[%s3909_s9 + $0x38] sm:$0xf]  ;;  %300 = vst [vmem:[%s271_s20 + $0x14] sm:$0xf] %v299_v5  ;;  %302 = vst [vmem:[%s271_s20 + $0x18] sm:$0xf] %v301_v6 }
  0x58   : > { %304 = vst [vmem:[%s271_s20 + $0x1c] sm:$0xf] %v303_v7  ;;  %v305_v8 = vld [vmem:[%s3909_s9 + $0x40] sm:$0xf]  ;;  %v307_v9 = vld [vmem:[%s3909_s9 + $0x48] sm:$0xf] }
  0x59   : > { %v309_v10 = vld [vmem:[%s3909_s9 + $0x50] sm:$0xf]  ;;  %306 = vst [vmem:[%s271_s20 + $0x20] sm:$0xf] %v305_v8  ;;  %308 = vst [vmem:[%s271_s20 + $0x24] sm:$0xf] %v307_v9 }
  0x5a   : > { %310 = vst [vmem:[%s271_s20 + $0x28] sm:$0xf] %v309_v10  ;;  %v311_v11 = vld [vmem:[%s3909_s9 + $0x58] sm:$0xf]  ;;  %v313_v12 = vld [vmem:[%s3909_s9 + $0x60] sm:$0xf] }
  0x5b   : > { %v315_v13 = vld [vmem:[%s3909_s9 + $0x68] sm:$0xf]  ;;  %312 = vst [vmem:[%s271_s20 + $0x2c] sm:$0xf] %v311_v11  ;;  %314 = vst [vmem:[%s271_s20 + $0x30] sm:$0xf] %v313_v12 }
  0x5c   : > { %316 = vst [vmem:[%s271_s20 + $0x34] sm:$0xf] %v315_v13  ;;  %v317_v14 = vld [vmem:[%s3909_s9 + $0x70] sm:$0xf]  ;;  %v319_v15 = vld [vmem:[%s3909_s9 + $0x78] sm:$0xf] }
  0x5d   : > { %318 = vst [vmem:[%s271_s20 + $0x38] sm:$0xf] %v317_v14  ;;  %320 = vst [vmem:[%s271_s20 + $0x3c] sm:$0xf] %v319_v15 }
  0x5e PF: > { %s376_s21 = sand.u32 1, %s3711_s26   ;;  %s2896_s22 = sshll.u32 %s3715_s27, 6 }
  0x5f   : > { %s2895_s16 = sshll.u32 %s376_s21, 6  ;;  %s3932_s30 = scalar_lea.hbm %s5046_s1, %s2896_s22 }
  0x60   : > { %s380_s10 = scalar_lea.vmem [#allocation3], %s2895_s16  ;;  %s3936_s29 = scalar_lea.sflag [#allocation4], %s376_s21 }
  0x61   : > { %s386_s14 = sshll.u32 %s380_s10, 4  ;;  %s3557_s23 = scalar_lea.hbm %s3932_s30, 1024  ;;  %s3934_s14 = int_to_ptr.vmem [resolvable:$true] %s386_s14 }
  0x62   : > { %p3558_p2 = scmp.ne.s32.totalorder %s3932_s30, %s3557_s23  ;;  %p5100_p5 = scmp.ne.s32.totalorder %s5092_s11, 0 }
  0x63   : > { %s3561_s9 = scalar_lea.hbm %s5046_s1, 2048  ;;  %p3562_p12 = scmp.lt.u32.totalorder %s3932_s30, %s5046_s1 }
  0x64   : > { %p3559_p6 = pnand %p3558_p2, %p5100_p5  ;;  %p3563_p13 = scmp.lt.u32.totalorder %s3561_s9, %s3557_s23 }
  0x65   : > { %p3565_p7 = scmp.lt.u32.totalorder %s3557_s23, %s3932_s30 }
  0x66   : > { %p3560_p11 = pneg %p3559_p6  ;;  %p3564_p0 = por %p3563_p13, %p3562_p12 }
  0x68   : > { %p3566_p8 = por %p3565_p7, %p3564_p0 }
  0x6a   : > { %p3567_p9 = pnand %p3566_p8, %p3560_p11 }
  0x6c   : > { %3570 = shalt.err (!%p3567_p9)
}
  0x6d   : > { %s3571_s21 = scalar_lea.vmem %s3934_s14, 1024  ;;  %s3721_s16 = smov [#allocation3]  }
  0x6e   : > { %p3572_p10 = scmp.ne.s32.totalorder %s3934_s14, %s3571_s21  ;;  %s3575_s19 = sshll.u32 %s3721_s16, 4  ;;  %s3576_s19 = int_to_ptr.vmem [resolvable:$false] %s3575_s19 }
  0x6f   : > { %s3577_s17 = scalar_lea.vmem %s3576_s19, 2048  ;;  %p3578_p2 = scmp.lt.s32.totalorder %s3934_s14, %s3576_s19 }
  0x70   : > { %p3573_p1 = pnand %p3572_p10, %p5100_p5  ;;  %p3579_p6 = scmp.lt.s32.totalorder %s3577_s17, %s3571_s21 }
  0x72   : > { %p3574_p3 = pneg %p3573_p1  ;;  %p3580_p12 = por %p3579_p6, %p3578_p2 }
  0x74   : > { %p3581_p13 = pnand %p3580_p12, %p3574_p3 }
  0x76   : > { %3584 = shalt.err (!%p3581_p13)
}
  0x77   : > { %s3722_s10 = smov 128   ;;  %s3723_s23 = smov 64  }
  0x78   : > { %s3724_s8 = smov 4  }
  0x79   : > { %3269 = dma.hbm_to_vmem [thread:$0]  (%p5100_p5), %s3932_s30, 1024, %s3934_s14, %s3936_s29, %s3722_s10, %s3723_s23, %s3724_s8  }
  0x7a PF: > { %p5101_p11 = scmp.ne.s32.totalorder %s5097_s15, 0 }
  0x7c   : > { %398 = sbr.rel (%p5101_p11) target bundleno = 1633 (0x661), region = 77 }
  0x83   : > { %s3963_s18 = sand.u32 1, %s3707_s25   ;;  %p5102_p5 = scmp.ne.s32.totalorder %s5093_s12, 0 }
  0x84   : > { %s3966_s9 = sshll.u32 %s3963_s18, 6  ;;  %s408_s22 = scalar_lea.sflag [#allocation4], %s3963_s18 }
  0x85   : > { %s3969_s20 = scalar_lea.vmem [#allocation2], %s3966_s9  ;;  %s3973_s21 = scalar_lea.vmem [#allocation3], %s3966_s9 }
  0x86   : > { %3686 = dma.done.wait (%p5102_p5), %s408_s22, 1024  }
  0x87   : > { %3688 = vsyncadd (%p5102_p5), %s408_s22, 4294966272  ;;  %p5103_p0 = scmp.eq.s32.totalorder %s3797_s28, 0 }
  0x89   : > { %3690 = dma.done.wait (%p5103_p0), [#allocation7], 2048   ;;  %p5104_p7 = pmov %p5103_p0 }
  0x8a   : > { %v5062_v16 = vmov 0   ;;  %v3379_v17 = vld [vmem:[%s3973_s21] sm:$0xff]   ;;  %v3381_v19 = vld [vmem:[%s3973_s21 + $0x8] sm:$0xff]   ;;  %v3383_v21 = vld [vmem:[%s3973_s21 + $0x10] sm:$0xff]   ;;  %v3726_v1 = vmov 3   ;;  %s4871_s17 = scalar_lea.vmem [#allocation10], %s3966_s9 }
  0x8b   : > { %3692 = vsyncadd (%p5104_p7), [#allocation7], 4294965248  ;;  %3350 = vset.pattern.permute.xlu0 %v5062_v16  ;;  %3351 = vset.pattern.permute.xlu1 %v5062_v16  ;;  %v3380_v18 = vld [vmem:[%s3969_s20] sm:$0xff]   ;;  %v3382_v20 = vld [vmem:[%s3969_s20 + $0x8] sm:$0xff]   ;;  %s3009_s10 = sshll.u32 %s3797_s28, 10  ;;  %s2708_s22 = sshll.u32 %s4871_s17, 4  ;;  %s4921_s22 = int_to_ptr.vmem [resolvable:$true] %s2708_s22 }
  0x8c   : > { %3153 = vmatprep.subr.bf16.mxu0 %v3379_v17  ;;  %3185 = vmatprep.subr.bf16.mxu1 %v3380_v18  ;;  %v3384_v22 = vld [vmem:[%s3969_s20 + $0x10] sm:$0xff]   ;;  %v3385_v23 = vld [vmem:[%s3973_s21 + $0x18] sm:$0xff]   ;;  %v3387_v25 = vld [vmem:[%s3973_s21 + $0x20] sm:$0xff]   ;;  %s3585_s12 = scalar_lea.vmem %s4921_s22, 1024  ;;  %p5188_p9 = scmp.ne.s32.totalorder %s5094_s13, 0 }
  0x8d   : > { %3154 = vmatpush3.bf16.msra.mxu0 %v3379_v17  ;;  %3186 = vmatpush3.bf16.msra.mxu1 %v3380_v18  ;;  %v3386_v24 = vld [vmem:[%s3969_s20 + $0x18] sm:$0xff]   ;;  %v3388_v26 = vld [vmem:[%s3969_s20 + $0x20] sm:$0xff]   ;;  %v3389_v27 = vld [vmem:[%s3973_s21 + $0x28] sm:$0xff]   ;;  %p3586_p8 = scmp.ne.s32.totalorder %s4921_s22, %s3585_s12  ;;  %s3731_s15 = smov [#allocation10]  }
  0x8e   : > { %3155 = vmatprep.subr.bf16.mxu0 %v3381_v19  ;;  %3187 = vmatprep.subr.bf16.mxu1 %v3382_v20  ;;  %v3390_v28 = vld [vmem:[%s3969_s20 + $0x28] sm:$0xff]   ;;  %v3395_v29 = vld [vmem:[#allocation6] sm:$0xff]   ;;  %v3391_v31 = vld [vmem:[%s3973_s21 + $0x30] sm:$0xff]   ;;  %s3589_s30 = sshll.u32 %s3731_s15, 4  ;;  %s3590_s30 = int_to_ptr.vmem [resolvable:$false] %s3589_s30 }
  0x8f   : > { %v3396_v30 = vld [vmem:[#allocation8] sm:$0xff]   ;;  %3169 = vmatprep.mubr.bf16.mxu0 %v3395_v29  ;;  %v3392_v32 = vld [vmem:[%s3969_s20 + $0x30] sm:$0xff]   ;;  %v3393_v33 = vld [vmem:[%s3973_s21 + $0x38] sm:$0xff]   ;;  %p3587_p10 = pnand %p3586_p8, %p5188_p9  ;;  %s3591_s14 = scalar_lea.vmem %s3590_s30, 2048 }
  0x90   : > { %3201 = vmatprep.mubr.bf16.mxu1 %v3396_v30  ;;  %v3394_v34 = vld [vmem:[%s3969_s20 + $0x38] sm:$0xff]   ;;  %v3397_v35 = vld [vmem:[#allocation6 + $0x8] sm:$0xff]   ;;  %v3399_v37 = vld [vmem:[#allocation6 + $0x10] sm:$0xff]   ;;  %s4918_s20 = scalar_lea.hbm %s5051_s6, %s3009_s10  ;;  %p3592_p3 = scmp.lt.s32.totalorder %s4921_s22, %s3590_s30 }
  0x91   : > { %3156 = vmatpush3.bf16.msra.mxu0 %v3381_v19  ;;  %3188 = vmatpush3.bf16.msra.mxu1 %v3382_v20  ;;  %v3398_v36 = vld [vmem:[#allocation8 + $0x8] sm:$0xff]   ;;  %v3400_v38 = vld [vmem:[#allocation8 + $0x10] sm:$0xff]   ;;  %v4004_v39 = vld [vmem:[%s5049_s4] sm:$0xff]  ;;  %p3588_p1 = pneg %p3587_p10  ;;  %p3593_p2 = scmp.lt.s32.totalorder %s3591_s14, %s3585_s12 }
  0x92   : > { %3157 = vmatprep.subr.bf16.mxu0 %v3383_v21  ;;  %3189 = vmatprep.subr.bf16.mxu1 %v3384_v22  ;;  %v4009_v40 = vld [vmem:[%s5049_s4 + $0x10] sm:$0xff]  ;;  %v4016_v41 = vld [vmem:[%s5049_s4 + $0x8] sm:$0xff]  ;;  %v4021_v42 = vld [vmem:[%s5049_s4 + $0x18] sm:$0xff] }
  0x93   : > { %530 = vperm.xlu0 %3350, %v4004_v39   ;;  %540 = vperm.xlu1 %3351, %v4009_v40   ;;  %v3401_v43 = vld [vmem:[#allocation6 + $0x18] sm:$0xff]   ;;  %v4028_v44 = vld [vmem:[%s5049_s4 + $0x20] sm:$0xff]  ;;  %v4033_v45 = vld [vmem:[%s5049_s4 + $0x28] sm:$0xff]  ;;  %p3594_p6 = por %p3593_p2, %p3592_p3 }
  0x94   : > { %v3402_v46 = vld [vmem:[#allocation8 + $0x18] sm:$0xff]   ;;  %v3403_v47 = vld [vmem:[#allocation6 + $0x20] sm:$0xff]   ;;  %v4040_v49 = vld [vmem:[%s5049_s4 + $0x30] sm:$0xff] }
  0x95   : > { %3158 = vmatpush3.bf16.msra.mxu0 %v3383_v21  ;;  %3190 = vmatpush3.bf16.msra.mxu1 %v3384_v22  ;;  %v3404_v48 = vld [vmem:[#allocation8 + $0x20] sm:$0xff]   ;;  %v4045_v50 = vld [vmem:[%s5049_s4 + $0x38] sm:$0xff]  ;;  %v3405_v51 = vld [vmem:[#allocation6 + $0x28] sm:$0xff]   ;;  %p3595_p12 = pnand %p3594_p6, %p3588_p1 }
  0x96   : > { %3159 = vmatprep.subr.bf16.mxu0 %v3385_v23  ;;  %3191 = vmatprep.subr.bf16.mxu1 %v3386_v24  ;;  %v4052_v52 = vld [vmem:[%s5049_s4 + $0x40] sm:$0xff]  ;;  %v4057_v53 = vld [vmem:[%s5049_s4 + $0x48] sm:$0xff]  ;;  %v3407_v55 = vld [vmem:[#allocation6 + $0x30] sm:$0xff]  }
  0x97   : > { %535 = vperm.xlu0 %3350, %v4016_v41   ;;  %545 = vperm.xlu1 %3351, %v4021_v42   ;;  %v3406_v54 = vld [vmem:[#allocation8 + $0x28] sm:$0xff]   ;;  %v3408_v56 = vld [vmem:[#allocation8 + $0x30] sm:$0xff]   ;;  %v4069_v58 = vld [vmem:[%s5049_s4 + $0x58] sm:$0xff] }
  0x98   : > { %v4064_v57 = vld [vmem:[%s5049_s4 + $0x50] sm:$0xff]  ;;  %v3409_v59 = vld [vmem:[#allocation6 + $0x38] sm:$0xff]   ;;  %v4076_v60 = vld [vmem:[%s5049_s4 + $0x60] sm:$0xff] }
  0x99   : > { %3160 = vmatpush3.bf16.msra.mxu0 %v3385_v23  ;;  %3192 = vmatpush3.bf16.msra.mxu1 %v3386_v24  ;;  %v4081_v61 = vld [vmem:[%s5049_s4 + $0x68] sm:$0xff]  ;;  %v3410_v62 = vld [vmem:[#allocation8 + $0x38] sm:$0xff]   ;;  %v4088_v63 = vld [vmem:[%s5049_s4 + $0x70] sm:$0xff] }
  0x9a   : > { %3161 = vmatprep.subr.bf16.mxu0 %v3387_v25  ;;  %3193 = vmatprep.subr.bf16.mxu1 %v3388_v26  ;;  %v4093_v0 = vld [vmem:[%s5049_s4 + $0x78] sm:$0xff] }
  0x9b   : > { %550 = vperm.xlu0 %3350, %v4028_v44   ;;  %555 = vperm.xlu1 %3351, %v4033_v45  }
  0x9d   : > { %3162 = vmatpush3.bf16.msra.mxu0 %v3387_v25  ;;  %3194 = vmatpush3.bf16.msra.mxu1 %v3388_v26  ;;  %v5066_v26 = vmov 2  }
  0x9e   : > { %3163 = vmatprep.subr.bf16.mxu0 %v3389_v27  ;;  %3195 = vmatprep.subr.bf16.mxu1 %v3390_v28 }
  0x9f   : > { %560 = vperm.xlu0 %3350, %v4040_v49   ;;  %565 = vperm.xlu1 %3351, %v4045_v50  }
  0xa1   : > { %3164 = vmatpush3.bf16.msra.mxu0 %v3389_v27  ;;  %3196 = vmatpush3.bf16.msra.mxu1 %v3390_v28  ;;  %v5064_v27 = vmov 1  }
  0xa2   : > { %3165 = vmatprep.subr.bf16.mxu0 %v3391_v31  ;;  %3197 = vmatprep.subr.bf16.mxu1 %v3392_v32 }
  0xa3   : > { %570 = vperm.xlu0 %3350, %v4052_v52   ;;  %575 = vperm.xlu1 %3351, %v4057_v53  }
  0xa5   : > { %3166 = vmatpush3.bf16.msra.mxu0 %v3391_v31  ;;  %3198 = vmatpush3.bf16.msra.mxu1 %v3392_v32 }
  0xa6   : > { %3167 = vmatprep.subr.bf16.mxu0 %v3393_v33  ;;  %3199 = vmatprep.subr.bf16.mxu1 %v3394_v34 }
  0xa7   : > { %580 = vperm.xlu0 %3350, %v4064_v57   ;;  %585 = vperm.xlu1 %3351, %v4069_v58  }
  0xa9   : > { %3168 = vmatpush3.bf16.msra.mxu0 %v3393_v33  ;;  %3200 = vmatpush3.bf16.msra.mxu1 %v3394_v34 }
  0xaa   : > { %3249 = vmatprep.subr.bf16.mxu1 %v3379_v17 }
  0xab   : > { %590 = vperm.xlu0 %3350, %v4076_v60   ;;  %595 = vperm.xlu1 %3351, %v4081_v61  }
  0xac   : > { %3170 = vmatmul.mubr.bf16.vlgmr.msra.gmra.mrb[0].mxu0 %v3397_v35  ;;  %3202 = vmatmul.mubr.bf16.vlgmr.msra.gmra.mrb[0].mxu1 %v3398_v36 }
  0xad   : > { %3173 = vmatprep.mubr.bf16.mxu0 %v3399_v37  ;;  %3205 = vmatprep.mubr.bf16.mxu1 %v3400_v38 }
  0xaf   : > { %600 = vperm.xlu0 %3350, %v4088_v63   ;;  %605 = vperm.xlu1 %3351, %v4093_v0  }
  0xb3   : > { %3352 = vset.pattern.permute.xlu0 %v3726_v1  ;;  %3353 = vset.pattern.permute.xlu1 %v3726_v1 }
  0xb4   : > { %3174 = vmatmul.mubr.bf16.gmra.mrb[4].mxu0 %v3401_v43  ;;  %3206 = vmatmul.mubr.bf16.gmra.mrb[4].mxu1 %v3402_v46 }
  0xb5   : > { %3177 = vmatprep.mubr.bf16.mxu0 %v3403_v47  ;;  %3209 = vmatprep.mubr.bf16.mxu1 %v3404_v48 }
  0xb6   : > { %818 = vperm.xlu0 %3352, %v4004_v39   ;;  %822 = vperm.xlu1 %3353, %v4016_v41  }
  0xba   : > { %830 = vperm.xlu0 %3352, %v4021_v42   ;;  %826 = vperm.xlu1 %3353, %v4009_v40  }
  0xbc   : > { %3178 = vmatmul.mubr.bf16.gmra.mrb[8].mxu0 %v3405_v51  ;;  %3210 = vmatmul.mubr.bf16.gmra.mrb[8].mxu1 %v3406_v54 }
  0xbd   : > { %3181 = vmatprep.mubr.bf16.mxu0 %v3407_v55  ;;  %3213 = vmatprep.mubr.bf16.mxu1 %v3408_v56 }
  0xbe   : > { %838 = vperm.xlu0 %3352, %v4033_v45   ;;  %834 = vperm.xlu1 %3353, %v4028_v44  }
  0xc2   : > { %846 = vperm.xlu0 %3352, %v4045_v50   ;;  %842 = vperm.xlu1 %3353, %v4040_v49  }
  0xc4   : > { %3182 = vmatmul.mubr.bf16.gmra.mrb[12].mxu0 %v3409_v59  ;;  %3214 = vmatmul.mubr.bf16.gmra.mrb[12].mxu1 %v3410_v62 }
  0xc5   : > { %2434 = vmatprep.mubr.bf16.mxu1 %v5062_v16 }
  0xc6   : > { %854 = vperm.xlu0 %3352, %v4057_v53   ;;  %850 = vperm.xlu1 %3353, %v4052_v52  }
  0xca   : > { %862 = vperm.xlu0 %3352, %v4069_v58   ;;  %858 = vperm.xlu1 %3353, %v4064_v57  }
  0xce   : > { %870 = vperm.xlu0 %3352, %v4081_v61   ;;  %866 = vperm.xlu1 %3353, %v4076_v60  }
  0xd2   : > { %878 = vperm.xlu0 %3352, %v4093_v0   ;;  %874 = vperm.xlu1 %3353, %v4088_v63  }
  0xd6   : > { %3354 = vset.pattern.permute.xlu1 %v5066_v26  ;;  %3356 = vset.pattern.permute.xlu0 %v5064_v27 }
 0x112   : > { %v541_v2 = vpop.permute.xlu1 %540  ;;  %v531_v3 = vpop.permute.xlu0 %530 }
 0x116   : > { %v546_v4 = vpop.permute.xlu1 %545  ;;  %v4114_v5 = vpop.permute.xlu0 %535 }
 0x11a   : > { %v4116_v6 = vpop.permute.xlu1 %555  ;;  %v4118_v7 = vpop.permute.xlu0 %550 }
 0x11e   : > { %v4120_v8 = vpop.permute.xlu1 %565  ;;  %v4122_v9 = vpop.permute.xlu0 %560 }
 0x122   : > { %v4124_v10 = vpop.permute.xlu1 %575  ;;  %v4126_v11 = vpop.permute.xlu0 %570 }
 0x126   : > { %v4128_v12 = vpop.permute.xlu1 %585  ;;  %v4130_v13 = vpop.permute.xlu0 %580 }
 0x12a   : > { %v4132_v14 = vpop.permute.xlu1 %595  ;;  %v4134_v15 = vpop.permute.xlu0 %590 }
 0x12e   : > { %v4136_v17 = vpop.permute.xlu1 %605  ;;  %v4138_v18 = vpop.permute.xlu0 %600 }
 0x135   : > { %v823_v19 = vpop.permute.xlu1 %822  ;;  %v819_v20 = vpop.permute.xlu0 %818 }
 0x139   : > { %v827_v21 = vpop.permute.xlu1 %826  ;;  %v831_v36 = vpop.permute.xlu0 %830 }
 0x13d   : > { %v835_v26 = vpop.permute.xlu1 %834 }
 0x17f   : > { %v3171_v22 = vpop.f32.mrb[0].mxu0  ;;  %v3203_v25 = vpop.f32.mrb[0].mxu1 }
 0x180   : > { %v4140_v23 = vadd.f32 %v3171_v22, %v541_v2  ;;  %v738_v24 = vpop.f32.mrb[1].mxu0  ;;  %v1011_v30 = vpop.f32.mrb[1].mxu1  ;;  %v4146_v32 = vadd.f32 %v3203_v25, %v827_v21 }
 0x181   : > { %v4144_v28 = vadd.f32 %v738_v24, %v531_v3  ;;  %v3172_v29 = vpop.f32.mrb[2].mxu0  ;;  %v3204_v33 = vpop.f32.mrb[2].mxu1  ;;  %v4154_v38 = vadd.f32 %v1011_v30, %v819_v20 }
 0x182   : > { %5105 = vst [vmem:[#allocation20_spill] sm:$0xff] %v4140_v23  ;;  %v741_v31 = vpop.f32.mrb[3].mxu0  ;;  %5107 = vst [vmem:[#allocation22_spill] sm:$0xff] %v4146_v32  ;;  %1078 = vadd.xlane.f32.xlu0 %v4140_v23  ;;  %v1014_v34 = vpop.f32.mrb[3].mxu1  ;;  %v4150_v35 = vadd.f32 %v3172_v29, %v546_v4  ;;  %v4156_v47 = vadd.f32 %v3204_v33, %v831_v36  ;;  %v1164_v59 = vmul.f32 %v4140_v23, %v4140_v23 }
 0x183   : > { %5106 = vst [vmem:[#allocation21_spill] sm:$0xff] %v4144_v28  ;;  %1074 = vadd.xlane.f32.xlu1 %v4144_v28  ;;  %5109 = vst [vmem:[#allocation24_spill] sm:$0xff] %v4154_v38  ;;  %v4162_v62 = vadd.f32 %v1014_v34, %v823_v19  ;;  %v1644_v4 = vmul.f32 %v4146_v32, %v4146_v32  ;;  %v4186_v29 = vadd.f32 %v741_v31, %v4114_v5 }
 0x184   : > { %5108 = vst [vmem:[#allocation23_spill] sm:$0xff] %v4150_v35  ;;  %5110 = vst [vmem:[#allocation25_spill] sm:$0xff] %v4156_v47  ;;  %v1165_v19 = vmul.f32 %v4150_v35, %v4150_v35  ;;  %v1645_v30 = vmul.f32 %v4156_v47, %v4156_v47  ;;  %v1642_v27 = vmul.f32 %v4154_v38, %v4154_v38 }
 0x185   : > { %5111 = vst [vmem:[#allocation26_spill] sm:$0xff] %v4162_v62  ;;  %5112 = vst [vmem:[#allocation27_spill] sm:$0xff] %v4186_v29  ;;  %v1163_v5 = vmul.f32 %v4186_v29, %v4186_v29 }
 0x186   : > { %1558 = vadd.xlane.f32.xlu0 %v4146_v32  ;;  %v839_v32 = vpop.permute.xlu0 %838 }
 0x187   : > { %v3175_v37 = vpop.f32.mrb[4].mxu0  ;;  %1080 = vadd.xlane.f32.xlu1 %v4150_v35  ;;  %v3207_v43 = vpop.f32.mrb[4].mxu1 }
 0x188   : > { %v754_v46 = vpop.f32.mrb[5].mxu0  ;;  %v1027_v48 = vpop.f32.mrb[5].mxu1  ;;  %v4216_v35 = vadd.f32 %v3175_v37, %v4122_v9 }
 0x189   : > { %v3176_v51 = vpop.f32.mrb[6].mxu0  ;;  %v3208_v54 = vpop.f32.mrb[6].mxu1  ;;  %v4230_v9 = vadd.f32 %v754_v46, %v4118_v7 }
 0x18a   : > { %v757_v55 = vpop.f32.mrb[7].mxu0  ;;  %1554 = vadd.xlane.f32.xlu0 %v4154_v38  ;;  %v1030_v56 = vpop.f32.mrb[7].mxu1  ;;  %v4219_v23 = vadd.f32 %v3176_v51, %v4120_v8 }
 0x18b   : > { %1560 = vadd.xlane.f32.xlu1 %v4156_v47  ;;  %v1643_v47 = vmul.f32 %v4162_v62, %v4162_v62  ;;  %v4233_v8 = vadd.f32 %v757_v55, %v4116_v6  ;;  %v4239_v37 = vadd.f32 %v1030_v56, %v839_v32  ;;  %v1166_v32 = vmul.f32 %v4230_v9, %v4230_v9 }
 0x18c   : > { %v1169_v7 = vmul.f32 %v4219_v23, %v4219_v23 }
 0x18d   : > { %v1167_v46 = vmul.f32 %v4233_v8, %v4233_v8  ;;  %v1647_v51 = vmul.f32 %v4239_v37, %v4239_v37 }
 0x18e   : > { %1182 = vadd.xlane.f32.xlu0 %v1164_v59  ;;  %v1162_v59 = vmul.f32 %v4144_v28, %v4144_v28 }
 0x18f   : > { %v4164_v1 = vpop.f32.mrb[8].mxu0  ;;  %1556 = vadd.xlane.f32.xlu1 %v4162_v62  ;;  %v4167_v2 = vpop.f32.mrb[8].mxu1 }
 0x190   : > { %v4169_v3 = vpop.f32.mrb[9].mxu0  ;;  %v4173_v20 = vpop.f32.mrb[9].mxu1  ;;  %v4261_v55 = vadd.f32 %v4164_v1, %v4130_v13 }
 0x191   : > { %v4175_v21 = vpop.f32.mrb[10].mxu0  ;;  %v4179_v22 = vpop.f32.mrb[10].mxu1 }
 0x192   : > { %v4181_v24 = vpop.f32.mrb[11].mxu0  ;;  %1662 = vadd.xlane.f32.xlu0 %v1644_v4  ;;  %v4183_v25 = vpop.f32.mrb[11].mxu1 }
 0x193   : > { %1184 = vadd.xlane.f32.xlu1 %v1165_v19 }
 0x196   : > { %1076 = vadd.xlane.f32.xlu0 %v4186_v29 }
 0x197   : > { %v4191_v33 = vpop.f32.mrb[12].mxu0  ;;  %1664 = vadd.xlane.f32.xlu1 %v1645_v30  ;;  %v4193_v34 = vpop.f32.mrb[12].mxu1 }
 0x198   : > { %v4195_v36 = vpop.f32.mrb[13].mxu0  ;;  %v4199_v4 = vpop.f32.mrb[13].mxu1 }
 0x199   : > { %v4201_v19 = vpop.f32.mrb[14].mxu0  ;;  %v4205_v31 = vpop.f32.mrb[14].mxu1 }
 0x19a   : > { %v4207_v16 = vpop.f32.mrb[15].mxu0  ;;  %1178 = vadd.xlane.f32.xlu0 %v1162_v59  ;;  %v4209_v30 = vpop.f32.mrb[15].mxu1 }
 0x19b   : > { %1180 = vadd.xlane.f32.xlu1 %v1163_v5  ;;  %v843_v59 = vpop.permute.xlu1 %842  ;;  %v847_v5 = vpop.permute.xlu0 %846 }
 0x19c   : > { %v4223_v38 = vadd.f32 %v3207_v43, %v843_v59  ;;  %v4225_v29 = vadd.f32 %v3208_v54, %v847_v5  ;;  %v1168_v43 = vmul.f32 %v4216_v35, %v4216_v35  ;;  %v4270_v59 = vadd.f32 %v4169_v3, %v4126_v11 }
 0x19d   : > { %v4274_v5 = vadd.f32 %v4175_v21, %v4128_v12  ;;  %v1172_v11 = vmul.f32 %v4261_v55, %v4261_v55  ;;  %v4288_v12 = vadd.f32 %v4181_v24, %v4124_v10 }
 0x19e   : > { %1658 = vadd.xlane.f32.xlu0 %v1642_v27  ;;  %5113 = vst [vmem:[#allocation28_spill] sm:$0xff] %v4223_v38  ;;  %5114 = vst [vmem:[#allocation29_spill] sm:$0xff] %v4225_v29  ;;  %v4237_v27 = vadd.f32 %v1027_v48, %v835_v26  ;;  %v1648_v6 = vmul.f32 %v4223_v38, %v4223_v38  ;;  %v1649_v26 = vmul.f32 %v4225_v29, %v4225_v29 }
 0x19f   : > { %1660 = vadd.xlane.f32.xlu1 %v1643_v47  ;;  %v851_v47 = vpop.permute.xlu1 %850  ;;  %5116 = vst [vmem:[#allocation31_spill] sm:$0xff] %v4270_v59  ;;  %v855_v1 = vpop.permute.xlu0 %854  ;;  %5117 = vst [vmem:[#allocation32_spill] sm:$0xff] %v4288_v12  ;;  %v1173_v10 = vmul.f32 %v4274_v5, %v4274_v5 }
 0x1a0   : > { %v1646_v48 = vmul.f32 %v4237_v27, %v4237_v27  ;;  %v4279_v13 = vadd.f32 %v4173_v20, %v851_v47  ;;  %v4295_v21 = vadd.f32 %v4183_v25, %v855_v1  ;;  %v4309_v25 = vadd.f32 %v4191_v33, %v4138_v18 }
 0x1a1   : > { %v4325_v33 = vadd.f32 %v4201_v19, %v4136_v17 }
 0x1a2   : > { %1086 = vadd.xlane.f32.xlu0 %v4216_v35  ;;  %v1650_v24 = vmul.f32 %v4279_v13, %v4279_v13  ;;  %v1176_v18 = vmul.f32 %v4309_v25, %v4309_v25 }
 0x1a3   : > { %1088 = vadd.xlane.f32.xlu1 %v4219_v23  ;;  %v859_v54 = vpop.permute.xlu1 %858  ;;  %v863_v3 = vpop.permute.xlu0 %862  ;;  %v1177_v17 = vmul.f32 %v4325_v33, %v4325_v33 }
 0x1a4   : > { %v4264_v56 = vadd.f32 %v4167_v2, %v859_v54  ;;  %v4292_v20 = vadd.f32 %v4179_v22, %v863_v3 }
 0x1a6   : > { %1566 = vadd.xlane.f32.xlu0 %v4223_v38  ;;  %5115 = vst [vmem:[#allocation30_spill] sm:$0xff] %v4264_v56  ;;  %v1652_v2 = vmul.f32 %v4264_v56, %v4264_v56  ;;  %5118 = vst [vmem:[#allocation33_spill] sm:$0xff] %v4292_v20  ;;  %v1653_v22 = vmul.f32 %v4292_v20, %v4292_v20 }
 0x1a7   : > { %1568 = vadd.xlane.f32.xlu1 %v4225_v29  ;;  %v867_v47 = vpop.permute.xlu1 %866 }
 0x1aa   : > { %1082 = vadd.xlane.f32.xlu0 %v4230_v9 }
 0x1ab   : > { %1084 = vadd.xlane.f32.xlu1 %v4233_v8  ;;  %v875_v1 = vpop.permute.xlu1 %874 }
 0x1ae   : > { %1562 = vadd.xlane.f32.xlu0 %v4237_v27 }
 0x1af   : > { %1564 = vadd.xlane.f32.xlu1 %v4239_v37 }
 0x1b2   : > { %1190 = vadd.xlane.f32.xlu0 %v1168_v43  ;;  %v1170_v43 = vmul.f32 %v4270_v59, %v4270_v59 }
 0x1b3   : > { %1192 = vadd.xlane.f32.xlu1 %v1169_v7  ;;  %v1171_v7 = vmul.f32 %v4288_v12, %v4288_v12 }
 0x1b6   : > { %1670 = vadd.xlane.f32.xlu0 %v1648_v6  ;;  %v4316_v6 = vadd.f32 %v4195_v36, %v4134_v15  ;;  %v4332_v36 = vadd.f32 %v4207_v16, %v4132_v14 }
 0x1b7   : > { %1672 = vadd.xlane.f32.xlu1 %v1649_v26  ;;  %v1651_v26 = vmul.f32 %v4295_v21, %v4295_v21 }
 0x1b8   : > { %5119 = vst [vmem:[#allocation34_spill] sm:$0xff] %v4316_v6  ;;  %v1174_v15 = vmul.f32 %v4316_v6, %v4316_v6  ;;  %5120 = vst [vmem:[#allocation35_spill] sm:$0xff] %v4332_v36  ;;  %v1175_v16 = vmul.f32 %v4332_v36, %v4332_v36 }
 0x1ba   : > { %1186 = vadd.xlane.f32.xlu0 %v1166_v32  ;;  %v871_v32 = vpop.permute.xlu0 %870 }
 0x1bb   : > { %1188 = vadd.xlane.f32.xlu1 %v1167_v46  ;;  %v4336_v46 = vadd.f32 %v4209_v30, %v871_v32  ;;  %v4349_v30 = vadd.f32 %v4199_v4, %v867_v47 }
 0x1bd   : > { %v1655_v19 = vmul.f32 %v4336_v46, %v4336_v46  ;;  %v1654_v54 = vmul.f32 %v4349_v30, %v4349_v30 }
 0x1be   : > { %1666 = vadd.xlane.f32.xlu0 %v1646_v48  ;;  %v879_v14 = vpop.permute.xlu0 %878 }
 0x1bf   : > { %1668 = vadd.xlane.f32.xlu1 %v1647_v51  ;;  %v4346_v48 = vadd.f32 %v4205_v31, %v879_v14  ;;  %v5130_v14 = vmov 1  }
 0x1c1   : > { %5121 = vst [vmem:[#allocation36_spill] sm:$0xff] %v4346_v48  ;;  %v1657_v51 = vmul.f32 %v4346_v48, %v4346_v48 }
 0x1c2   : > { %1094 = vadd.xlane.f32.xlu0 %v4261_v55 }
 0x1c3   : > { %1574 = vadd.xlane.f32.xlu1 %v4264_v56 }
 0x1c6   : > { %1090 = vadd.xlane.f32.xlu0 %v4270_v59 }
 0x1c7   : > { %1096 = vadd.xlane.f32.xlu1 %v4274_v5 }
 0x1ca   : > { %1570 = vadd.xlane.f32.xlu0 %v4279_v13 }
 0x1cb   : > { %1678 = vadd.xlane.f32.xlu1 %v1652_v2  ;;  %v4358_v2 = vadd.f32 %v4193_v34, %v875_v1 }
 0x1cd   : > { %5122 = vst [vmem:[#allocation37_spill] sm:$0xff] %v4358_v2 }
 0x1ce   : > { %1198 = vadd.xlane.f32.xlu0 %v1172_v11 }
 0x1cf   : > { %1092 = vadd.xlane.f32.xlu1 %v4288_v12 }
 0x1d2   : > { %1576 = vadd.xlane.f32.xlu0 %v4292_v20 }
 0x1d3   : > { %1572 = vadd.xlane.f32.xlu1 %v4295_v21 }
 0x1d6   : > { %1194 = vadd.xlane.f32.xlu0 %v1170_v43 }
 0x1d7   : > { %1200 = vadd.xlane.f32.xlu1 %v1173_v10 }
 0x1da   : > { %1674 = vadd.xlane.f32.xlu0 %v1650_v24 }
 0x1db   : > { %1680 = vadd.xlane.f32.xlu1 %v1653_v22 }
 0x1de   : > { %1102 = vadd.xlane.f32.xlu0 %v4309_v25 }
 0x1df   : > { %1196 = vadd.xlane.f32.xlu1 %v1171_v7 }
 0x1e2   : > { %1098 = vadd.xlane.f32.xlu0 %v4316_v6 }
 0x1e3   : > { %1676 = vadd.xlane.f32.xlu1 %v1651_v26 }
 0x1e6   : > { %1206 = vadd.xlane.f32.xlu0 %v1176_v18 }
 0x1e7   : > { %1104 = vadd.xlane.f32.xlu1 %v4325_v33 }
 0x1ea   : > { %1202 = vadd.xlane.f32.xlu0 %v1174_v15 }
 0x1eb   : > { %1100 = vadd.xlane.f32.xlu1 %v4332_v36 }
 0x1ee   : > { %1580 = vadd.xlane.f32.xlu0 %v4336_v46 }
 0x1ef   : > { %1208 = vadd.xlane.f32.xlu1 %v1177_v17  ;;  %v5127_v17 = vmov 2  }
 0x1f2   : > { %1684 = vadd.xlane.f32.xlu0 %v1655_v19 }
 0x1f3   : > { %1204 = vadd.xlane.f32.xlu1 %v1175_v16 }
 0x1f6   : > { %1584 = vadd.xlane.f32.xlu0 %v4346_v48 }
 0x1f7   : > { %1578 = vadd.xlane.f32.xlu1 %v4349_v30 }
 0x1fa   : > { %1688 = vadd.xlane.f32.xlu0 %v1657_v51 }
 0x1fb   : > { %1682 = vadd.xlane.f32.xlu1 %v1654_v54 }
 0x1ff   : > { %1582 = vadd.xlane.f32.xlu1 %v4358_v2 }
 0x20f   : > { %v4361_v4 = vpop.xlane.xlu0 %1078 }
 0x210   : > { %v4363_v31 = vpop.xlane.xlu1 %1074  ;;  %1431 = vperm.xlu1 %3354, %v4016_v41   ;;  %1347 = vperm.xlu0 %3356, %v4004_v39  }
 0x213   : > { %v4367_v11 = vpop.xlane.xlu0 %1558 }
 0x214   : > { %5123 = vst [vmem:[#allocation38_spill] sm:$0xff] %v4367_v11  ;;  %v4369_v3 = vpop.xlane.xlu1 %1080  ;;  %1443 = vperm.xlu1 %3354, %v4028_v44   ;;  %1363 = vperm.xlu0 %3356, %v4028_v44  }
 0x217   : > { %v4373_v34 = vpop.xlane.xlu0 %1554 }
 0x218   : > { %v4375_v43 = vpop.xlane.xlu1 %1560  ;;  %1447 = vperm.xlu1 %3354, %v4033_v45   ;;  %1371 = vperm.xlu0 %3356, %v4040_v49  }
 0x219   : > { %5124 = vst [vmem:[#allocation39_spill] sm:$0xff] %v4375_v43 }
 0x21b   : > { %v4379_v10 = vpop.xlane.xlu0 %1182 }
 0x21c   : > { %v4381_v24 = vpop.xlane.xlu1 %1556  ;;  %1451 = vperm.xlu1 %3354, %v4040_v49   ;;  %1383 = vperm.xlu0 %3356, %v4057_v53  }
 0x21f   : > { %v4385_v22 = vpop.xlane.xlu0 %1662 }
 0x220   : > { %5125 = vst [vmem:[#allocation40_spill] sm:$0xff] %v4385_v22  ;;  %v4387_v7 = vpop.xlane.xlu1 %1184  ;;  %1455 = vperm.xlu1 %3354, %v4045_v50   ;;  %1391 = vperm.xlu0 %3356, %v4069_v58  }
 0x223   : > { %v4391_v26 = vpop.xlane.xlu0 %1076 }
 0x224   : > { %v4393_v18 = vpop.xlane.xlu1 %1664  ;;  %1459 = vperm.xlu1 %3354, %v4052_v52   ;;  %1395 = vperm.xlu0 %3356, %v4076_v60  }
 0x225   : > { %5126 = vst [vmem:[#allocation41_spill] sm:$0xff] %v4393_v18 }
 0x227   : > { %v4397_v15 = vpop.xlane.xlu0 %1178 }
 0x228   : > { %v4399_v32 = vpop.xlane.xlu1 %1180  ;;  %1463 = vperm.xlu1 %3354, %v4057_v53   ;;  %3357 = vset.pattern.permute.xlu0 %v5127_v17 }
 0x229   : > { %1427 = vperm.xlu0 %3357, %v4004_v39  }
 0x22b   : > { %v4404_v19 = vpop.xlane.xlu0 %1658 }
 0x22c   : > { %5128 = vst [vmem:[#allocation42_spill] sm:$0xff] %v4404_v19  ;;  %v4406_v16 = vpop.xlane.xlu1 %1660  ;;  %3355 = vset.pattern.permute.xlu1 %v5130_v14 }
 0x22d   : > { %5129 = vst [vmem:[#allocation43_spill] sm:$0xff] %v4406_v16  ;;  %1435 = vperm.xlu0 %3357, %v4009_v40  }
 0x22f   : > { %v1087_v47 = vpop.xlane.xlu0 %1086 }
 0x230   : > { %v1089_v51 = vpop.xlane.xlu1 %1088 }
 0x231   : > { %v1127_v54 = vadd.f32 %v1089_v51, %v1087_v47  ;;  %1439 = vperm.xlu0 %3357, %v4021_v42  }
 0x233   : > { %v1128_v1 = vrot.slane %v1127_v54, 4  ;;  %v4411_v20 = vpop.xlane.xlu0 %1566 }
 0x234   : > { %5131 = vst [vmem:[#allocation44_spill] sm:$0xff] %v4411_v20  ;;  %v4413_v56 = vpop.xlane.xlu1 %1568 }
 0x235   : > { %5132 = vst [vmem:[#allocation45_spill] sm:$0xff] %v4413_v56  ;;  %1471 = vperm.xlu0 %3357, %v4069_v58   ;;  %v1129_v29 = vadd.f32 %v1128_v1, %v1127_v54  ;;  %v5085_v58 = vmov 4  }
 0x237   : > { %v1083_v38 = vpop.xlane.xlu0 %1082  ;;  %v1130_v6 = vrot.slane %v1129_v29, 2 }
 0x238   : > { %v1085_v62 = vpop.xlane.xlu1 %1084 }
 0x239   : > { %v1120_v36 = vadd.f32 %v1085_v62, %v1083_v38  ;;  %1475 = vperm.xlu0 %3357, %v4076_v60   ;;  %v1131_v47 = vadd.f32 %v1130_v6, %v1129_v29 }
 0x23b   : > { %v1121_v48 = vrot.slane %v1120_v36, 4  ;;  %v1563_v59 = vpop.xlane.xlu0 %1562  ;;  %v1132_v54 = vrot.slane %v1131_v47, 1 }
 0x23c   : > { %v1565_v12 = vpop.xlane.xlu1 %1564 }
 0x23d   : > { %1483 = vperm.xlu0 %3357, %v4088_v63   ;;  %v1122_v51 = vadd.f32 %v1121_v48, %v1120_v36  ;;  %v1600_v18 = vadd.f32 %v1565_v12, %v1563_v59  ;;  %v1133_v6 = vadd.f32 %v1132_v54, %v1131_v47 }
 0x23f   : > { %v1191_v20 = vpop.xlane.xlu0 %1190  ;;  %v1601_v22 = vrot.slane %v1600_v18, 4  ;;  %v1123_v38 = vrot.slane %v1122_v51, 2  ;;  %v4425_v16 = vmul.f32 0.00048828125, %v1133_v6 }
 0x240   : > { %v1193_v56 = vpop.xlane.xlu1 %1192 }
 0x241   : > { %v1231_v43 = vadd.f32 %v1193_v56, %v1191_v20  ;;  %3361 = vset.pattern.permute.xlu0 %v5085_v58  ;;  %v1602_v62 = vadd.f32 %v1601_v22, %v1600_v18  ;;  %v1124_v59 = vadd.f32 %v1123_v38, %v1122_v51  ;;  %v1656_v22 = vmul.f32 %v4358_v2, %v4358_v2 }
 0x242   : > { %1827 = vperm.xlu0 %3361, %v4004_v39  }
 0x243   : > { %v1232_v1 = vrot.slane %v1231_v43, 4  ;;  %v4420_v11 = vpop.xlane.xlu0 %1670  ;;  %v1603_v12 = vrot.slane %v1602_v62, 2  ;;  %v1125_v39 = vrot.slane %v1124_v59, 1 }
 0x244   : > { %5133 = vst [vmem:[#allocation46_spill] sm:$0xff] %v4420_v11  ;;  %v4422_v28 = vpop.xlane.xlu1 %1672 }
 0x245   : > { %5134 = vst [vmem:[#allocation47_spill] sm:$0xff] %v4422_v28  ;;  %v1233_v29 = vadd.f32 %v1232_v1, %v1231_v43  ;;  %v1604_v18 = vadd.f32 %v1603_v12, %v1602_v62  ;;  %v1126_v28 = vadd.f32 %v1125_v39, %v1124_v59 }
 0x246   : > { %1843 = vperm.xlu0 %3361, %v4028_v44  }
 0x247   : > { %v1234_v56 = vrot.slane %v1233_v29, 2  ;;  %v1187_v20 = vpop.xlane.xlu0 %1186  ;;  %v1605_v6 = vrot.slane %v1604_v18, 1 }
 0x248   : > { %v1189_v36 = vpop.xlane.xlu1 %1188 }
 0x249   : > { %v1235_v48 = vadd.f32 %v1234_v56, %v1233_v29  ;;  %v1224_v58 = vadd.f32 %v1189_v36, %v1187_v20  ;;  %v1285_v29 = vmul.f32 %v4425_v16, %v4425_v16  ;;  %v1606_v59 = vadd.f32 %v1605_v6, %v1604_v18 }
 0x24a   : > { %1859 = vperm.xlu0 %3361, %v4052_v52  }
 0x24b   : > { %v1236_v43 = vrot.slane %v1235_v48, 1  ;;  %v1225_v47 = vrot.slane %v1224_v58, 4  ;;  %v1667_v51 = vpop.xlane.xlu0 %1666 }
 0x24c   : > { %v1669_v54 = vpop.xlane.xlu1 %1668  ;;  %1686 = vadd.xlane.f32.xlu1 %v1656_v22  ;;  %v4435_v22 = vmul.f32 0.00048828125, %v1126_v28 }
 0x24d   : > { %v1237_v44 = vadd.f32 %v1236_v43, %v1235_v48  ;;  %v1226_v38 = vadd.f32 %v1225_v47, %v1224_v58  ;;  %v1704_v1 = vadd.f32 %v1669_v54, %v1667_v51  ;;  %v5088_v58 = vmov 5  }
 0x24e   : > { %1875 = vperm.xlu0 %3361, %v4076_v60  }
 0x24f   : > { %v1277_v56 = vmul.f32 0.00048828125, %v1237_v44  ;;  %v1227_v20 = vrot.slane %v1226_v38, 2  ;;  %v1705_v36 = vrot.slane %v1704_v1, 4  ;;  %v1095_v11 = vpop.xlane.xlu0 %1094 }
 0x250   : > { %v4433_v62 = vpop.xlane.xlu1 %1574 }
 0x251   : > { %v1293_v12 = vsub.f32 %v1277_v56, %v1285_v29  ;;  %v1228_v2 = vadd.f32 %v1227_v20, %v1226_v38  ;;  %v1706_v19 = vadd.f32 %v1705_v36, %v1704_v1  ;;  %v4441_v38 = vmul.f32 0.00048828125, %v1606_v59 }
 0x252   : > { %3374 = vset.pattern.permute.xlu0 %v5088_v58  ;;  %v1284_v1 = vmul.f32 %v4435_v22, %v4435_v22 }
 0x253   : > { %v1317_v48 = vadd.f32 1e-05, %v1293_v12  ;;  %v1229_v39 = vrot.slane %v1228_v2, 1  ;;  %v1707_v43 = vrot.slane %v1706_v19, 2  ;;  %v4438_v60 = vpop.xlane.xlu0 %1090  ;;  %1911 = vperm.xlu0 %3374, %v4016_v41  }
 0x254   : > { %v1097_v47 = vpop.xlane.xlu1 %1096 }
 0x255   : > { %3411 = vrsqrt.f32 %v1317_v48  ;;  %v1230_v51 = vadd.f32 %v1229_v39, %v1228_v2  ;;  %v1708_v54 = vadd.f32 %v1707_v43, %v1706_v19  ;;  %v1141_v44 = vadd.f32 %v1097_v47, %v1095_v11 }
 0x256   : > { %v1764_v2 = vmul.f32 %v4441_v38, %v4441_v38  ;;  %v1304_v43 = vsub.f32 %v4216_v35, %v4425_v16  ;;  %v1305_v47 = vsub.f32 %v4219_v23, %v4425_v16 }
 0x257   : > { %v1276_v28 = vmul.f32 0.00048828125, %v1230_v51  ;;  %v1709_v29 = vrot.slane %v1708_v54, 1  ;;  %v1571_v18 = vpop.xlane.xlu0 %1570  ;;  %1915 = vperm.xlu0 %3374, %v4009_v40   ;;  %v1142_v6 = vrot.slane %v1141_v44, 4 }
 0x258   : > { %v4446_v56 = vpop.xlane.xlu1 %1678 }
 0x259   : > { %5135 = vst [vmem:[#allocation48_spill] sm:$0xff] %v4446_v56  ;;  %v1292_v20 = vsub.f32 %v1276_v28, %v1284_v1  ;;  %v1710_v36 = vadd.f32 %v1709_v29, %v1708_v54  ;;  %v1143_v11 = vadd.f32 %v1142_v6, %v1141_v44 }
 0x25b   : > { %v1316_v12 = vadd.f32 1e-05, %v1292_v20  ;;  %v1756_v48 = vmul.f32 0.00048828125, %v1710_v36  ;;  %v1199_v19 = vpop.xlane.xlu0 %1198  ;;  %1927 = vperm.xlu0 %3374, %v4033_v45   ;;  %v1144_v28 = vrot.slane %v1143_v11, 2 }
 0x25c   : > { %v4451_v59 = vpop.xlane.xlu1 %1092 }
 0x25d   : > { %3413 = vrsqrt.f32 %v1316_v12  ;;  %v1772_v39 = vsub.f32 %v1756_v48, %v1764_v2  ;;  %1351 = vperm.xlu1 %3355, %v4016_v41   ;;  %v1145_v35 = vadd.f32 %v1144_v28, %v1143_v11  ;;  %v1303_v12 = vsub.f32 %v4233_v8, %v4435_v22 }
 0x25e   : > { %v1783_v8 = vsub.f32 %v4239_v37, %v4441_v38 }
 0x25f   : > { %v3412_v51 = vpop.eup %3411  ;;  %v1796_v54 = vadd.f32 1e-05, %v1772_v39  ;;  %v4458_v1 = vpop.xlane.xlu0 %1576  ;;  %1931 = vperm.xlu0 %3374, %v4040_v49   ;;  %v1302_v49 = vsub.f32 %v4230_v9, %v4435_v22  ;;  %v1782_v9 = vsub.f32 %v4237_v27, %v4441_v38 }
 0x260   : > { %v1573_v44 = vpop.xlane.xlu1 %1572  ;;  %v4461_v29 = vmul.f32 %v3412_v51, %v1304_v43  ;;  %v4463_v6 = vmul.f32 %v3412_v51, %v1305_v47 }
 0x261   : > { %3415 = vrsqrt.f32 %v1796_v54  ;;  %v1614_v41 = vadd.f32 %v1573_v44, %v1571_v18  ;;  %1355 = vperm.xlu1 %3355, %v4009_v40   ;;  %v1146_v18 = vrot.slane %v1145_v35, 1 }
 0x263   : > { %v1615_v20 = vrot.slane %v1614_v41, 4  ;;  %v4466_v36 = vpop.xlane.xlu0 %1194  ;;  %1943 = vperm.xlu0 %3374, %v4057_v53   ;;  %v1147_v43 = vadd.f32 %v1146_v18, %v1145_v35 }
 0x264   : > { %v1201_v23 = vpop.xlane.xlu1 %1200 }
 0x265   : > { %v1245_v16 = vadd.f32 %v1201_v23, %v1199_v19  ;;  %1359 = vperm.xlu1 %3355, %v4021_v42   ;;  %v1616_v2 = vadd.f32 %v1615_v20, %v1614_v41  ;;  %v1271_v27 = vmul.f32 0.00048828125, %v1147_v43 }
 0x267   : > { %v3414_v48 = vpop.eup %3413  ;;  %v1246_v40 = vrot.slane %v1245_v16, 4  ;;  %v1675_v11 = vpop.xlane.xlu0 %1674  ;;  %1947 = vperm.xlu0 %3374, %v4064_v57   ;;  %v1617_v47 = vrot.slane %v1616_v2, 2 }
 0x268   : > { %v4475_v39 = vpop.xlane.xlu1 %1680  ;;  %v4477_v53 = vmul.f32 %v3414_v48, %v1302_v49  ;;  %v4479_v19 = vmul.f32 %v3414_v48, %v1303_v12  ;;  %v1287_v48 = vmul.f32 %v1271_v27, %v1271_v27 }
 0x269   : > { %5136 = vst [vmem:[#allocation49_spill] sm:$0xff] %v4475_v39  ;;  %v1247_v42 = vadd.f32 %v1246_v40, %v1245_v16  ;;  %1367 = vperm.xlu1 %3355, %v4033_v45   ;;  %v1618_v20 = vadd.f32 %v1617_v47, %v1616_v2 }
 0x26b   : > { %v3416_v22 = vpop.eup %3415  ;;  %v1248_v51 = vrot.slane %v1247_v42, 2  ;;  %v1103_v54 = vpop.xlane.xlu0 %1102  ;;  %1959 = vperm.xlu0 %3374, %v4081_v61   ;;  %v1619_v49 = vrot.slane %v1618_v20, 1 }
 0x26c   : > { %v4487_v28 = vpop.xlane.xlu1 %1196  ;;  %v4489_v44 = vmul.f32 %v3416_v22, %v1782_v9  ;;  %v4491_v41 = vmul.f32 %v3416_v22, %v1783_v8 }
 0x26d   : > { %v1249_v45 = vadd.f32 %v1248_v51, %v1247_v42  ;;  %1375 = vperm.xlu1 %3355, %v4045_v50   ;;  %v1620_v8 = vadd.f32 %v1619_v49, %v1618_v20 }
 0x26e   : > { %5137 = vst [vmem:[#allocation50_spill] sm:$0xff] %v4489_v44  ;;  %5138 = vst [vmem:[#allocation51_spill] sm:$0xff] %v4491_v41  ;;  %v5151_v44 = vld [vmem:[#allocation38_spill] sm:$0xff]  ;;  %v5152_v41 = vld [vmem:[#allocation39_spill] sm:$0xff] }
 0x26f   : > { %v1250_v23 = vrot.slane %v1249_v45, 1  ;;  %v4494_v37 = vpop.xlane.xlu0 %1098  ;;  %1963 = vperm.xlu0 %3374, %v4088_v63  }
 0x270   : > { %v1677_v38 = vpop.xlane.xlu1 %1676 }
 0x271   : > { %v1251_v35 = vadd.f32 %v1250_v23, %v1249_v45  ;;  %v1718_v16 = vadd.f32 %v1677_v38, %v1675_v11  ;;  %1379 = vperm.xlu1 %3355, %v4052_v52   ;;  %v1750_v23 = vmul.f32 0.00048828125, %v1620_v8 }
 0x273   : > { %v1279_v12 = vmul.f32 0.00048828125, %v1251_v35  ;;  %v1719_v18 = vrot.slane %v1718_v16, 4  ;;  %v1207_v40 = vpop.xlane.xlu0 %1206 }
 0x274   : > { %v1105_v42 = vpop.xlane.xlu1 %1104 }
 0x275   : > { %v1295_v9 = vsub.f32 %v1279_v12, %v1287_v48  ;;  %v1720_v50 = vadd.f32 %v1719_v18, %v1718_v16  ;;  %1387 = vperm.xlu1 %3355, %v4064_v57   ;;  %v1155_v2 = vadd.f32 %v1105_v42, %v1103_v54  ;;  %v1766_v18 = vmul.f32 %v1750_v23, %v1750_v23 }
 0x277   : > { %v1319_v22 = vadd.f32 1e-05, %v1295_v9  ;;  %v1721_v43 = vrot.slane %v1720_v50, 2  ;;  %v4499_v47 = vpop.xlane.xlu0 %1202  ;;  %v1156_v51 = vrot.slane %v1155_v2, 4 }
 0x278   : > { %v4501_v11 = vpop.xlane.xlu1 %1100 }
 0x279   : > { %3417 = vrsqrt.f32 %v1319_v22  ;;  %v1722_v52 = vadd.f32 %v1721_v43, %v1720_v50  ;;  %1399 = vperm.xlu1 %3355, %v4081_v61   ;;  %v1157_v45 = vadd.f32 %v1156_v51, %v1155_v2  ;;  %v1309_v43 = vsub.f32 %v4274_v5, %v1271_v27 }
 0x27b   : > { %v1723_v38 = vrot.slane %v1722_v52, 1  ;;  %v1581_v35 = vpop.xlane.xlu0 %1580  ;;  %v1158_v16 = vrot.slane %v1157_v45, 2 }
 0x27c   : > { %v1209_v12 = vpop.xlane.xlu1 %1208 }
 0x27d   : > { %v1724_v48 = vadd.f32 %v1723_v38, %v1722_v52  ;;  %v1259_v54 = vadd.f32 %v1209_v12, %v1207_v40  ;;  %3358 = vset.pattern.permute.xlu1 %v5127_v17  ;;  %v1159_v20 = vadd.f32 %v1158_v16, %v1157_v45  ;;  %v1308_v40 = vsub.f32 %v4261_v55, %v1271_v27 }
 0x27e   : > { %1467 = vperm.xlu1 %3358, %v4064_v57  }
 0x27f   : > { %v1758_v49 = vmul.f32 0.00048828125, %v1724_v48  ;;  %v1260_v42 = vrot.slane %v1259_v54, 4  ;;  %v1685_v9 = vpop.xlane.xlu0 %1684  ;;  %v1160_v50 = vrot.slane %v1159_v20, 1 }
 0x280   : > { %v4506_v22 = vpop.xlane.xlu1 %1204 }
 0x281   : > { %v1774_v2 = vsub.f32 %v1758_v49, %v1766_v18  ;;  %v1261_v8 = vadd.f32 %v1260_v42, %v1259_v54  ;;  %v1161_v45 = vadd.f32 %v1160_v50, %v1159_v20 }
 0x282   : > { %3359 = vset.pattern.permute.xlu1 %v5130_v14 }
 0x283   : > { %v3418_v51 = vpop.eup %3417  ;;  %v1798_v52 = vadd.f32 1e-05, %v1774_v2  ;;  %v1262_v38 = vrot.slane %v1261_v8, 2  ;;  %1403 = vperm.xlu1 %3359, %v4088_v63   ;;  %v4516_v54 = vpop.xlane.xlu0 %1584  ;;  %v1273_v49 = vmul.f32 0.00048828125, %v1161_v45  ;;  %v1787_v45 = vsub.f32 %v4295_v21, %v1750_v23 }
 0x284   : > { %v1579_v57 = vpop.xlane.xlu1 %1578  ;;  %v4512_v16 = vmul.f32 %v3418_v51, %v1309_v43  ;;  %v4514_v12 = vmul.f32 %v3418_v51, %v1308_v40  ;;  %v5141_v21 = vmov 4  }
 0x285   : > { %3419 = vrsqrt.f32 %v1798_v52  ;;  %v1263_v48 = vadd.f32 %v1262_v38, %v1261_v8  ;;  %v1628_v14 = vadd.f32 %v1581_v35, %v1579_v57  ;;  %v1289_v50 = vmul.f32 %v1273_v49, %v1273_v49 }
 0x286   : > { %v1786_v52 = vsub.f32 %v4279_v13, %v1750_v23 }
 0x287   : > { %v1264_v5 = vrot.slane %v1263_v48, 1  ;;  %v1629_v18 = vrot.slane %v1628_v14, 4  ;;  %1407 = vperm.xlu1 %3359, %v4093_v0   ;;  %v4519_v43 = vpop.xlane.xlu0 %1688 }
 0x288   : > { %v1683_v55 = vpop.xlane.xlu1 %1682 }
 0x289   : > { %v1265_v27 = vadd.f32 %v1264_v5, %v1263_v48  ;;  %v1630_v20 = vadd.f32 %v1629_v18, %v1628_v14  ;;  %v1732_v42 = vadd.f32 %v1685_v9, %v1683_v55 }
 0x28b   : > { %v1281_v63 = vmul.f32 0.00048828125, %v1265_v27  ;;  %v1631_v2 = vrot.slane %v1630_v20, 2  ;;  %v1733_v40 = vrot.slane %v1732_v42, 4  ;;  %3360 = vset.pattern.permute.xlu1 %v5127_v17 }
 0x28c   : > { %1479 = vperm.xlu1 %3360, %v4081_v61  }
 0x28d   : > { %v1297_v35 = vsub.f32 %v1281_v63, %v1289_v50  ;;  %v1632_v8 = vadd.f32 %v1631_v2, %v1630_v20  ;;  %v1734_v51 = vadd.f32 %v1733_v40, %v1732_v42  ;;  %v3477_v20 = vld [vmem:[%s5049_s4 + $0x8] sm:$0xff]  ;;  %v3478_v2 = vld [vmem:[%s5049_s4] sm:$0xff]  ;;  %v1312_v40 = vsub.f32 %v4309_v25, %v1273_v49 }
 0x28e   : > { %v1106_v25 = vadd.f32 %v4391_v26, %v4363_v31 }
 0x28f   : > { %v3420_v38 = vpop.eup %3419  ;;  %v1321_v57 = vadd.f32 1e-05, %v1297_v35  ;;  %v1633_v9 = vrot.slane %v1632_v8, 1  ;;  %v1735_v48 = vrot.slane %v1734_v51, 2  ;;  %v4525_v14 = vpop.permute.xlu0 %1347  ;;  %v1313_v35 = vsub.f32 %v4325_v33, %v1273_v49  ;;  %v3480_v49 = vld [vmem:[%s5049_s4 + $0x18] sm:$0xff] }
 0x290   : > { %1487 = vperm.xlu1 %3360, %v4093_v0   ;;  %v4528_v5 = vmul.f32 %v3420_v38, %v1786_v52  ;;  %v4530_v17 = vmul.f32 %v3420_v38, %v1787_v45  ;;  %v1210_v33 = vadd.f32 %v4399_v32, %v4397_v15  ;;  %v1113_v32 = vadd.f32 %v4369_v3, %v4361_v4 }
 0x291   : > { %3421 = vrsqrt.f32 %v1321_v57  ;;  %v1634_v61 = vadd.f32 %v1633_v9, %v1632_v8  ;;  %v1736_v18 = vadd.f32 %v1735_v48, %v1734_v51  ;;  %v3479_v57 = vld [vmem:[%s5049_s4 + $0x10] sm:$0xff] }
 0x292   : > { %5139 = vst [vmem:[#allocation52_spill] sm:$0xff] %v4528_v5  ;;  %5140 = vst [vmem:[#allocation53_spill] sm:$0xff] %v4530_v17 }
 0x293   : > { %v1752_v55 = vmul.f32 0.00048828125, %v1634_v61  ;;  %v1737_v27 = vrot.slane %v1736_v18, 1  ;;  %v4532_v13 = vpop.permute.xlu0 %1363  ;;  %v1107_v61 = vrot.slane %v1106_v25, 4 }
 0x294   : > { %3362 = vset.pattern.permute.xlu1 %v5141_v21 }
 0x295   : > { %v1738_v23 = vadd.f32 %v1737_v27, %v1736_v18  ;;  %1831 = vperm.xlu1 %3362, %v3477_v20   ;;  %v1768_v42 = vmul.f32 %v1752_v55, %v1752_v55  ;;  %v1790_v18 = vsub.f32 %v4349_v30, %v1752_v55  ;;  %v1791_v27 = vsub.f32 %v4336_v46, %v1752_v55  ;;  %v4580_v46 = vpop.xlane.xlu1 %1582 }
 0x296   : > { %v1211_v20 = vrot.slane %v1210_v33, 4  ;;  %v1217_v30 = vadd.f32 %v4387_v7, %v4379_v10 }
 0x297   : > { %v1760_v0 = vmul.f32 0.00048828125, %v1738_v23  ;;  %v4538_v63 = vpop.permute.xlu0 %1371 }
 0x299   : > { %v1776_v50 = vsub.f32 %v1760_v0, %v1768_v42  ;;  %3363 = vset.pattern.permute.xlu1 %v5088_v58  ;;  %v1108_v0 = vadd.f32 %v1107_v61, %v1106_v25  ;;  %v1212_v42 = vadd.f32 %v1211_v20, %v1210_v33  ;;  %v4590_v7 = vpop.permute.xlu1 %1431 }
 0x29a   : > { %1907 = vperm.xlu1 %3363, %v3478_v2  }
 0x29b   : > { %v3422_v8 = vpop.eup %3421  ;;  %v1800_v51 = vadd.f32 1e-05, %v1776_v50  ;;  %v4546_v52 = vpop.permute.xlu0 %1383  ;;  %v1114_v50 = vrot.slane %v1113_v32, 4  ;;  %v1109_v2 = vrot.slane %v1108_v0, 2  ;;  %v1213_v4 = vrot.slane %v1212_v42, 2 }
 0x29c   : > { %v4548_v45 = vmul.f32 %v3422_v8, %v1312_v40  ;;  %v4550_v38 = vmul.f32 %v3422_v8, %v1313_v35  ;;  %v3481_v40 = vld [vmem:[%s5049_s4 + $0x28] sm:$0xff]  ;;  %v1218_v35 = vrot.slane %v1217_v30, 4 }
 0x29d   : > { %3423 = vrsqrt.f32 %v1800_v51  ;;  %v1115_v8 = vadd.f32 %v1114_v50, %v1113_v32  ;;  %v1110_v10 = vadd.f32 %v1109_v2, %v1108_v0  ;;  %v1134_v51 = vadd.f32 %v4451_v59, %v4438_v60  ;;  %v4603_v60 = vpop.permute.xlu1 %1443  ;;  %v3483_v59 = vld [vmem:[%s5049_s4 + $0x30] sm:$0xff] }
 0x29e   : > { %3364 = vset.pattern.permute.xlu1 %v5141_v21  ;;  %v1219_v25 = vadd.f32 %v1218_v35, %v1217_v30  ;;  %v1214_v33 = vadd.f32 %v1213_v4, %v1212_v42 }
 0x29f   : > { %1835 = vperm.xlu1 %3364, %v3479_v57   ;;  %v4556_v9 = vpop.permute.xlu0 %1391  ;;  %v3482_v57 = vld [vmem:[%s5049_s4 + $0x20] sm:$0xff] }
 0x2a0   : > { %v1220_v20 = vrot.slane %v1219_v25, 2  ;;  %v1215_v32 = vrot.slane %v1214_v33, 1 }
 0x2a2   : > { %v1221_v50 = vadd.f32 %v1220_v20, %v1219_v25  ;;  %v1216_v2 = vadd.f32 %v1215_v32, %v1214_v33 }
 0x2a3   : > { %1839 = vperm.xlu1 %3364, %v3480_v49   ;;  %v4565_v48 = vpop.permute.xlu0 %1395 }
 0x2a4   : > { %v1222_v5 = vrot.slane %v1221_v50, 1 }
 0x2a7   : > { %v3424_v23 = vpop.eup %3423  ;;  %3365 = vset.pattern.permute.xlu1 %v5088_v58 }
 0x2a8   : > { %1919 = vperm.xlu1 %3365, %v3480_v49   ;;  %v4570_v31 = vpop.permute.xlu0 %1427  ;;  %v4572_v26 = vmul.f32 %v3424_v23, %v1790_v18  ;;  %v4574_v15 = vmul.f32 %v3424_v23, %v1791_v27  ;;  %v1238_v49 = vadd.f32 %v4487_v28, %v4466_v36  ;;  %v1116_v18 = vrot.slane %v1115_v8, 2 }
 0x2a9   : > { %v1111_v27 = vrot.slane %v1110_v10, 1  ;;  %v1135_v23 = vrot.slane %v1134_v51, 4 }
 0x2aa   : > { %5142 = vst [vmem:[#allocation54_spill] sm:$0xff] %v4574_v15  ;;  %v1239_v0 = vrot.slane %v1238_v49, 4  ;;  %v1117_v36 = vadd.f32 %v1116_v18, %v1115_v8  ;;  %v1274_v8 = vmul.f32 0.00048828125, %v1216_v2 }
 0x2ab   : > { %v1112_v28 = vadd.f32 %v1111_v27, %v1110_v10  ;;  %v1136_v42 = vadd.f32 %v1135_v23, %v1134_v51  ;;  %v5143_v10 = vmov 5   ;;  %v1223_v27 = vadd.f32 %v1222_v5, %v1221_v50 }
 0x2ac   : > { %3366 = vset.pattern.permute.xlu1 %v5141_v21  ;;  %v4583_v55 = vpop.permute.xlu0 %1435  ;;  %v1240_v35 = vadd.f32 %v1239_v0, %v1238_v49  ;;  %v1635_v5 = vadd.f32 %v4516_v54, %v4580_v46  ;;  %v1148_v46 = vadd.f32 %v4501_v11, %v4494_v37 }
 0x2ad   : > { %1847 = vperm.xlu1 %3366, %v3481_v40   ;;  %v3484_v40 = vld [vmem:[%s5049_s4 + $0x38] sm:$0xff]  ;;  %v1137_v15 = vrot.slane %v1136_v42, 2 }
 0x2ae   : > { %v1241_v51 = vrot.slane %v1240_v35, 2  ;;  %v1149_v11 = vrot.slane %v1148_v46, 4 }
 0x2af   : > { %v1138_v49 = vadd.f32 %v1137_v15, %v1136_v42 }
 0x2b0   : > { %v4588_v3 = vpop.permute.xlu0 %1439  ;;  %v1242_v32 = vadd.f32 %v1241_v51, %v1240_v35  ;;  %v3486_v51 = vld [vmem:[%s5049_s4 + $0x40] sm:$0xff] }
 0x2b1   : > { %3367 = vset.pattern.permute.xlu1 %v5088_v58  ;;  %v4615_v58 = vmul.f32 0.00048828125, %v1112_v28  ;;  %v3485_v28 = vld [vmem:[%s5049_s4 + $0x48] sm:$0xff]  ;;  %v1139_v2 = vrot.slane %v1138_v49, 1 }
 0x2b2   : > { %1923 = vperm.xlu1 %3367, %v3482_v57   ;;  %v1118_v57 = vrot.slane %v1117_v36, 1  ;;  %v1243_v15 = vrot.slane %v1242_v32, 1 }
 0x2b3   : > { %v1282_v33 = vmul.f32 %v4615_v58, %v4615_v58 }
 0x2b4   : > { %v4600_v61 = vpop.permute.xlu0 %1471  ;;  %v1119_v25 = vadd.f32 %v1118_v57, %v1117_v36  ;;  %v1244_v54 = vadd.f32 %v1243_v15, %v1242_v32  ;;  %v3487_v32 = vld [vmem:[%s5049_s4 + $0x50] sm:$0xff] }
 0x2b5   : > { %v1290_v23 = vsub.f32 %v1274_v8, %v1282_v33  ;;  %v1140_v8 = vadd.f32 %v1139_v2, %v1138_v49  ;;  %v1636_v33 = vrot.slane %v1635_v5, 4  ;;  %v1252_v2 = vadd.f32 %v4506_v22, %v4499_v47  ;;  %v3488_v47 = vld [vmem:[%s5049_s4 + $0x58] sm:$0xff] }
 0x2b6   : > { %3368 = vset.pattern.permute.xlu1 %v5141_v21  ;;  %v4627_v0 = vmul.f32 0.00048828125, %v1119_v25  ;;  %v1278_v37 = vmul.f32 0.00048828125, %v1244_v54  ;;  %v1150_v54 = vadd.f32 %v1149_v11, %v1148_v46 }
 0x2b7   : > { %1851 = vperm.xlu1 %3368, %v3483_v59   ;;  %v4617_v59 = vpop.permute.xlu1 %1447  ;;  %v1314_v57 = vadd.f32 1e-05, %v1290_v23  ;;  %v4648_v23 = vmul.f32 0.00048828125, %v1140_v8  ;;  %v1253_v15 = vrot.slane %v1252_v2, 4  ;;  %v5148_v8 = vld [vmem:[#allocation42_spill] sm:$0xff] }
 0x2b8   : > { %v4608_v30 = vpop.permute.xlu0 %1475  ;;  %v1283_v42 = vmul.f32 %v4627_v0, %v4627_v0 }
 0x2b9   : > { %3425 = vrsqrt.f32 %v1314_v57  ;;  %v1586_v57 = vadd.f32 %v4381_v24, %v4373_v34  ;;  %v1254_v24 = vadd.f32 %v1253_v15, %v1252_v2 }
 0x2bb   : > { %1855 = vperm.xlu1 %3368, %v3484_v40   ;;  %v4624_v20 = vpop.permute.xlu1 %1451  ;;  %v1587_v34 = vrot.slane %v1586_v57, 4 }
 0x2bc   : > { %v4613_v4 = vpop.permute.xlu0 %1483 }
 0x2bd   : > { %v1588_v2 = vadd.f32 %v1587_v34, %v1586_v57  ;;  %v5155_v34 = vld [vmem:[#allocation40_spill] sm:$0xff] }
 0x2bf   : > { %3369 = vset.pattern.permute.xlu1 %v5143_v10  ;;  %v4638_v50 = vpop.permute.xlu1 %1455 }
 0x2c0   : > { %1935 = vperm.xlu1 %3369, %v3484_v40   ;;  %v1275_v40 = vmul.f32 0.00048828125, %v1223_v27 }
 0x2c1   : > { %v4622_v18 = vpop.permute.xlu0 %1827 }
 0x2c2   : > { %5144 = vst [vmem:[#allocation55_spill] sm:$0xff] %v4622_v18  ;;  %v1291_v25 = vsub.f32 %v1275_v40, %v1283_v42 }
 0x2c3   : > { %v4656_v40 = vpop.permute.xlu1 %1459 }
 0x2c4   : > { %3370 = vset.pattern.permute.xlu1 %v5141_v21  ;;  %v1315_v49 = vadd.f32 1e-05, %v1291_v25  ;;  %v5149_v25 = vld [vmem:[#allocation43_spill] sm:$0xff] }
 0x2c5   : > { %1863 = vperm.xlu1 %3370, %v3485_v28   ;;  %v4632_v36 = vpop.permute.xlu0 %1843 }
 0x2c6   : > { %5145 = vst [vmem:[#allocation56_spill] sm:$0xff] %v4632_v36  ;;  %3427 = vrsqrt.f32 %v1315_v49 }
 0x2c9   : > { %3371 = vset.pattern.permute.xlu1 %v5143_v10  ;;  %v4641_v35 = vpop.permute.xlu0 %1859 }
 0x2ca   : > { %5146 = vst [vmem:[#allocation57_spill] sm:$0xff] %v4641_v35  ;;  %1939 = vperm.xlu1 %3371, %v3486_v51   ;;  %v1637_v51 = vadd.f32 %v1636_v33, %v1635_v5  ;;  %v3426_v5 = vpop.eup %3425  ;;  %v1690_v33 = vadd.f32 %v5149_v25, %v5148_v8  ;;  %v1593_v8 = vadd.f32 %v5152_v41, %v5151_v44  ;;  %v5153_v25 = vld [vmem:[#allocation27_spill] sm:$0xff]  ;;  %v3489_v41 = vld [vmem:[%s5049_s4 + $0x68] sm:$0xff] }
 0x2cc   : > { %v1638_v42 = vrot.slane %v1637_v51, 2  ;;  %v1691_v36 = vrot.slane %v1690_v33, 4 }
 0x2cd   : > { %v1876_v27 = vpop.permute.xlu0 %1875 }
 0x2ce   : > { %v4651_v28 = vmul.f32 %v1876_v27, %v4572_v26  ;;  %3372 = vset.pattern.permute.xlu1 %v5141_v21  ;;  %v1286_v26 = vmul.f32 %v4648_v23, %v4648_v23  ;;  %v4670_v27 = vpop.permute.xlu1 %1463  ;;  %v1639_v49 = vadd.f32 %v1638_v42, %v1637_v51  ;;  %v1255_v51 = vrot.slane %v1254_v24, 2 }
 0x2cf   : > { %1867 = vperm.xlu1 %3372, %v3487_v32   ;;  %v5150_v32 = vld [vmem:[#allocation21_spill] sm:$0xff]  ;;  %v1692_v39 = vadd.f32 %v1691_v36, %v1690_v33 }
 0x2d0   : > { %5147 = vst [vmem:[#allocation58_spill] sm:$0xff] %v4651_v28  ;;  %v1294_v22 = vsub.f32 %v1278_v37, %v1286_v26  ;;  %v1298_v28 = vsub.f32 %v5150_v32, %v4615_v58  ;;  %v1151_v37 = vrot.slane %v1150_v54, 2  ;;  %v1299_v32 = vsub.f32 %v5153_v25, %v4615_v58 }
 0x2d1   : > { %v1640_v15 = vrot.slane %v1639_v49, 1  ;;  %v1594_v58 = vrot.slane %v1593_v8, 4 }
 0x2d2   : > { %v1318_v35 = vadd.f32 1e-05, %v1294_v22  ;;  %v1330_v17 = vmul.f32 %v3426_v5, %v1298_v28  ;;  %v3428_v22 = vpop.eup %3427  ;;  %v1152_v44 = vadd.f32 %v1151_v37, %v1150_v54 }
 0x2d3   : > { %1871 = vperm.xlu1 %3372, %v3488_v47   ;;  %v1641_v36 = vadd.f32 %v1640_v15, %v1639_v49 }
 0x2d4   : > { %v1410_v46 = vmul.f32 %v4525_v14, %v1330_v17  ;;  %3429 = vrsqrt.f32 %v1318_v35  ;;  %v5154_v35 = vld [vmem:[#allocation20_spill] sm:$0xff] }
 0x2d5   : > { %v1300_v57 = vsub.f32 %v5154_v35, %v4627_v0  ;;  %v4699_v49 = vmul.f32 0.00048828125, %v1641_v36 }
 0x2d6   : > { %v1490_v28 = vadd.f32 %v4570_v31, %v1410_v46  ;;  %v1589_v31 = vrot.slane %v1588_v2, 2 }
 0x2d7   : > { %3373 = vset.pattern.permute.xlu1 %v5143_v10  ;;  %v1332_v25 = vmul.f32 %v3428_v22, %v1300_v57 }
 0x2d8   : > { %1951 = vperm.xlu1 %3373, %v3488_v47   ;;  %v1331_v47 = vmul.f32 %v3426_v5, %v1299_v32  ;;  %v1256_v5 = vadd.f32 %v1255_v51, %v1254_v24  ;;  %v1522_v33 = vmul.f32 0.1, %v1490_v28  ;;  %v1693_v32 = vrot.slane %v1692_v39, 2  ;;  %v3490_v24 = vld [vmem:[%s5049_s4 + $0x60] sm:$0xff] }
 0x2d9   : > { %v1687_v26 = vpop.xlane.xlu1 %1686  ;;  %vm1506_vm0 = vcmp.ge.f32.partialorder %v1490_v28, 0.0  ;;  %v1414_v51 = vmul.f32 %v4532_v13, %v4477_v53  ;;  %v4706_v56 = vadd.f32 %v1589_v31, %v1588_v2  ;;  %v1769_v2 = vmul.f32 %v4699_v49, %v4699_v49 }
 0x2da   : > { %v1739_v11 = vadd.f32 %v4519_v43, %v1687_v26  ;;  %v5156_v26 = vld [vmem:[#allocation41_spill] sm:$0xff] }
 0x2db   : > { %v4690_v46 = vadd.f32 %v5156_v26, %v5155_v34 }
 0x2dc   : > { %v1740_v42 = vrot.slane %v1739_v11, 4  ;;  %3375 = vset.pattern.permute.xlu1 %v5141_v21 }
 0x2dd   : > { %1879 = vperm.xlu1 %3375, %v3489_v41   ;;  %v1352_v43 = vpop.permute.xlu1 %1351  ;;  %v1153_v41 = vrot.slane %v1152_v44, 1  ;;  %v1698_v53 = vrot.slane %v4690_v46, 4 }
 0x2de   : > { %v1741_v14 = vadd.f32 %v1740_v42, %v1739_v11  ;;  %v1411_v17 = vmul.f32 %v1352_v43, %v1331_v47  ;;  %v5157_v42 = vld [vmem:[#allocation23_spill] sm:$0xff] }
 0x2df   : > { %v1301_v47 = vsub.f32 %v5157_v42, %v4627_v0  ;;  %v3430_v42 = vpop.eup %3429 }
 0x2e0   : > { %v1742_v54 = vrot.slane %v1741_v14, 2  ;;  %v1491_v37 = vadd.f32 %v4590_v7, %v1411_v17  ;;  %v1257_v7 = vrot.slane %v1256_v5, 1  ;;  %v1538_v17 = vsel %vm1506_vm0, %v1490_v28, %v1522_v33 }
 0x2e1   : > { %3376 = vset.pattern.permute.xlu1 %v5143_v10  ;;  %v1356_v11 = vpop.permute.xlu1 %1355  ;;  %v1333_v15 = vmul.f32 %v3428_v22, %v1301_v47  ;;  %v1494_v28 = vadd.f32 %v4603_v60, %v1414_v51  ;;  %v3491_v22 = vld [vmem:[%s5049_s4 + $0x70] sm:$0xff]  ;;  %v1416_v60 = vmul.f32 %v4538_v63, %v4461_v29 }
 0x2e2   : > { %v1743_v43 = vadd.f32 %v1742_v54, %v1741_v14  ;;  %vm1507_vm1 = vcmp.ge.f32.partialorder %v1491_v37, 0.0  ;;  %v1523_v35 = vmul.f32 0.1, %v1491_v37  ;;  %v1412_v34 = vmul.f32 %v1356_v11, %v1332_v25  ;;  %1955 = vperm.xlu1 %3376, %v3490_v24  }
 0x2e3   : > { %v4704_v14 = vadd.f32 %v1594_v58, %v1593_v8  ;;  %v1154_v54 = vadd.f32 %v1153_v41, %v1152_v44  ;;  %v4708_v24 = vadd.f32 %v1693_v32, %v1692_v39  ;;  %v1258_v13 = vadd.f32 %v1257_v7, %v1256_v5 }
 0x2e4   : > { %v1744_v57 = vrot.slane %v1743_v43, 1  ;;  %v1539_v26 = vsel %vm1507_vm1, %v1491_v37, %v1523_v35  ;;  %v1492_v0 = vadd.f32 %v4583_v55, %v1412_v34  ;;  %v5158_v55 = vld [vmem:[#allocation32_spill] sm:$0xff]  ;;  %vm1510_vm4 = vcmp.ge.f32.partialorder %v1494_v28, 0.0 }
 0x2e5   : > { %v1360_v25 = vpop.permute.xlu1 %1359  ;;  %v2034_v11 = vpack.c.bf16 %v1539_v26, %v1538_v17  ;;  %v1307_v8 = vsub.f32 %v5158_v55, %v4648_v23  ;;  %v4721_v58 = vmul.f32 0.00048828125, %v1154_v54  ;;  %v1280_v41 = vmul.f32 0.00048828125, %v1258_v13 }
 0x2e6   : > { %v1745_v36 = vadd.f32 %v1744_v57, %v1743_v43  ;;  %v1413_v18 = vmul.f32 %v1360_v25, %v1333_v15  ;;  %3377 = vset.pattern.permute.xlu1 %v5141_v21  ;;  %v1524_v44 = vmul.f32 0.1, %v1492_v0  ;;  %vm1508_vm2 = vcmp.ge.f32.partialorder %v1492_v0, 0.0  ;;  %v5159_v15 = vld [vmem:[#allocation31_spill] sm:$0xff] }
 0x2e7   : > { %1883 = vperm.xlu1 %3377, %v3491_v22   ;;  %2050 = vxpose.xlu0.c.b16.start [1/8] %v2034_v11, 128  ;;  %v1339_v31 = vmul.f32 %v3430_v42, %v1307_v8  ;;  %v1526_v47 = vmul.f32 0.1, %v1494_v28  ;;  %v1496_v43 = vadd.f32 %v4624_v20, %v1416_v60  ;;  %v1288_v34 = vmul.f32 %v4721_v58, %v4721_v58 }
 0x2e8   : > { %v1761_v39 = vmul.f32 0.00048828125, %v1745_v36  ;;  %v1493_v21 = vadd.f32 %v4588_v3, %v1413_v18  ;;  %v3492_v3 = vld [vmem:[%s5049_s4 + $0x78] sm:$0xff]  ;;  %v1540_v29 = vsel %vm1508_vm2, %v1492_v0, %v1524_v44  ;;  %v1306_v20 = vsub.f32 %v5159_v15, %v4648_v23 }
 0x2e9   : > { %v1368_v5 = vpop.permute.xlu1 %1367  ;;  %v1591_v26 = vrot.slane %v4706_v56, 1  ;;  %v1296_v0 = vsub.f32 %v1280_v41, %v1288_v34  ;;  %v1699_v36 = vadd.f32 %v1698_v53, %v4690_v46  ;;  %vm1512_vm6 = vcmp.ge.f32.partialorder %v1496_v43, 0.0 }
 0x2ea   : > { %v1777_v33 = vsub.f32 %v1761_v39, %v1769_v2  ;;  %vm1509_vm3 = vcmp.ge.f32.partialorder %v1493_v21, 0.0  ;;  %v1525_v37 = vmul.f32 0.1, %v1493_v21  ;;  %v1415_v32 = vmul.f32 %v1368_v5, %v4479_v19 }
 0x2eb   : > { %1887 = vperm.xlu1 %3377, %v3492_v3   ;;  %v1419_v19 = vmul.f32 %v4546_v52, %v1339_v31  ;;  %v1338_v54 = vmul.f32 %v3430_v42, %v1306_v20  ;;  %v1528_v52 = vmul.f32 0.1, %v1496_v43  ;;  %v1695_v55 = vrot.slane %v4708_v24, 1 }
 0x2ec   : > { %v1801_v18 = vadd.f32 1e-05, %v1777_v33  ;;  %v1541_v63 = vsel %vm1509_vm3, %v1493_v21, %v1525_v37  ;;  %v1495_v35 = vadd.f32 %v4617_v59, %v1415_v32  ;;  %v1542_v59 = vsel %vm1510_vm4, %v1494_v28, %v1526_v47  ;;  %v5161_v33 = vld [vmem:[#allocation36_spill] sm:$0xff] }
 0x2ed   : > { %v1376_v7 = vpop.permute.xlu1 %1375  ;;  %v2035_v51 = vpack.c.bf16 %v1541_v63, %v1540_v29  ;;  %v1499_v25 = vadd.f32 %v4670_v27, %v1419_v19  ;;  %v1592_v42 = vadd.f32 %v1591_v26, %v4706_v56  ;;  %v1320_v22 = vadd.f32 1e-05, %v1296_v0  ;;  %v5160_v56 = vld [vmem:[#allocation37_spill] sm:$0xff] }
 0x2ee   : > { %3431 = vrsqrt.f32 %v1801_v18  ;;  %vm1511_vm5 = vcmp.ge.f32.partialorder %v1495_v35, 0.0  ;;  %v1527_v17 = vmul.f32 0.1, %v1495_v35  ;;  %v1417_v57 = vmul.f32 %v1376_v7, %v4463_v6 }
 0x2ef   : > { %3378 = vset.pattern.permute.xlu1 %v5143_v10  ;;  %2051 = vxpose.xlu0.c.b16.cont [2/8] %v2035_v51, 128  ;;  %v1596_v10 = vrot.slane %v4704_v14, 2  ;;  %v1544_v27 = vsel %vm1512_vm6, %v1496_v43, %v1528_v52  ;;  %v1531_v39 = vmul.f32 0.1, %v1499_v25  ;;  %v1700_v46 = vrot.slane %v1699_v36, 2  ;;  %v5165_v52 = vld [vmem:[#allocation47_spill] sm:$0xff] }
 0x2f0   : > { %v1543_v11 = vsel %vm1511_vm5, %v1495_v35, %v1527_v17  ;;  %v1497_v23 = vadd.f32 %v4638_v50, %v1417_v57  ;;  %1967 = vperm.xlu1 %3378, %v3492_v3   ;;  %vm1515_vm8 = vcmp.ge.f32.partialorder %v1499_v25, 0.0  ;;  %v1696_v21 = vadd.f32 %v1695_v55, %v4708_v24  ;;  %v5162_v17 = vld [vmem:[#allocation44_spill] sm:$0xff]  ;;  %v5163_v57 = vld [vmem:[#allocation45_spill] sm:$0xff] }
 0x2f1   : > { %v1380_v6 = vpop.permute.xlu1 %1379  ;;  %v2036_v13 = vpack.c.bf16 %v1543_v11, %v1542_v59  ;;  %v1597_v31 = vadd.f32 %v1596_v10, %v4704_v14  ;;  %3433 = vrsqrt.f32 %v1320_v22  ;;  %v1792_v5 = vsub.f32 %v5160_v56, %v4699_v49 }
 0x2f2   : > { %vm1513_vm7 = vcmp.ge.f32.partialorder %v1497_v23, 0.0  ;;  %v1529_v28 = vmul.f32 0.1, %v1497_v23  ;;  %v1418_v8 = vmul.f32 %v1380_v6, %v1338_v54  ;;  %v1793_v37 = vsub.f32 %v5161_v33, %v4699_v49  ;;  %v5164_v54 = vld [vmem:[#allocation46_spill] sm:$0xff] }
 0x2f3   : > { %2052 = vxpose.xlu0.c.b16.cont [3/8] %v2036_v13, 128  ;;  %v1421_v41 = vmul.f32 %v4556_v9, %v4512_v16  ;;  %v1547_v47 = vsel %vm1515_vm8, %v1499_v25, %v1531_v39  ;;  %v1701_v43 = vadd.f32 %v1700_v46, %v1699_v36  ;;  %v1754_v63 = vmul.f32 0.00048828125, %v1696_v21  ;;  %v5167_v39 = vld [vmem:[#allocation35_spill] sm:$0xff] }
 0x2f4   : > { %v1545_v50 = vsel %vm1513_vm7, %v1497_v23, %v1529_v28  ;;  %v1498_v2 = vadd.f32 %v4656_v40, %v1418_v8  ;;  %v4753_v40 = vmul.f32 0.00048828125, %v1592_v42  ;;  %v1598_v34 = vrot.slane %v1597_v31, 1 }
 0x2f5   : > { %v1388_v53 = vpop.permute.xlu1 %1387  ;;  %v2037_v44 = vpack.c.bf16 %v1545_v50, %v1544_v27  ;;  %v1501_v35 = vadd.f32 %v4600_v61, %v1421_v41  ;;  %v1702_v16 = vrot.slane %v1701_v43, 1  ;;  %v1607_v26 = vadd.f32 %v5163_v57, %v5162_v17 }
 0x2f6   : > { %vm1514_vm9 = vcmp.ge.f32.partialorder %v1498_v2, 0.0  ;;  %v1530_v60 = vmul.f32 0.1, %v1498_v2  ;;  %v1762_v49 = vmul.f32 %v4753_v40, %v4753_v40  ;;  %v1420_v19 = vmul.f32 %v1388_v53, %v4514_v12  ;;  %v5166_v12 = vld [vmem:[#allocation34_spill] sm:$0xff] }
 0x2f7   : > { %2053 = vxpose.xlu0.c.b16.cont [4/8] %v2037_v44, 128  ;;  %v1533_v51 = vmul.f32 0.1, %v1501_v35  ;;  %v1599_v20 = vadd.f32 %v1598_v34, %v1597_v31  ;;  %vm1517_vm10 = vcmp.ge.f32.partialorder %v1501_v35, 0.0  ;;  %v1703_v59 = vadd.f32 %v1702_v16, %v1701_v43 }
 0x2f8   : > { %v3432_v32 = vpop.eup %3431  ;;  %v1546_v24 = vsel %vm1514_vm9, %v1498_v2, %v1530_v60  ;;  %v1770_v7 = vsub.f32 %v1754_v63, %v1762_v49  ;;  %v1711_v25 = vadd.f32 %v5165_v52, %v5164_v54  ;;  %v1310_v23 = vsub.f32 %v5166_v12, %v4721_v58  ;;  %v5170_v12 = vld [vmem:[#allocation55_spill] sm:$0xff] }
 0x2f9   : > { %v1400_v3 = vpop.permute.xlu1 %1399  ;;  %v2038_v18 = vpack.c.bf16 %v1547_v47, %v1546_v24  ;;  %v4757_v14 = vmul.f32 %v3432_v32, %v1792_v5  ;;  %v4759_v29 = vmul.f32 %v3432_v32, %v1793_v37  ;;  %v1549_v36 = vsel %vm1517_vm10, %v1501_v35, %v1533_v51  ;;  %v5169_v51 = vld [vmem:[#allocation24_spill] sm:$0xff] }
 0x2fa   : > { %v1794_v11 = vadd.f32 1e-05, %v1770_v7  ;;  %v4771_v55 = vmul.f32 0.00048828125, %v1599_v20  ;;  %v1608_v28 = vrot.slane %v1607_v26, 4  ;;  %v1755_v42 = vmul.f32 0.00048828125, %v1703_v59 }
 0x2fb   : > { %2054 = vxpose.xlu0.c.b16.cont [5/8] %v2038_v18, 128  ;;  %v3434_v61 = vpop.eup %3433  ;;  %v1712_v22 = vrot.slane %v1711_v25, 4  ;;  %v1311_v50 = vsub.f32 %v5167_v39, %v4721_v58 }
 0x2fc   : > { %v1342_v10 = vmul.f32 %v3434_v61, %v1310_v23  ;;  %3435 = vrsqrt.f32 %v1794_v11  ;;  %v1763_v46 = vmul.f32 %v4771_v55, %v4771_v55  ;;  %v1609_v53 = vadd.f32 %v1608_v28, %v1607_v26  ;;  %v1912_v26 = vpop.permute.xlu0 %1911 }
 0x2fd   : > { %v1468_v9 = vpop.permute.xlu1 %1467  ;;  %v1343_v21 = vmul.f32 %v3434_v61, %v1311_v50  ;;  %v1713_v56 = vadd.f32 %v1712_v22, %v1711_v25  ;;  %v1621_v25 = vadd.f32 %v4458_v1, %v4433_v62  ;;  %v5173_v62 = vld [vmem:[#allocation22_spill] sm:$0xff] }
 0x2fe   : > { %v1500_v15 = vadd.f32 %v1468_v9, %v1420_v19  ;;  %v1422_v27 = vmul.f32 %v4565_v48, %v1342_v10  ;;  %v1771_v31 = vsub.f32 %v1755_v42, %v1763_v46  ;;  %v1610_v33 = vrot.slane %v1609_v53, 2 }
 0x2ff   : > { %v1423_v5 = vmul.f32 %v1400_v3, %v1343_v21  ;;  %v1714_v47 = vrot.slane %v1713_v56, 2  ;;  %v1780_v1 = vsub.f32 %v5173_v62, %v4771_v55 }
 0x300   : > { %vm1516_vm11 = vcmp.ge.f32.partialorder %v1500_v15, 0.0  ;;  %v1532_v0 = vmul.f32 0.1, %v1500_v15  ;;  %v1502_v44 = vadd.f32 %v4608_v30, %v1422_v27  ;;  %v1795_v58 = vadd.f32 1e-05, %v1771_v31 }
 0x301   : > { %v1611_v30 = vadd.f32 %v1610_v33, %v1609_v53  ;;  %v1622_v27 = vrot.slane %v1621_v25, 4 }
 0x302   : > { %v1548_v6 = vsel %vm1516_vm11, %v1500_v15, %v1532_v0  ;;  %v1404_v13 = vpop.permute.xlu1 %1403  ;;  %v1534_v32 = vmul.f32 0.1, %v1502_v44  ;;  %vm1518_vm12 = vcmp.ge.f32.partialorder %v1502_v44, 0.0  ;;  %3437 = vrsqrt.f32 %v1795_v58 }
 0x303   : > { %v2039_v8 = vpack.c.bf16 %v1549_v36, %v1548_v6  ;;  %v1424_v60 = vmul.f32 %v1404_v13, %v4548_v45  ;;  %v5168_v45 = vld [vmem:[#allocation26_spill] sm:$0xff]  ;;  %v1612_v7 = vrot.slane %v1611_v30, 1  ;;  %v1778_v15 = vsub.f32 %v5169_v51, %v4753_v40  ;;  %v5171_v6 = vld [vmem:[#allocation48_spill] sm:$0xff]  ;;  %v5172_v13 = vld [vmem:[#allocation49_spill] sm:$0xff] }
 0x304   : > { %v1779_v63 = vsub.f32 %v5168_v45, %v4753_v40  ;;  %v1550_v3 = vsel %vm1518_vm12, %v1502_v44, %v1534_v32  ;;  %v1725_v40 = vadd.f32 %v5172_v13, %v5171_v6  ;;  %v1623_v31 = vadd.f32 %v1622_v27, %v1621_v25  ;;  %v1916_v32 = vpop.permute.xlu0 %1915  ;;  %v5175_v51 = vld [vmem:[#allocation51_spill] sm:$0xff] }
 0x305   : > { %2055 = vxpose.xlu0.c.b16.cont [6/8] %v2039_v8, 128  ;;  %v1504_v48 = vadd.f32 %v4613_v4, %v1424_v60  ;;  %v1715_v4 = vadd.f32 %v1714_v47, %v1713_v56  ;;  %v1613_v52 = vadd.f32 %v1612_v7, %v1611_v30 }
 0x306   : > { %v1408_v2 = vpop.permute.xlu1 %1407  ;;  %v3436_v35 = vpop.eup %3435  ;;  %v1624_v47 = vrot.slane %v1623_v31, 2 }
 0x307   : > { %v1425_v24 = vmul.f32 %v1408_v2, %v4550_v38  ;;  %v1536_v34 = vmul.f32 0.1, %v1504_v48  ;;  %vm1520_vm14 = vcmp.ge.f32.partialorder %v1504_v48, 0.0  ;;  %v1811_v38 = vmul.f32 %v3436_v35, %v1779_v63 }
 0x308   : > { %v1716_v0 = vrot.slane %v1715_v4, 1  ;;  %v1810_v54 = vmul.f32 %v3436_v35, %v1778_v15  ;;  %v4791_v22 = vmul.f32 0.00048828125, %v1613_v52  ;;  %v1726_v2 = vrot.slane %v1725_v40, 4 }
 0x309   : > { %v1552_v20 = vsel %vm1520_vm14, %v1504_v48, %v1536_v34  ;;  %v1625_v63 = vadd.f32 %v1624_v47, %v1623_v31 }
 0x30a   : > { %v1890_v23 = vmul.f32 %v5170_v12, %v1810_v54  ;;  %v1717_v36 = vadd.f32 %v1716_v0, %v1715_v4  ;;  %v1765_v60 = vmul.f32 %v4791_v22, %v4791_v22  ;;  %v5177_v0 = vld [vmem:[#allocation56_spill] sm:$0xff] }
 0x30b   : > { %v1480_v37 = vpop.permute.xlu1 %1479  ;;  %v1626_v4 = vrot.slane %v1625_v63, 1 }
 0x30c   : > { %v1503_v41 = vadd.f32 %v1480_v37, %v1423_v5  ;;  %v3438_v42 = vpop.eup %3437  ;;  %v1757_v50 = vmul.f32 0.00048828125, %v1717_v36  ;;  %v1727_v37 = vadd.f32 %v1726_v2, %v1725_v40  ;;  %v5178_v36 = vld [vmem:[#allocation28_spill] sm:$0xff]  ;;  %v5179_v2 = vld [vmem:[#allocation29_spill] sm:$0xff] }
 0x30d   : > { %v1812_v53 = vmul.f32 %v3438_v42, %v1780_v1  ;;  %v1784_v6 = vsub.f32 %v5178_v36, %v4791_v22 }
 0x30e   : > { %vm1519_vm13 = vcmp.ge.f32.partialorder %v1503_v41, 0.0  ;;  %v1535_v43 = vmul.f32 0.1, %v1503_v41  ;;  %v1773_v33 = vsub.f32 %v1757_v50, %v1765_v60 }
 0x30f   : > { %v1488_v18 = vpop.permute.xlu1 %1487 }
 0x310   : > { %v1551_v49 = vsel %vm1519_vm13, %v1503_v41, %v1535_v43  ;;  %v1505_v19 = vadd.f32 %v1488_v18, %v1425_v24  ;;  %v5174_v41 = vld [vmem:[#allocation25_spill] sm:$0xff]  ;;  %v1797_v30 = vadd.f32 1e-05, %v1773_v33  ;;  %v1728_v18 = vrot.slane %v1727_v37, 2 }
 0x311   : > { %v2040_v16 = vpack.c.bf16 %v1551_v49, %v1550_v3  ;;  %v1781_v58 = vsub.f32 %v5174_v41, %v4771_v55 }
 0x312   : > { %vm1521_vm15 = vcmp.ge.f32.partialorder %v1505_v19, 0.0  ;;  %v1537_v9 = vmul.f32 0.1, %v1505_v19  ;;  %3439 = vrsqrt.f32 %v1797_v30  ;;  %v1729_v49 = vadd.f32 %v1728_v18, %v1727_v37  ;;  %v5182_v30 = vld [vmem:[#allocation57_spill] sm:$0xff] }
 0x313   : > { %2056 = vxpose.xlu0.c.b16.cont [7/8] %v2040_v16, 128  ;;  %v1813_v43 = vmul.f32 %v3438_v42, %v1781_v58  ;;  %v5180_v58 = vld [vmem:[#allocation53_spill] sm:$0xff] }
 0x314   : > { %v1553_v17 = vsel %vm1521_vm15, %v1505_v19, %v1537_v9  ;;  %v1832_v57 = vpop.permute.xlu1 %1831  ;;  %v1928_v9 = vpop.permute.xlu0 %1927 }
 0x315   : > { %v2041_v61 = vpack.c.bf16 %v1553_v17, %v1552_v20  ;;  %v1891_v59 = vmul.f32 %v1832_v57, %v1811_v38  ;;  %v1730_v38 = vrot.slane %v1729_v49, 1  ;;  %v1627_v17 = vadd.f32 %v1626_v4, %v1625_v63 }
 0x317   : > { %v1971_v11 = vadd.f32 %v1912_v26, %v1891_v59  ;;  %2057 = vxpose.xlu0.c.b16.end [8/8] %v2041_v61, 128  ;;  %v5176_v26 = vld [vmem:[#allocation50_spill] sm:$0xff]  ;;  %v1731_v59 = vadd.f32 %v1730_v38, %v1729_v49  ;;  %v1751_v12 = vmul.f32 0.00048828125, %v1627_v17 }
 0x318   : > { %v1894_v61 = vmul.f32 %v5177_v0, %v5176_v26  ;;  %v1932_v1 = vpop.permute.xlu0 %1931  ;;  %v5183_v49 = vld [vmem:[#allocation30_spill] sm:$0xff] }
 0x319   : > { %v1908_v28 = vpop.permute.xlu1 %1907  ;;  %v2003_v8 = vmul.f32 0.1, %v1971_v11  ;;  %vm1987_vm0 = vcmp.ge.f32.partialorder %v1971_v11, 0.0  ;;  %v1759_v13 = vmul.f32 0.00048828125, %v1731_v59  ;;  %v1767_v42 = vmul.f32 %v1751_v12, %v1751_v12 }
 0x31a   : > { %v1970_v10 = vadd.f32 %v1908_v28, %v1890_v23 }
 0x31b   : > { %v2019_v21 = vsel %vm1987_vm0, %v1971_v11, %v2003_v8  ;;  %v1775_v62 = vsub.f32 %v1759_v13, %v1767_v42  ;;  %v5185_v13 = vld [vmem:[#allocation54_spill] sm:$0xff] }
 0x31c   : > { %vm1986_vm1 = vcmp.ge.f32.partialorder %v1970_v10, 0.0  ;;  %v2002_v39 = vmul.f32 0.1, %v1970_v10  ;;  %v3440_v11 = vpop.eup %3439 }
 0x31d   : > { %v1816_v28 = vmul.f32 %v3440_v11, %v1784_v6 }
 0x31e   : > { %v1836_v46 = vpop.permute.xlu1 %1835  ;;  %v2018_v44 = vsel %vm1986_vm1, %v1970_v10, %v2002_v39 }
 0x31f   : > { %v2042_v56 = vpack.c.bf16 %v2019_v21, %v2018_v44  ;;  %v1892_v5 = vmul.f32 %v1836_v46, %v1812_v53  ;;  %v1785_v46 = vsub.f32 %v5179_v2, %v4791_v22  ;;  %v1799_v21 = vadd.f32 1e-05, %v1775_v62 }
 0x321   : > { %3217 = vmatprep.subr.bf16.mxu0 %v2042_v56  ;;  %v1972_v24 = vadd.f32 %v1916_v32, %v1892_v5  ;;  %v1817_v44 = vmul.f32 %v3440_v11, %v1785_v46  ;;  %3441 = vrsqrt.f32 %v1799_v21  ;;  %v1944_v32 = vpop.permute.xlu0 %1943 }
 0x322   : > { %v1840_v48 = vpop.permute.xlu1 %1839  ;;  %3218 = vmatpush3.bf16.msra.mxu0 %v2042_v56 }
 0x323   : > { %v1893_v45 = vmul.f32 %v1840_v48, %v1813_v43  ;;  %v2004_v3 = vmul.f32 0.1, %v1972_v24  ;;  %vm1988_vm2 = vcmp.ge.f32.partialorder %v1972_v24, 0.0  ;;  %v5181_v43 = vld [vmem:[#allocation52_spill] sm:$0xff] }
 0x324   : > { %v1898_v18 = vmul.f32 %v5182_v30, %v5181_v43  ;;  %v5187_v30 = vmov 0  }
 0x325   : > { %v2020_v55 = vsel %vm1988_vm2, %v1972_v24, %v2004_v3 }
 0x327   : > { %v1920_v35 = vpop.permute.xlu1 %1919 }
 0x328   : > { %v1973_v34 = vadd.f32 %v1920_v35, %v1893_v45 }
 0x32a   : > { %vm1989_vm3 = vcmp.ge.f32.partialorder %v1973_v34, 0.0  ;;  %v2005_v19 = vmul.f32 0.1, %v1973_v34 }
 0x32b   : > { %v3442_v3 = vpop.eup %3441 }
 0x32c   : > { %v1848_v16 = vpop.permute.xlu1 %1847  ;;  %v2021_v7 = vsel %vm1989_vm3, %v1973_v34, %v2005_v19  ;;  %v1788_v19 = vsub.f32 %v5183_v49, %v1751_v12 }
 0x32d   : > { %v1895_v15 = vmul.f32 %v1848_v16, %v5175_v51  ;;  %v2043_v20 = vpack.c.bf16 %v2021_v7, %v2020_v55  ;;  %v1948_v51 = vpop.permute.xlu0 %1947 }
 0x32e   : > { %v1820_v16 = vmul.f32 %v3442_v3, %v1788_v19 }
 0x32f   : > { %v1975_v57 = vadd.f32 %v1928_v9, %v1895_v15  ;;  %3219 = vmatprep.subr.bf16.mxu0 %v2043_v20 }
 0x330   : > { %3220 = vmatpush3.bf16.msra.mxu0 %v2043_v20  ;;  %v5184_v20 = vld [vmem:[#allocation33_spill] sm:$0xff] }
 0x331   : > { %v1924_v54 = vpop.permute.xlu1 %1923  ;;  %v2007_v52 = vmul.f32 0.1, %v1975_v57  ;;  %vm1991_vm4 = vcmp.ge.f32.partialorder %v1975_v57, 0.0  ;;  %v1789_v17 = vsub.f32 %v5184_v20, %v1751_v12 }
 0x332   : > { %v1974_v25 = vadd.f32 %v1924_v54, %v1894_v61  ;;  %v1960_v61 = vpop.permute.xlu0 %1959 }
 0x333   : > { %v2023_v10 = vsel %vm1991_vm4, %v1975_v57, %v2007_v52  ;;  %v1821_v26 = vmul.f32 %v3442_v3, %v1789_v17 }
 0x334   : > { %vm1990_vm5 = vcmp.ge.f32.partialorder %v1974_v25, 0.0  ;;  %v2006_v23 = vmul.f32 0.1, %v1974_v25 }
 0x336   : > { %v1852_v40 = vpop.permute.xlu1 %1851  ;;  %v2022_v8 = vsel %vm1990_vm5, %v1974_v25, %v2006_v23  ;;  %v1964_v6 = vpop.permute.xlu0 %1963 }
 0x337   : > { %v2044_v27 = vpack.c.bf16 %v2023_v10, %v2022_v8  ;;  %v1896_v39 = vmul.f32 %v1852_v40, %v1816_v28 }
 0x339   : > { %3221 = vmatprep.subr.bf16.mxu0 %v2044_v27  ;;  %v1976_v53 = vadd.f32 %v1932_v1, %v1896_v39 }
 0x33a   : > { %v1856_v50 = vpop.permute.xlu1 %1855  ;;  %3222 = vmatpush3.bf16.msra.mxu0 %v2044_v27  ;;  %v5186_v27 = vld [vmem:[#allocation58_spill] sm:$0xff] }
 0x33b   : > { %v1897_v60 = vmul.f32 %v1856_v50, %v1817_v44  ;;  %v2008_v56 = vmul.f32 0.1, %v1976_v53  ;;  %vm1992_vm6 = vcmp.ge.f32.partialorder %v1976_v53, 0.0 }
 0x33d   : > { %v2024_v48 = vsel %vm1992_vm6, %v1976_v53, %v2008_v56 }
 0x33f   : > { %v1936_v31 = vpop.permute.xlu1 %1935 }
 0x340   : > { %v1977_v5 = vadd.f32 %v1936_v31, %v1897_v60 }
 0x342   : > { %vm1993_vm7 = vcmp.ge.f32.partialorder %v1977_v5, 0.0  ;;  %v2009_v33 = vmul.f32 0.1, %v1977_v5 }
 0x344   : > { %v1864_v37 = vpop.permute.xlu1 %1863  ;;  %v2025_v41 = vsel %vm1993_vm7, %v1977_v5, %v2009_v33 }
 0x345   : > { %v1899_v47 = vmul.f32 %v1864_v37, %v5180_v58  ;;  %v2045_v24 = vpack.c.bf16 %v2025_v41, %v2024_v48 }
 0x347   : > { %v1979_v22 = vadd.f32 %v1944_v32, %v1899_v47  ;;  %3223 = vmatprep.subr.bf16.mxu0 %v2045_v24  ;;  %v3493_v47 = vld [vmem:[%s3973_s21] sm:$0xff]  }
 0x348   : > { %3224 = vmatpush3.bf16.msra.mxu0 %v2045_v24 }
 0x349   : > { %v1940_v45 = vpop.permute.xlu1 %1939  ;;  %v2011_v63 = vmul.f32 0.1, %v1979_v22  ;;  %vm1995_vm8 = vcmp.ge.f32.partialorder %v1979_v22, 0.0 }
 0x34a   : > { %v1978_v35 = vadd.f32 %v1940_v45, %v1898_v18 }
 0x34b   : > { %v2027_v55 = vsel %vm1995_vm8, %v1979_v22, %v2011_v63 }
 0x34c   : > { %vm1994_vm9 = vcmp.ge.f32.partialorder %v1978_v35, 0.0  ;;  %v2010_v34 = vmul.f32 0.1, %v1978_v35 }
 0x34e   : > { %v1868_v4 = vpop.permute.xlu1 %1867  ;;  %v2026_v9 = vsel %vm1994_vm9, %v1978_v35, %v2010_v34 }
 0x34f   : > { %v2046_v7 = vpack.c.bf16 %v2027_v55, %v2026_v9  ;;  %v1900_v38 = vmul.f32 %v1868_v4, %v1820_v16 }
 0x351   : > { %3225 = vmatprep.subr.bf16.mxu0 %v2046_v7  ;;  %v1980_v57 = vadd.f32 %v1948_v51, %v1900_v38 }
 0x352   : > { %v1872_v15 = vpop.permute.xlu1 %1871  ;;  %3226 = vmatpush3.bf16.msra.mxu0 %v2046_v7 }
 0x353   : > { %v1901_v0 = vmul.f32 %v1872_v15, %v1821_v26  ;;  %v2012_v54 = vmul.f32 0.1, %v1980_v57  ;;  %vm1996_vm10 = vcmp.ge.f32.partialorder %v1980_v57, 0.0 }
 0x355   : > { %v2028_v23 = vsel %vm1996_vm10, %v1980_v57, %v2012_v54 }
 0x357   : > { %v1952_v59 = vpop.permute.xlu1 %1951 }
 0x358   : > { %v1981_v52 = vadd.f32 %v1952_v59, %v1901_v0 }
 0x35a   : > { %vm1997_vm11 = vcmp.ge.f32.partialorder %v1981_v52, 0.0  ;;  %v2013_v25 = vmul.f32 0.1, %v1981_v52 }
 0x35c   : > { %v1880_v11 = vpop.permute.xlu1 %1879  ;;  %v2029_v36 = vsel %vm1997_vm11, %v1981_v52, %v2013_v25 }
 0x35d   : > { %v1903_v40 = vmul.f32 %v1880_v11, %v5185_v13  ;;  %v2047_v28 = vpack.c.bf16 %v2029_v36, %v2028_v23 }
 0x35f   : > { %v1983_v8 = vadd.f32 %v1960_v61, %v1903_v40  ;;  %3227 = vmatprep.subr.bf16.mxu0 %v2047_v28 }
 0x360   : > { %3228 = vmatpush3.bf16.msra.mxu0 %v2047_v28 }
 0x361   : > { %v1956_v12 = vpop.permute.xlu1 %1955  ;;  %v2058_v10 = vpop.trf.xlu0  ;;  %v2015_v42 = vmul.f32 0.1, %v1983_v8  ;;  %vm1999_vm12 = vcmp.ge.f32.partialorder %v1983_v8, 0.0 }
 0x362   : > { %v1982_v39 = vadd.f32 %v1956_v12, %v5186_v27  ;;  %3233 = vmatprep.mubr.bf16.mxu0 %v2058_v10 }
 0x363   : > { %v2031_v2 = vsel %vm1999_vm12, %v1983_v8, %v2015_v42 }
 0x364   : > { %vm1998_vm13 = vcmp.ge.f32.partialorder %v1982_v39, 0.0  ;;  %v2014_v62 = vmul.f32 0.1, %v1982_v39 }
 0x365   : > { %v2059_v21 = vpop.trf.xlu0 }
 0x366   : > { %v1884_v1 = vpop.permute.xlu1 %1883  ;;  %v2030_v50 = vsel %vm1998_vm13, %v1982_v39, %v2014_v62 }
 0x367   : > { %v2048_v46 = vpack.c.bf16 %v2031_v2, %v2030_v50  ;;  %v1904_v53 = vmul.f32 %v1884_v1, %v4757_v14 }
 0x369   : > { %3229 = vmatprep.subr.bf16.mxu0 %v2048_v46  ;;  %v1984_v60 = vadd.f32 %v1964_v6, %v1904_v53  ;;  %v2060_v37 = vpop.trf.xlu0 }
 0x36a   : > { %v1888_v44 = vpop.permute.xlu1 %1887  ;;  %3230 = vmatpush3.bf16.msra.mxu0 %v2048_v46 }
 0x36b   : > { %v1905_v31 = vmul.f32 %v1888_v44, %v4759_v29  ;;  %v2016_v5 = vmul.f32 0.1, %v1984_v60  ;;  %vm2000_vm14 = vcmp.ge.f32.partialorder %v1984_v60, 0.0 }
 0x36d   : > { %v2032_v48 = vsel %vm2000_vm14, %v1984_v60, %v2016_v5  ;;  %v2061_v14 = vpop.trf.xlu0 }
 0x36f   : > { %v1968_v56 = vpop.permute.xlu1 %1967 }
 0x370   : > { %v1985_v33 = vadd.f32 %v1968_v56, %v1905_v31 }
 0x371   : > { %v2062_v24 = vpop.trf.xlu0 }
 0x372   : > { %vm2001_vm15 = vcmp.ge.f32.partialorder %v1985_v33, 0.0  ;;  %v2017_v32 = vmul.f32 0.1, %v1985_v33 }
 0x374   : > { %v2033_v41 = vsel %vm2001_vm15, %v1985_v33, %v2017_v32 }
 0x375   : > { %v2049_v58 = vpack.c.bf16 %v2033_v41, %v2032_v48  ;;  %v2063_v29 = vpop.trf.xlu0 }
 0x377   : > { %3231 = vmatprep.subr.bf16.mxu0 %v2049_v58 }
 0x378   : > { %3232 = vmatpush3.bf16.msra.mxu0 %v2049_v58 }
 0x379   : > { %2382 = vmatprep.subr.bf16.mxu0 %v3493_v47  ;;  %v2064_v22 = vpop.trf.xlu0 }
 0x37b   : > { %3234 = vmatmul.mubr.bf16.vlgmr.msra.gmra.mrb[16].mxu0 %v2059_v21 }
 0x37c   : > { %3237 = vmatprep.mubr.bf16.mxu0 %v2060_v37 }
 0x37d   : > { %v2065_v43 = vpop.trf.xlu0 }
 0x383   : > { %3238 = vmatmul.mubr.bf16.gmra.mrb[20].mxu0 %v2061_v14 }
 0x384   : > { %3241 = vmatprep.mubr.bf16.mxu0 %v2062_v24 }
 0x38b   : > { %3242 = vmatmul.mubr.bf16.gmra.mrb[24].mxu0 %v2063_v29 }
 0x38c   : > { %3245 = vmatprep.mubr.bf16.mxu0 %v2064_v22 }
 0x393   : > { %3246 = vmatmul.mubr.bf16.gmra.mrb[28].mxu0 %v2065_v43 }
 0x394   : > { %2414 = vmatprep.mubr.bf16.mxu0 %v5187_v30 }
 0x44e   : > { %v3235_v18 = vpop.f32.mrb[16].mxu0 }
 0x44f   : > { %v2100_v45 = vpop.f32.mrb[17].mxu0  ;;  %v4817_v34 = vmul.f32 0.088388346, %v3235_v18 }
 0x450   : > { %v3236_v63 = vpop.f32.mrb[18].mxu0  ;;  %v2163_v4 = vmul.f32 0.088388346, %v2100_v45 }
 0x451   : > { %v2103_v35 = vpop.f32.mrb[19].mxu0  ;;  %v4823_v55 = vmul.f32 0.088388346, %v3236_v63 }
 0x452   : > { %v2164_v15 = vmul.f32 0.088388346, %v2103_v35 }
 0x456   : > { %v3239_v3 = vpop.f32.mrb[20].mxu0 }
 0x457   : > { %v4819_v49 = vmul.f32 0.088388346, %v3239_v3  ;;  %v2116_v19 = vpop.f32.mrb[21].mxu0 }
 0x458   : > { %v4821_v16 = vmul.f32 0.088388346, %v2116_v19  ;;  %v3240_v9 = vpop.f32.mrb[22].mxu0 }
 0x459   : > { %v2181_v7 = vmax.f32 %v4817_v34, %v4819_v49  ;;  %v4827_v38 = vmul.f32 0.088388346, %v3240_v9  ;;  %v2119_v51 = vpop.f32.mrb[23].mxu0 }
 0x45a   : > { %v2179_v20 = vmax.f32 %v2163_v4, %v4821_v16  ;;  %v2168_v17 = vmul.f32 0.088388346, %v2119_v51 }
 0x45b   : > { %v2182_v57 = vmax.f32 %v4823_v55, %v4827_v38 }
 0x45c   : > { %v2180_v26 = vmax.f32 %v2164_v15, %v2168_v17 }
 0x45e   : > { %v3243_v0 = vpop.f32.mrb[24].mxu0 }
 0x45f   : > { %v4832_v61 = vmul.f32 0.088388346, %v3243_v0  ;;  %v2132_v59 = vpop.f32.mrb[25].mxu0 }
 0x460   : > { %v4834_v54 = vmul.f32 0.088388346, %v2132_v59  ;;  %v3244_v52 = vpop.f32.mrb[26].mxu0 }
 0x461   : > { %v2185_v25 = vmax.f32 %v2181_v7, %v4832_v61  ;;  %v4837_v11 = vmul.f32 0.088388346, %v3244_v52  ;;  %v2135_v23 = vpop.f32.mrb[27].mxu0 }
 0x462   : > { %v2183_v36 = vmax.f32 %v2179_v20, %v4834_v54  ;;  %v2172_v6 = vmul.f32 0.088388346, %v2135_v23 }
 0x463   : > { %v2186_v13 = vmax.f32 %v2182_v57, %v4837_v11 }
 0x464   : > { %v2184_v40 = vmax.f32 %v2180_v26, %v2172_v6 }
 0x466   : > { %v3247_v28 = vpop.f32.mrb[28].mxu0 }
 0x467   : > { %v4841_v8 = vmul.f32 0.088388346, %v3247_v28  ;;  %v2148_v12 = vpop.f32.mrb[29].mxu0 }
 0x468   : > { %v4843_v10 = vmul.f32 0.088388346, %v2148_v12  ;;  %v3248_v42 = vpop.f32.mrb[30].mxu0 }
 0x469   : > { %v2189_v27 = vmax.f32 %v2185_v25, %v4841_v8  ;;  %v4846_v39 = vmul.f32 0.088388346, %v3248_v42  ;;  %v2151_v62 = vpop.f32.mrb[31].mxu0 }
 0x46a   : > { %v2187_v1 = vmax.f32 %v2183_v36, %v4843_v10  ;;  %v4849_v50 = vmul.f32 0.088388346, %v2151_v62 }
 0x46b   : > { %v2190_v2 = vmax.f32 %v2186_v13, %v4846_v39 }
 0x46c   : > { %v2188_v46 = vmax.f32 %v2184_v40, %v4849_v50 }
 0x46d   : > { %v2192_v53 = vmax.f32 %v2189_v27, %v2190_v2 }
 0x46e   : > { %v2191_v44 = vmax.f32 %v2187_v1, %v2188_v46 }
 0x470   : > { %v2193_v21 = vmax.f32 %v2191_v44, %v2192_v53 }
 0x472   : > { %v2194_v60 = vrot.slane %v2193_v21, 4 }
 0x474   : > { %v2195_v31 = vmax.f32 %v2193_v21, %v2194_v60 }
 0x476   : > { %v2196_v56 = vrot.slane %v2195_v31, 2 }
 0x478   : > { %v2197_v5 = vmax.f32 %v2195_v31, %v2196_v56 }
 0x47a   : > { %v2198_v33 = vrot.slane %v2197_v5, 1 }
 0x47c   : > { %v2199_v37 = vmax.f32 %v2197_v5, %v2198_v33 }
 0x47e   : > { %v2200_v32 = vsub.f32 %v2163_v4, %v2199_v37  ;;  %v2201_v48 = vsub.f32 %v2164_v15, %v2199_v37  ;;  %v2202_v41 = vsub.f32 %v4817_v34, %v2199_v37  ;;  %v2203_v58 = vsub.f32 %v4823_v55, %v2199_v37 }
 0x47f   : > { %v2204_v14 = vsub.f32 %v4821_v16, %v2199_v37  ;;  %v2205_v47 = vsub.f32 %v2168_v17, %v2199_v37  ;;  %v2206_v24 = vsub.f32 %v4819_v49, %v2199_v37  ;;  %v2207_v29 = vsub.f32 %v4827_v38, %v2199_v37 }
 0x480   : > { %v2208_v22 = vsub.f32 %v4834_v54, %v2199_v37  ;;  %v2209_v43 = vsub.f32 %v2172_v6, %v2199_v37  ;;  %v2210_v18 = vsub.f32 %v4832_v61, %v2199_v37  ;;  %v2211_v45 = vsub.f32 %v4837_v11, %v2199_v37 }
 0x481   : > { %v2212_v63 = vsub.f32 %v4843_v10, %v2199_v37  ;;  %v2213_v35 = vsub.f32 %v4849_v50, %v2199_v37  ;;  %v2214_v3 = vsub.f32 %v4841_v8, %v2199_v37  ;;  %v2215_v34 = vsub.f32 %v4846_v39, %v2199_v37 }
 0x482   : > { %v2216_v19 = vmul.f32 1.442695, %v2200_v32  ;;  %v2218_v4 = vmul.f32 1.442695, %v2201_v48  ;;  %v2220_v49 = vmul.f32 1.442695, %v2202_v41 }
 0x483   : > { %v2222_v16 = vmul.f32 1.442695, %v2203_v58  ;;  %v2224_v9 = vmul.f32 1.442695, %v2204_v14  ;;  %v2226_v55 = vmul.f32 1.442695, %v2205_v47 }
 0x484   : > { %3443 = vpow2.f32 %v2216_v19  ;;  %v2228_v7 = vmul.f32 1.442695, %v2206_v24  ;;  %v2230_v38 = vmul.f32 1.442695, %v2207_v29  ;;  %v2232_v20 = vmul.f32 1.442695, %v2208_v22 }
 0x485   : > { %3445 = vpow2.f32 %v2218_v4  ;;  %v2234_v26 = vmul.f32 1.442695, %v2209_v43  ;;  %v2236_v59 = vmul.f32 1.442695, %v2210_v18  ;;  %v2238_v25 = vmul.f32 1.442695, %v2211_v45 }
 0x486   : > { %3447 = vpow2.f32 %v2220_v49  ;;  %v2240_v36 = vmul.f32 1.442695, %v2212_v63  ;;  %v2242_v40 = vmul.f32 1.442695, %v2213_v35  ;;  %v2244_v12 = vmul.f32 1.442695, %v2214_v3 }
 0x487   : > { %3449 = vpow2.f32 %v2222_v16  ;;  %v2246_v27 = vmul.f32 1.442695, %v2215_v34 }
 0x488   : > { %3451 = vpow2.f32 %v2224_v9 }
 0x489   : > { %3453 = vpow2.f32 %v2226_v55 }
 0x48a   : > { %3455 = vpow2.f32 %v2228_v7 }
 0x48b   : > { %3457 = vpow2.f32 %v2230_v38 }
 0x48c   : > { %3459 = vpow2.f32 %v2232_v20 }
 0x48d   : > { %3461 = vpow2.f32 %v2234_v26 }
 0x48e   : > { %v3444_v51 = vpop.eup %3443  ;;  %3463 = vpow2.f32 %v2236_v59 }
 0x48f   : > { %v3446_v15 = vpop.eup %3445  ;;  %3465 = vpow2.f32 %v2238_v25  ;;  %v3495_v25 = vld [vmem:[%s3973_s21 + $0x10] sm:$0xff]  }
 0x490   : > { %v2248_v17 = vadd.f32 %v3446_v15, %v3444_v51  ;;  %v3448_v57 = vpop.eup %3447  ;;  %3467 = vpow2.f32 %v2240_v36 }
 0x491   : > { %v3450_v61 = vpop.eup %3449  ;;  %3469 = vpow2.f32 %v2242_v40 }
 0x492   : > { %v2249_v0 = vadd.f32 %v3448_v57, %v2248_v17  ;;  %v3452_v52 = vpop.eup %3451  ;;  %3471 = vpow2.f32 %v2244_v12  ;;  %v3494_v17 = vld [vmem:[%s3973_s21 + $0x8] sm:$0xff]  }
 0x493   : > { %v3454_v23 = vpop.eup %3453  ;;  %3473 = vpow2.f32 %v2246_v27 }
 0x494   : > { %v2250_v54 = vadd.f32 %v3450_v61, %v2249_v0  ;;  %v3456_v13 = vpop.eup %3455 }
 0x495   : > { %v3458_v8 = vpop.eup %3457 }
 0x496   : > { %v2251_v11 = vadd.f32 %v3452_v52, %v2250_v54  ;;  %v3460_v42 = vpop.eup %3459 }
 0x497   : > { %v3462_v62 = vpop.eup %3461 }
 0x498   : > { %v2252_v6 = vadd.f32 %v3454_v23, %v2251_v11  ;;  %v3464_v50 = vpop.eup %3463 }
 0x499   : > { %v4865_v46 = vpop.eup %3465 }
 0x49a   : > { %v2253_v28 = vadd.f32 %v3456_v13, %v2252_v6  ;;  %v3468_v44 = vpop.eup %3467 }
 0x49b   : > { %v3470_v60 = vpop.eup %3469 }
 0x49c   : > { %v2254_v10 = vadd.f32 %v3458_v8, %v2253_v28  ;;  %v3472_v56 = vpop.eup %3471 }
 0x49d   : > { %v3474_v33 = vpop.eup %3473 }
 0x49e   : > { %v2255_v39 = vadd.f32 %v3460_v42, %v2254_v10 }
 0x4a0   : > { %v2256_v1 = vadd.f32 %v3462_v62, %v2255_v39  ;;  %v3496_v39 = vld [vmem:[%s3973_s21 + $0x18] sm:$0xff]  }
 0x4a2   : > { %v2257_v2 = vadd.f32 %v3464_v50, %v2256_v1 }
 0x4a4   : > { %v2258_v53 = vadd.f32 %v4865_v46, %v2257_v2 }
 0x4a6   : > { %v2259_v21 = vadd.f32 %v3468_v44, %v2258_v53 }
 0x4a8   : > { %v2260_v31 = vadd.f32 %v3470_v60, %v2259_v21 }
 0x4aa   : > { %v2261_v5 = vadd.f32 %v3472_v56, %v2260_v31 }
 0x4ac   : > { %v2262_v37 = vadd.f32 %v3474_v33, %v2261_v5 }
 0x4ae   : > { %v2263_v32 = vrot.slane %v2262_v37, 4 }
 0x4b0   : > { %v2264_v48 = vadd.f32 %v2263_v32, %v2262_v37  ;;  %v3498_v37 = vld [vmem:[%s3973_s21 + $0x28] sm:$0xff]  }
 0x4b2   : > { %v2265_v41 = vrot.slane %v2264_v48, 2 }
 0x4b4   : > { %v2266_v58 = vadd.f32 %v2265_v41, %v2264_v48 }
 0x4b6   : > { %v2267_v14 = vrot.slane %v2266_v58, 1 }
 0x4b8   : > { %v2268_v47 = vadd.f32 %v2267_v14, %v2266_v58 }
 0x4ba   : > { %3475 = vrcp.f32 %v2268_v47 }
 0x4c4   : > { %v3476_v24 = vpop.eup %3475 }
 0x4c5   : > { %v2282_v29 = vmul.f32 %v3476_v24, %v3468_v44  ;;  %v2283_v22 = vmul.f32 %v3476_v24, %v3470_v60  ;;  %v2270_v43 = vmul.f32 %v3476_v24, %v3444_v51  ;;  %v2271_v18 = vmul.f32 %v3476_v24, %v3446_v15  ;;  %v3497_v44 = vld [vmem:[%s3973_s21 + $0x20] sm:$0xff]  }
 0x4c6   : > { %v2272_v45 = vmul.f32 %v3476_v24, %v3448_v57  ;;  %v2273_v63 = vmul.f32 %v3476_v24, %v3450_v61  ;;  %v2274_v35 = vmul.f32 %v3476_v24, %v3452_v52  ;;  %v2275_v3 = vmul.f32 %v3476_v24, %v3454_v23 }
 0x4c7   : > { %v4868_v34 = vpack.c.bf16 %v2283_v22, %v2282_v29  ;;  %v2286_v19 = vpack.c.bf16 %v2271_v18, %v2270_v43  ;;  %v2276_v4 = vmul.f32 %v3476_v24, %v3456_v13  ;;  %v2277_v49 = vmul.f32 %v3476_v24, %v3458_v8 }
 0x4c8   : > { %v2287_v16 = vpack.c.bf16 %v2273_v63, %v2272_v45  ;;  %v2288_v9 = vpack.c.bf16 %v2275_v3, %v2274_v35  ;;  %v2278_v55 = vmul.f32 %v3476_v24, %v3460_v42  ;;  %v2279_v7 = vmul.f32 %v3476_v24, %v3462_v62  ;;  %v3500_v35 = vld [vmem:[%s3973_s21 + $0x38] sm:$0xff]  }
 0x4c9   : > { %3096 = vst [vmem:[%s4871_s17 + $0x30] sm:$0xff] %v4868_v34   ;;  %2366 = vxpose.xlu1.c.b16.start [1/8] %v2286_v19, 128  ;;  %3015 = vst [vmem:[%s4871_s17] sm:$0xff] %v2286_v19   ;;  %v2495_v38 = vunpack.c.l.bf16 %v2286_v19  ;;  %v2496_v51 = vunpack.c.h.bf16 %v2286_v19  ;;  %2383 = vmatpush1.bf16.msra.mxu0 %v2286_v19  ;;  %v2289_v15 = vpack.c.bf16 %v2277_v49, %v2276_v4  ;;  %v2507_v58 = vunpack.c.l.bf16 %v4868_v34 }
 0x4ca   : > { %v2280_v20 = vmul.f32 %v3476_v24, %v3464_v50  ;;  %3257 = vmatpush1.bf16.msra.mxu1 %v2286_v19  ;;  %2384 = vmatprep.subr.bf16.mxu0 %v3494_v17  ;;  %3091 = vst [vmem:[%s4871_s17 + $0x8] sm:$0xff] %v2287_v16   ;;  %v2497_v57 = vunpack.c.l.bf16 %v2287_v16  ;;  %3092 = vst [vmem:[%s4871_s17 + $0x10] sm:$0xff] %v2288_v9   ;;  %v2498_v61 = vunpack.c.h.bf16 %v2287_v16  ;;  %v2499_v52 = vunpack.c.l.bf16 %v2288_v9 }
 0x4cb   : > { %v2548_v26 = vmul.f32 %v2495_v38, %v2495_v38  ;;  %v2549_v0 = vmul.f32 %v2496_v51, %v2496_v51  ;;  %3250 = vmatprep.subr.bf16.mxu1 %v3494_v17  ;;  %3093 = vst [vmem:[%s4871_s17 + $0x18] sm:$0xff] %v2289_v15   ;;  %v2290_v11 = vpack.c.bf16 %v2279_v7, %v2278_v55  ;;  %v2500_v40 = vunpack.c.h.bf16 %v2288_v9 }
 0x4cc   : > { %v2550_v54 = vmul.f32 %v2497_v57, %v2497_v57  ;;  %v2281_v23 = vmul.f32 %v3476_v24, %v4865_v46  ;;  %v2284_v36 = vmul.f32 %v3476_v24, %v3472_v56  ;;  %v2551_v6 = vmul.f32 %v2498_v61, %v2498_v61 }
 0x4cd   : > { %v2564_v59 = vadd.f32 %v2549_v0, %v2548_v26  ;;  %2367 = vxpose.xlu1.c.b16.cont [2/8] %v2287_v16, 128  ;;  %2385 = vmatpush1.bf16.msra.mxu0 %v2287_v16  ;;  %v2285_v28 = vmul.f32 %v3476_v24, %v3474_v33  ;;  %3094 = vst [vmem:[%s4871_s17 + $0x20] sm:$0xff] %v2290_v11   ;;  %v2501_v42 = vunpack.c.l.bf16 %v2289_v15  ;;  %v2502_v50 = vunpack.c.h.bf16 %v2289_v15  ;;  %v3499_v24 = vld [vmem:[%s3973_s21 + $0x30] sm:$0xff]   ;;  %s2674_s21 = sand.u32 1, %s3797_s28  }
 0x4ce   : > { %3258 = vmatpush1.bf16.msra.mxu1 %v2287_v16  ;;  %2386 = vmatprep.subr.bf16.mxu0 %v3495_v25  ;;  %v2291_v8 = vpack.c.bf16 %v2281_v23, %v2280_v20  ;;  %v2552_v10 = vmul.f32 %v2499_v52, %v2499_v52  ;;  %v2553_v62 = vmul.f32 %v2500_v40, %v2500_v40  ;;  %v2503_v53 = vunpack.c.l.bf16 %v2290_v11  ;;  %s4923_s11 = scalar_lea.sflag [#allocation11], %s2674_s21 }
 0x4cf   : > { %v2565_v13 = vadd.f32 %v2564_v59, %v2550_v54  ;;  %3251 = vmatprep.subr.bf16.mxu1 %v3495_v25  ;;  %v4883_v27 = vpack.c.bf16 %v2285_v28, %v2284_v36  ;;  %v2554_v46 = vmul.f32 %v2501_v42, %v2501_v42  ;;  %v2555_v21 = vmul.f32 %v2502_v50, %v2502_v50 }
 0x4d0   : > { %3095 = vst [vmem:[%s4871_s17 + $0x28] sm:$0xff] %v2291_v8   ;;  %v2504_v60 = vunpack.c.h.bf16 %v2290_v11  ;;  %v2505_v56 = vunpack.c.l.bf16 %v2291_v8  ;;  %v2556_v5 = vmul.f32 %v2503_v53, %v2503_v53  ;;  %v2506_v32 = vunpack.c.h.bf16 %v2291_v8 }
 0x4d1   : > { %v2566_v12 = vadd.f32 %v2565_v13, %v2551_v6  ;;  %2368 = vxpose.xlu1.c.b16.cont [3/8] %v2288_v9, 128  ;;  %2387 = vmatpush1.bf16.msra.mxu0 %v2288_v9  ;;  %3097 = vst [vmem:[%s4871_s17 + $0x38] sm:$0xff] %v4883_v27   ;;  %v2508_v29 = vunpack.c.h.bf16 %v4868_v34  ;;  %v2509_v18 = vunpack.c.l.bf16 %v4883_v27  ;;  %v2560_v45 = vmul.f32 %v2507_v58, %v2507_v58 }
 0x4d2   : > { %3259 = vmatpush1.bf16.msra.mxu1 %v2288_v9  ;;  %2388 = vmatprep.subr.bf16.mxu0 %v3496_v39  ;;  %v2557_v48 = vmul.f32 %v2504_v60, %v2504_v60  ;;  %v2558_v14 = vmul.f32 %v2505_v56, %v2505_v56  ;;  %v2559_v22 = vmul.f32 %v2506_v32, %v2506_v32  ;;  %v2510_v3 = vunpack.c.h.bf16 %v4883_v27 }
 0x4d3   : > { %v2567_v1 = vadd.f32 %v2566_v12, %v2552_v10  ;;  %3252 = vmatprep.subr.bf16.mxu1 %v3496_v39  ;;  %v2561_v19 = vmul.f32 %v2508_v29, %v2508_v29  ;;  %v2562_v49 = vmul.f32 %v2509_v18, %v2509_v18 }
 0x4d4   : > { %v2563_v9 = vmul.f32 %v2510_v3, %v2510_v3 }
 0x4d5   : > { %v2568_v2 = vadd.f32 %v2567_v1, %v2553_v62  ;;  %2369 = vxpose.xlu1.c.b16.cont [4/8] %v2289_v15, 128  ;;  %2389 = vmatpush1.bf16.msra.mxu0 %v2289_v15 }
 0x4d6   : > { %3260 = vmatpush1.bf16.msra.mxu1 %v2289_v15  ;;  %2390 = vmatprep.subr.bf16.mxu0 %v3497_v44 }
 0x4d7   : > { %3253 = vmatprep.subr.bf16.mxu1 %v3497_v44  ;;  %v2569_v31 = vadd.f32 %v2568_v2, %v2554_v46 }
 0x4d9   : > { %2370 = vxpose.xlu1.c.b16.cont [5/8] %v2290_v11, 128  ;;  %2391 = vmatpush1.bf16.msra.mxu0 %v2290_v11  ;;  %v2570_v33 = vadd.f32 %v2569_v31, %v2555_v21 }
 0x4da   : > { %3261 = vmatpush1.bf16.msra.mxu1 %v2290_v11  ;;  %2392 = vmatprep.subr.bf16.mxu0 %v3498_v37 }
 0x4db   : > { %3254 = vmatprep.subr.bf16.mxu1 %v3498_v37  ;;  %v2571_v41 = vadd.f32 %v2570_v33, %v2556_v5 }
 0x4dd   : > { %2371 = vxpose.xlu1.c.b16.cont [6/8] %v2291_v8, 128  ;;  %2393 = vmatpush1.bf16.msra.mxu0 %v2291_v8  ;;  %v2572_v47 = vadd.f32 %v2571_v41, %v2557_v48 }
 0x4de   : > { %3262 = vmatpush1.bf16.msra.mxu1 %v2291_v8  ;;  %2394 = vmatprep.subr.bf16.mxu0 %v3499_v24 }
 0x4df   : > { %3255 = vmatprep.subr.bf16.mxu1 %v3499_v24  ;;  %v2573_v43 = vadd.f32 %v2572_v47, %v2558_v14 }
 0x4e1   : > { %2372 = vxpose.xlu1.c.b16.cont [7/8] %v4868_v34, 128  ;;  %2395 = vmatpush1.bf16.msra.mxu0 %v4868_v34  ;;  %v2574_v63 = vadd.f32 %v2573_v43, %v2559_v22 }
 0x4e2   : > { %3263 = vmatpush1.bf16.msra.mxu1 %v4868_v34  ;;  %2396 = vmatprep.subr.bf16.mxu0 %v3500_v35 }
 0x4e3   : > { %3256 = vmatprep.subr.bf16.mxu1 %v3500_v35  ;;  %v2575_v4 = vadd.f32 %v2574_v63, %v2560_v45 }
 0x4e5   : > { %2373 = vxpose.xlu1.c.b16.end [8/8] %v4883_v27, 128  ;;  %2397 = vmatpush1.bf16.msra.mxu0 %v4883_v27  ;;  %v2576_v16 = vadd.f32 %v2575_v4, %v2561_v19 }
 0x4e6   : > { %3264 = vmatpush1.bf16.msra.mxu1 %v4883_v27 }
 0x4e7   : > { %v2577_v55 = vadd.f32 %v2576_v16, %v2562_v49 }
 0x4e9   : > { %v4903_v7 = vadd.f32 %v2577_v55, %v2563_v9 }
 0x52f   : > { %v2374_v34 = vpop.trf.xlu1 }
 0x530   : > { %2415 = vmatmul.mubr.bf16.vlgmr.msra.gmra.mrb[32].mxu0 %v2374_v34 }
 0x531   : > { %2424 = vmatprep.mubr.bf16.mxu0 %v5187_v30 }
 0x533   : > { %v2375_v38 = vpop.trf.xlu1 }
 0x537   : > { %v2376_v51 = vpop.trf.xlu1 }
 0x538   : > { %2425 = vmatmul.mubr.bf16.gmra.mrb[36].mxu0 %v2375_v38  ;;  %2435 = vmatmul.mubr.bf16.vlgmr.msra.gmra.mrb[16].mxu1 %v2376_v51 }
 0x539   : > { %2444 = vmatprep.mubr.bf16.mxu1 %v5187_v30 }
 0x53b   : > { %v2377_v15 = vpop.trf.xlu1 }
 0x53f   : > { %v2378_v20 = vpop.trf.xlu1 }
 0x540   : > { %2445 = vmatmul.mubr.bf16.gmra.mrb[20].mxu1 %v2377_v15 }
 0x541   : > { %2454 = vmatprep.mubr.bf16.mxu1 %v5187_v30 }
 0x543   : > { %v2379_v17 = vpop.trf.xlu1 }
 0x547   : > { %v2380_v57 = vpop.trf.xlu1 }
 0x548   : > { %2455 = vmatmul.mubr.bf16.gmra.mrb[24].mxu1 %v2378_v20 }
 0x549   : > { %2464 = vmatprep.mubr.bf16.mxu1 %v5187_v30 }
 0x54b   : > { %v2381_v26 = vpop.trf.xlu1 }
 0x550   : > { %2465 = vmatmul.mubr.bf16.gmra.mrb[28].mxu1 %v2379_v17 }
 0x551   : > { %2474 = vmatprep.mubr.bf16.mxu1 %v5187_v30 }
 0x558   : > { %2475 = vmatmul.mubr.bf16.gmra.mrb[32].mxu1 %v2380_v57 }
 0x559   : > { %2484 = vmatprep.mubr.bf16.mxu1 %v5187_v30 }
 0x560   : > { %2485 = vmatmul.mubr.bf16.gmra.mrb[36].mxu1 %v2381_v26 }
 0x561   : > { %3598 = shalt.err (!%p3595_p12)
}
 0x562   : > { %s3599_s29 = scalar_lea.hbm %s4918_s20, 1024  ;;  %s3603_s17 = scalar_lea.hbm %s5051_s6, 2048 }
 0x563   : > { %p3600_p13 = scmp.ne.s32.totalorder %s4918_s20, %s3599_s29  ;;  %p3604_p0 = scmp.lt.u32.totalorder %s4918_s20, %s5051_s6 }
 0x564   : > { %p3605_p7 = scmp.lt.u32.totalorder %s3603_s17, %s3599_s29  ;;  %p3607_p10 = scmp.lt.u32.totalorder %s3599_s29, %s4918_s20 }
 0x565   : > { %p3601_p11 = pnand %p3600_p13, %p5188_p9 }
 0x566   : > { %p3606_p8 = por %p3605_p7, %p3604_p0 }
 0x567   : > { %p3602_p5 = pneg %p3601_p11 }
 0x568   : > { %p3608_p1 = por %p3607_p10, %p3606_p8 }
 0x56a   : > { %p3609_p3 = pnand %p3608_p1, %p3602_p5 }
 0x56c   : > { %3612 = shalt.err (!%p3609_p3)
}
 0x56d   : > { %s3732_s8 = smov 64   ;;  %s3733_s12 = smov 4   ;;  %v2579_v38 = vrot.slane %v4903_v7, 4 }
 0x56e   : > { %3276 = dma.vmem_to_hbm [thread:$0]  (%p5188_p9), %s4921_s22, 1024, %s4918_s20, %s4923_s11, %s3732_s8, %s3732_s8, %s3733_s12  }
 0x56f   : > { %s4951_s15 = scalar_lea.vmem [#allocation9], %s3966_s9  ;;  %s4970_s30 = scalar_lea.hbm %s5050_s5, %s3009_s10 }
 0x570   : > { %s2692_s9 = sshll.u32 %s4951_s15, 4  ;;  %s2670_s14 = scalar_lea.sflag [#allocation5], %s3963_s18  ;;  %s4963_s9 = int_to_ptr.vmem [resolvable:$true] %s2692_s9 }
 0x571   : > { %s3613_s29 = scalar_lea.vmem %s4963_s9, 1024  ;;  %s3734_s16 = smov [#allocation9]  }
 0x572   : > { %p3614_p2 = scmp.ne.s32.totalorder %s4963_s9, %s3613_s29  ;;  %s3617_s19 = sshll.u32 %s3734_s16, 4  ;;  %s3618_s19 = int_to_ptr.vmem [resolvable:$false] %s3617_s19 }
 0x573   : > { %s3619_s17 = scalar_lea.vmem %s3618_s19, 2048  ;;  %p3620_p13 = scmp.lt.s32.totalorder %s4963_s9, %s3618_s19 }
 0x574   : > { %p3615_p6 = pnand %p3614_p2, %p5188_p9  ;;  %p3621_p11 = scmp.lt.s32.totalorder %s3619_s17, %s3613_s29 }
 0x576   : > { %p3616_p12 = pneg %p3615_p6  ;;  %p3622_p5 = por %p3621_p11, %p3620_p13 }
 0x578   : > { %p3623_p0 = pnand %p3622_p5, %p3616_p12 }
 0x603   : > { %v2416_v30 = vpop.f32.mrb[32].mxu0 }
 0x604   : > { %v2418_v0 = vpop.f32.mrb[33].mxu0  ;;  %v2511_v59 = vmul.f32 %v2416_v30, %v2416_v30  ;;  %v2580_v30 = vadd.f32 %v2579_v38, %v4903_v7 }
 0x605   : > { %v2420_v61 = vpop.f32.mrb[34].mxu0 }
 0x606   : > { %v2512_v54 = vmul.f32 %v2420_v61, %v2420_v61  ;;  %v2422_v52 = vpop.f32.mrb[35].mxu0 }
 0x607   : > { %v3054_v25 = vpack.c.bf16 %v2422_v52, %v2418_v0 }
 0x608   : > { %v2527_v11 = vadd.f32 %v2512_v54, %v2511_v59  ;;  %v2581_v54 = vrot.slane %v2580_v30, 2 }
 0x609   : > { %3055 = vst [vmem:[%s4951_s15] sm:$0xff] %v3054_v25  }
 0x60b   : > { %v2426_v23 = vpop.f32.mrb[36].mxu0  ;;  %v2436_v36 = vpop.f32.mrb[16].mxu1 }
 0x60c   : > { %v2513_v6 = vmul.f32 %v2426_v23, %v2426_v23  ;;  %v2428_v13 = vpop.f32.mrb[37].mxu0  ;;  %v2438_v40 = vpop.f32.mrb[17].mxu1  ;;  %v2515_v1 = vmul.f32 %v2436_v36, %v2436_v36 }
 0x60d   : > { %v2430_v28 = vpop.f32.mrb[38].mxu0  ;;  %v2440_v8 = vpop.f32.mrb[18].mxu1 }
 0x60e   : > { %v2528_v12 = vadd.f32 %v2527_v11, %v2513_v6  ;;  %v2514_v10 = vmul.f32 %v2430_v28, %v2430_v28  ;;  %v2432_v42 = vpop.f32.mrb[39].mxu0  ;;  %v2442_v27 = vpop.f32.mrb[19].mxu1  ;;  %v2516_v2 = vmul.f32 %v2440_v8, %v2440_v8  ;;  %v2582_v6 = vadd.f32 %v2581_v54, %v2580_v30 }
 0x60f   : > { %v3059_v39 = vpack.c.bf16 %v2432_v42, %v2428_v13  ;;  %v3064_v62 = vpack.c.bf16 %v2442_v27, %v2438_v40 }
 0x610   : > { %v2529_v50 = vadd.f32 %v2528_v12, %v2514_v10 }
 0x611   : > { %3098 = vst [vmem:[%s4951_s15 + $0x8] sm:$0xff] %v3059_v39   ;;  %3099 = vst [vmem:[%s4951_s15 + $0x10] sm:$0xff] %v3064_v62  }
 0x612   : > { %v2530_v46 = vadd.f32 %v2529_v50, %v2515_v1 }
 0x613   : > { %v2446_v53 = vpop.f32.mrb[20].mxu1 }
 0x614   : > { %v2531_v44 = vadd.f32 %v2530_v46, %v2516_v2  ;;  %v2517_v21 = vmul.f32 %v2446_v53, %v2446_v53  ;;  %v2448_v60 = vpop.f32.mrb[21].mxu1 }
 0x615   : > { %v2450_v31 = vpop.f32.mrb[22].mxu1 }
 0x616   : > { %v2532_v56 = vadd.f32 %v2531_v44, %v2517_v21  ;;  %v2518_v5 = vmul.f32 %v2450_v31, %v2450_v31  ;;  %v2452_v33 = vpop.f32.mrb[23].mxu1 }
 0x617   : > { %v3069_v37 = vpack.c.bf16 %v2452_v33, %v2448_v60 }
 0x618   : > { %v2533_v32 = vadd.f32 %v2532_v56, %v2518_v5 }
 0x619   : > { %3100 = vst [vmem:[%s4951_s15 + $0x18] sm:$0xff] %v3069_v37  }
 0x61b   : > { %v2456_v48 = vpop.f32.mrb[24].mxu1 }
 0x61c   : > { %v2519_v41 = vmul.f32 %v2456_v48, %v2456_v48  ;;  %v2458_v58 = vpop.f32.mrb[25].mxu1 }
 0x61d   : > { %v2460_v14 = vpop.f32.mrb[26].mxu1 }
 0x61e   : > { %v2534_v47 = vadd.f32 %v2533_v32, %v2519_v41  ;;  %v2520_v24 = vmul.f32 %v2460_v14, %v2460_v14  ;;  %v2462_v29 = vpop.f32.mrb[27].mxu1 }
 0x61f   : > { %v3074_v22 = vpack.c.bf16 %v2462_v29, %v2458_v58 }
 0x620   : > { %v2535_v43 = vadd.f32 %v2534_v47, %v2520_v24 }
 0x621   : > { %3101 = vst [vmem:[%s4951_s15 + $0x20] sm:$0xff] %v3074_v22  }
 0x623   : > { %v2466_v18 = vpop.f32.mrb[28].mxu1 }
 0x624   : > { %v2521_v45 = vmul.f32 %v2466_v18, %v2466_v18  ;;  %v2468_v63 = vpop.f32.mrb[29].mxu1 }
 0x625   : > { %v2470_v35 = vpop.f32.mrb[30].mxu1 }
 0x626   : > { %v2536_v3 = vadd.f32 %v2535_v43, %v2521_v45  ;;  %v2522_v19 = vmul.f32 %v2470_v35, %v2470_v35  ;;  %v2472_v4 = vpop.f32.mrb[31].mxu1 }
 0x627   : > { %v3079_v49 = vpack.c.bf16 %v2472_v4, %v2468_v63 }
 0x628   : > { %v2537_v16 = vadd.f32 %v2536_v3, %v2522_v19 }
 0x629   : > { %3102 = vst [vmem:[%s4951_s15 + $0x28] sm:$0xff] %v3079_v49  }
 0x62b   : > { %v2476_v9 = vpop.f32.mrb[32].mxu1 }
 0x62c   : > { %v2523_v55 = vmul.f32 %v2476_v9, %v2476_v9  ;;  %v2478_v34 = vpop.f32.mrb[33].mxu1 }
 0x62d   : > { %v2480_v51 = vpop.f32.mrb[34].mxu1 }
 0x62e   : > { %v2538_v15 = vadd.f32 %v2537_v16, %v2523_v55  ;;  %v2524_v20 = vmul.f32 %v2480_v51, %v2480_v51  ;;  %v2482_v17 = vpop.f32.mrb[35].mxu1 }
 0x62f   : > { %v3084_v57 = vpack.c.bf16 %v2482_v17, %v2478_v34 }
 0x630   : > { %v2539_v26 = vadd.f32 %v2538_v15, %v2524_v20 }
 0x631   : > { %3103 = vst [vmem:[%s4951_s15 + $0x30] sm:$0xff] %v3084_v57  }
 0x633   : > { %v2486_v0 = vpop.f32.mrb[36].mxu1 }
 0x634   : > { %v2525_v61 = vmul.f32 %v2486_v0, %v2486_v0  ;;  %v2488_v59 = vpop.f32.mrb[37].mxu1 }
 0x635   : > { %v2490_v52 = vpop.f32.mrb[38].mxu1 }
 0x636   : > { %v2540_v25 = vadd.f32 %v2539_v26, %v2525_v61  ;;  %v2526_v11 = vmul.f32 %v2490_v52, %v2490_v52  ;;  %v2492_v23 = vpop.f32.mrb[39].mxu1 }
 0x637   : > { %v3089_v36 = vpack.c.bf16 %v2492_v23, %v2488_v59 }
 0x638   : > { %v2541_v7 = vadd.f32 %v2540_v25, %v2526_v11 }
 0x639   : > { %3104 = vst [vmem:[%s4951_s15 + $0x38] sm:$0xff] %v3089_v36  }
 0x63a   : > { %v2542_v13 = vrot.slane %v2541_v7, 4 }
 0x63b   : > { %3626 = shalt.err (!%p3623_p0)
}
 0x63c   : > { %s3627_s10 = scalar_lea.hbm %s4970_s30, 1024  ;;  %s3631_s15 = scalar_lea.hbm %s5050_s5, 2048 }
 0x63d   : > { %p3628_p7 = scmp.ne.s32.totalorder %s4970_s30, %s3627_s10  ;;  %p3632_p1 = scmp.lt.u32.totalorder %s4970_s30, %s5050_s5 }
 0x63e   : > { %p3633_p3 = scmp.lt.u32.totalorder %s3631_s15, %s3627_s10  ;;  %p3635_p6 = scmp.lt.u32.totalorder %s3627_s10, %s4970_s30 }
 0x63f   : > { %p3629_p8 = pnand %p3628_p7, %p5188_p9 }
 0x640   : > { %p3634_p2 = por %p3633_p3, %p3632_p1 }
 0x641   : > { %p3630_p10 = pneg %p3629_p8 }
 0x642   : > { %p3636_p12 = por %p3635_p6, %p3634_p2 }
 0x644   : > { %p3637_p13 = pnand %p3636_p12, %p3630_p10 }
 0x646   : > { %3640 = shalt.err (!%p3637_p13)
}
 0x647   : > { %3275 = dma.vmem_to_hbm [thread:$0]  (%p5188_p9), %s4963_s9, 1024, %s4970_s30, %s2670_s14, %s3732_s8, %s3732_s8, %s3733_s12   ;;  %v2543_v40 = vadd.f32 %v2542_v13, %v2541_v7  ;;  %v2583_v28 = vrot.slane %v2582_v6, 1 }
 0x648   : > { %s2974_s29 = sshll.u32 %s3797_s28, 4  ;;  %s462_s16 = scalar_lea.vmem [#allocation12], %s3963_s18 }
 0x649   : > { %v2544_v8 = vrot.slane %v2543_v40, 2  ;;  %v2584_v10 = vadd.f32 %v2583_v28, %v2582_v6  ;;  %s2724_s19 = sshll.u32 %s462_s16, 4  ;;  %s5005_s21 = scalar_lea.hbm %s5052_s7, %s2974_s29  ;;  %s2725_s19 = int_to_ptr.vmem [resolvable:$true] %s2724_s19 }
 0x64a   : > { %s3641_s8 = scalar_lea.vmem %s2725_s19, 16  ;;  %s3735_s12 = smov [#allocation12]  }
 0x64b   : > { %v2545_v12 = vadd.f32 %v2544_v8, %v2543_v40  ;;  %v2585_v39 = vmul.f32 2.0, %v2584_v10  ;;  %p3642_p11 = scmp.ne.s32.totalorder %s2725_s19, %s3641_s8  ;;  %s3645_s9 = sshll.u32 %s3735_s12, 4  ;;  %s3646_s9 = int_to_ptr.vmem [resolvable:$false] %s3645_s9 }
 0x64c   : > { %s3647_s28 = scalar_lea.vmem %s3646_s9, 32  ;;  %p3648_p7 = scmp.lt.s32.totalorder %s2725_s19, %s3646_s9 }
 0x64d   : > { %v2546_v42 = vrot.slane %v2545_v12, 1  ;;  %p3643_p5 = pnand %p3642_p11, %p5188_p9  ;;  %p3649_p8 = scmp.lt.s32.totalorder %s3647_s28, %s3641_s8 }
 0x64f   : > { %v2547_v27 = vadd.f32 %v2546_v42, %v2545_v12  ;;  %p3644_p0 = pneg %p3643_p5  ;;  %p3650_p10 = por %p3649_p8, %p3648_p7 }
 0x651   : > { %v2586_v62 = vsub.f32 %v2547_v27, %v2585_v39  ;;  %p3651_p1 = pnand %p3650_p10, %p3644_p0 }
 0x653   : > { %2668 = vst [vmem:[%s462_s16] sm:$0x1] %v2586_v62 }
 0x654   : > { %3654 = shalt.err (!%p3651_p1)
}
 0x655   : > { %s3655_s18 = scalar_lea.hbm %s5005_s21, 16  ;;  %s3659_s23 = scalar_lea.hbm %s5052_s7, 32 }
 0x656   : > { %p3656_p3 = scmp.ne.s32.totalorder %s5005_s21, %s3655_s18  ;;  %p3660_p12 = scmp.lt.u32.totalorder %s5005_s21, %s5052_s7 }
 0x657   : > { %p3661_p13 = scmp.lt.u32.totalorder %s3659_s23, %s3655_s18  ;;  %p3663_p5 = scmp.lt.u32.totalorder %s3655_s18, %s5005_s21 }
 0x658   : > { %p3657_p2 = pnand %p3656_p3, %p5188_p9 }
 0x659   : > { %p3662_p11 = por %p3661_p13, %p3660_p12 }
 0x65a   : > { %p3658_p6 = pneg %p3657_p2 }
 0x65b   : > { %p3664_p0 = por %p3663_p5, %p3662_p11 }
 0x65d   : > { %p3665_p7 = pnand %p3664_p0, %p3658_p6 }
 0x65f   : > { %3668 = shalt.err (!%p3665_p7)
}
 0x660   : > { %3277 = dma.vmem_to_hbm [thread:$0]  (%p5188_p9), %s2725_s19, 16, %s5005_s21, %s4923_s11  }
 0x661 PF: > { %s5189_s22 = sld [smem:[#allocation19_spill]]  ;;  %s2736_s29 = sand.u32 1, %s3703_s24  }
 0x662   : > { %s2737_s16 = scalar_lea.sflag [#allocation5], %s2736_s29 }
 0x667   : > { %p5190_p8 = scmp.ne.s32.totalorder %s5189_s22, 0 }
 0x669   : > { %p3289_p10 = pnand %p2892_p4, %p5190_p8 }
 0x66b   : > { %3694 = dma.done.wait (!%p3289_p10), %s2737_s16, 1024  }
 0x66c   : > { %3696 = vsyncadd (!%p3289_p10), %s2737_s16, 4294966272  ;;  %s5191_s17 = sadd.s32 4294967294, %s3715_s27  }
 0x66d   : > { %s2745_s10 = sand.u32 1, %s5191_s17  }
 0x66e   : > { %s2746_s8 = scalar_lea.sflag [#allocation11], %s2745_s10 }
 0x66f   : > { %3698 = dma.done.wait (!%p3289_p10), %s2746_s8, 1040  }
 0x670   : > { %3700 = vsyncadd (!%p3289_p10), %s2746_s8, 4294966256  ;;  %s5192_s27 = sld [smem:[#allocation17_spill]]  ;;  %s5193_s13 = sld [smem:[#allocation18_spill]] }
 0x671   : > { %s5194_s24 = smov %s3707_s25  ;;  %s5195_s25 = smov %s3711_s26 }
 0x676   : > { %p25_p9 = scmp.ge.s32.totalorder %s5192_s27, 4   ;;  %s5196_s26 = smov %s5193_s13 }
 0x678   :  { %27 = sbr.rel (!%p25_p9) target bundleno = 8 (0x8), region = 174 }
 0x67f   :  { %2759 = vsyncpa [#allocation4], 1 }
 0x680   :  { %2761 = vsyncpa [#allocation4 + $0x1], 1 }
 0x681   :  { %2762 = vsyncpa [#allocation7], 1 }
 0x682   :  { %2763 = vsyncpa [#allocation5], 1 }
 0x683   :  { %2765 = vsyncpa [#allocation5 + $0x1], 1 }
 0x684   :  { %2766 = vsyncpa [#allocation11], 1 }
 0x685   :  { %2768 = vsyncpa [#allocation11 + $0x1], 1 }

</bundles_post_ra>
